<compile_context>
chip_gen: v7x
topology: tpu7x:2x2x1
jax: 0.10.0
libtpu: 0.0.40
codegen_flags: <defaults>
</compile_context>

<pallas_src>
import functools
import math

import jax
import jax.numpy as jnp
from jax.experimental import pallas as pl
from jax.experimental.pallas import tpu as pltpu


# TODO(synk): re-derive from block bytes for production ESM2 shapes (E=1280, F=5120, T~1k).
_VMEM_LIMIT = 32 * 1024 * 1024


def _round_up(n, m):
    return ((n + m - 1) // m) * m


# ------------------------------ in-kernel helpers ------------------------------

def _ln(x, w, b, eps):
    # biased-variance LayerNorm (ESM1 / ESM1b), affine.  f32 in, f32 out.
    mean = jnp.mean(x, axis=-1, keepdims=True)
    xc = x - mean
    var = jnp.mean(xc * xc, axis=-1, keepdims=True)
    return xc * jax.lax.rsqrt(var + eps) * w + b


def _gelu_erf(x):
    return 0.5 * x * (1.0 + jax.lax.erf(x * (1.0 / math.sqrt(2.0))))


def _rotate_half(x):
    d = x.shape[-1] // 2
    return jnp.concatenate([-x[:, d:], x[:, :d]], axis=-1)


def _pad_mask(s_real, s_pad):
    # (1, s_pad) additive mask: 0 for real key columns, -1e30 for padded ones.
    col = jax.lax.broadcasted_iota(jnp.int32, (1, s_pad), 1)
    return jnp.where(col < s_real, 0.0, -1e30).astype(jnp.float32)


# ------------------------------- Pallas kernels --------------------------------

def _self_attn_kernel(x_full_ref, x_tile_ref, lnw_ref, lnb_ref,
                      wq_ref, bq_ref, wkv_ref, bkv_ref,
                      bk_ref, bv_ref, wo_ref, bo_ref,
                      y_ref, p_ref, k_scr, v_scr,
                      *, num_heads, eps, seq_len, s_real):
    i = pl.program_id(1)
    E = x_tile_ref.shape[-1]
    Dh = E // num_heads
    S_pad = k_scr.shape[0]

    # --- once per batch element: project K|V of LN(full x), append bias_kv, pad, store bf16 ---
    @pl.when(i == 0)
    def _():
        xf = x_full_ref[0].astype(jnp.float32)                               # (T, E)
        xfn = _ln(xf, lnw_ref[...], lnb_ref[...], eps).astype(jnp.bfloat16)
        kv = jnp.dot(xfn, wkv_ref[...], preferred_element_type=jnp.float32) + bkv_ref[...]
        k_pieces = [kv[:, :E], bk_ref[...]]
        v_pieces = [kv[:, E:], bv_ref[...]]
        if S_pad > seq_len + 1:
            zpad = jnp.zeros((S_pad - seq_len - 1, E), jnp.float32)
            k_pieces.append(zpad)
            v_pieces.append(zpad)
        k_scr[...] = jnp.concatenate(k_pieces, axis=0).astype(jnp.bfloat16)
        v_scr[...] = jnp.concatenate(v_pieces, axis=0).astype(jnp.bfloat16)

    # --- per q-tile: LN -> Q (scaling folded into weights) -> attention -> out-proj + res ---
    x = x_tile_ref[0].astype(jnp.float32)                                    # (tq, E)
    xn = _ln(x, lnw_ref[...], lnb_ref[...], eps).astype(jnp.bfloat16)
    q = jnp.dot(xn, wq_ref[...], preferred_element_type=jnp.float32) + bq_ref[...]
    qb = q.astype(jnp.bfloat16)

    k_all = k_scr[...]
    v_all = v_scr[...]
    mask = _pad_mask(s_real, S_pad)

    outs = []
    p_sum = None
    for h in range(num_heads):                                               # static unroll
        sl = slice(h * Dh, (h + 1) * Dh)
        s = jax.lax.dot_general(qb[:, sl], k_all[:, sl], (((1,), (1,)), ((), ())),
                                preferred_element_type=jnp.float32) + mask   # (tq, S_pad)
        m = jnp.max(s, axis=-1, keepdims=True)
        e = jnp.exp(s - m)
        p = e / jnp.sum(e, axis=-1, keepdims=True)       # exact: these probs are returned
        outs.append(jnp.dot(p.astype(jnp.bfloat16), v_all[:, sl],
                            preferred_element_type=jnp.float32))
        p_sum = p if p_sum is None else p_sum + p

    o = jnp.concatenate(outs, axis=-1).astype(jnp.bfloat16)                  # (tq, E)
    y = jnp.dot(o, wo_ref[...], preferred_element_type=jnp.float32) + bo_ref[...] + x
    y_ref[0] = y.astype(y_ref.dtype)
    p_ref[0] = (p_sum * (1.0 / num_heads)).astype(p_ref.dtype)               # lane-dense store


def _cross_attn_kernel(x_tile_ref, enc_ref, lnw_ref, lnb_ref,
                       wq_ref, bq_ref, wkv_ref, bkv_ref,
                       bk_ref, bv_ref, wo_ref, bo_ref,
                       cosq_ref, sinq_ref, cosk_ref, sink_ref,
                       y_ref, k_scr, v_scr,
                       *, num_heads, eps, kv_len, s_real):
    i = pl.program_id(1)
    E = x_tile_ref.shape[-1]
    Dh = E // num_heads
    S_pad = k_scr.shape[0]

    # --- once per batch element: K|V projection of encoder feats, bias_kv, rotary on K ---
    @pl.when(i == 0)
    def _():
        enc = enc_ref[0].astype(jnp.bfloat16)                                # (Tk, Ee)
        kv = jnp.dot(enc, wkv_ref[...], preferred_element_type=jnp.float32) + bkv_ref[...]
        k_pieces = [kv[:, :E], bk_ref[...]]
        v_pieces = [kv[:, E:], bv_ref[...]]
        if S_pad > kv_len + 1:
            zpad = jnp.zeros((S_pad - kv_len - 1, E), jnp.float32)
            k_pieces.append(zpad)
            v_pieces.append(zpad)
        k = jnp.concatenate(k_pieces, axis=0)                                # (S_pad, E) f32
        v = jnp.concatenate(v_pieces, axis=0)
        cosk, sink = cosk_ref[...], sink_ref[...]                            # (S_pad, Dh)
        k_rot = []
        for h in range(num_heads):
            kh = k[:, h * Dh:(h + 1) * Dh]
            k_rot.append(kh * cosk + _rotate_half(kh) * sink)
        k_scr[...] = jnp.concatenate(k_rot, axis=-1).astype(jnp.bfloat16)
        v_scr[...] = v.astype(jnp.bfloat16)

    # --- per q-tile: LN -> Q -> rotary -> attention -> out-proj + residual ---
    x = x_tile_ref[0].astype(jnp.float32)                                    # (tq, E)
    xn = _ln(x, lnw_ref[...], lnb_ref[...], eps).astype(jnp.bfloat16)
    q = jnp.dot(xn, wq_ref[...], preferred_element_type=jnp.float32) + bq_ref[...]
    cosq, sinq = cosq_ref[...], sinq_ref[...]                                # (tq, Dh)

    k_all = k_scr[...]
    v_all = v_scr[...]
    mask = _pad_mask(s_real, S_pad)

    outs = []
    for h in range(num_heads):
        sl = slice(h * Dh, (h + 1) * Dh)
        qh = q[:, sl]
        qh = (qh * cosq + _rotate_half(qh) * sinq).astype(jnp.bfloat16)
        s = jax.lax.dot_general(qh, k_all[:, sl], (((1,), (1,)), ((), ())),
                                preferred_element_type=jnp.float32) + mask
        m = jnp.max(s, axis=-1, keepdims=True)
        e = jnp.exp(s - m)
        p = e * pl.reciprocal(jnp.sum(e, axis=-1, keepdims=True), approx=True)  # not returned
        outs.append(jnp.dot(p.astype(jnp.bfloat16), v_all[:, sl],
                            preferred_element_type=jnp.float32))

    o = jnp.concatenate(outs, axis=-1).astype(jnp.bfloat16)
    y = jnp.dot(o, wo_ref[...], preferred_element_type=jnp.float32) + bo_ref[...] + x
    y_ref[0] = y.astype(y_ref.dtype)


def _ffn_kernel(x_ref, lnw_ref, lnb_ref, w1_ref, b1_ref, w2_ref, b2_ref,
                o_ref, xn_scr, acc_scr, *, eps):
    # out = x + fc2(gelu(fc1(LN(x)))) ; F dimension tiled over grid axis 1 (accumulated).
    f = pl.program_id(1)

    @pl.when(f == 0)
    def _():
        x = x_ref[...].astype(jnp.float32)
        xn_scr[...] = _ln(x, lnw_ref[...], lnb_ref[...], eps).astype(jnp.bfloat16)
        acc_scr[...] = jnp.zeros_like(acc_scr)

    h = jnp.dot(xn_scr[...], w1_ref[...], preferred_element_type=jnp.float32) + b1_ref[...]
    h = _gelu_erf(h).astype(jnp.bfloat16)
    acc_scr[...] += jnp.dot(h, w2_ref[...], preferred_element_type=jnp.float32)

    @pl.when(f == pl.num_programs(1) - 1)
    def _():
        o_ref[...] = (x_ref[...].astype(jnp.float32) + acc_scr[...]
                      + b2_ref[...]).astype(o_ref.dtype)


def _ffn_add_kernel(base_ref, x_ref, lnw_ref, lnb_ref, w1_ref, b1_ref, w2_ref, b2_ref,
                    o_ref, xn_scr, acc_scr, *, eps):
    # out = base + x + fc2(gelu(fc1(LN(x))))  (fuses the final `x + adapter_out` combine)
    f = pl.program_id(1)

    @pl.when(f == 0)
    def _():
        x = x_ref[...].astype(jnp.float32)
        xn_scr[...] = _ln(x, lnw_ref[...], lnb_ref[...], eps).astype(jnp.bfloat16)
        acc_scr[...] = jnp.zeros_like(acc_scr)

    h = jnp.dot(xn_scr[...], w1_ref[...], preferred_element_type=jnp.float32) + b1_ref[...]
    h = _gelu_erf(h).astype(jnp.bfloat16)
    acc_scr[...] += jnp.dot(h, w2_ref[...], preferred_element_type=jnp.float32)

    @pl.when(f == pl.num_programs(1) - 1)
    def _():
        o_ref[...] = (base_ref[...].astype(jnp.float32) + x_ref[...].astype(jnp.float32)
                      + acc_scr[...] + b2_ref[...]).astype(o_ref.dtype)


# --------------------------- pallas_call wrappers ---------------------------

def self_attn_block(x, p, *, num_heads, eps, q_tile=128):
    B, T, E = x.shape
    tq = min(q_tile, T)
    assert T % tq == 0
    n_q = T // tq
    S_pad = _round_up(T + 1, 128)
    rep = lambda *_: (0, 0)

    kern = functools.partial(_self_attn_kernel, num_heads=num_heads, eps=eps,
                             seq_len=T, s_real=T + 1)
    return pl.pallas_call(
        kern,
        out_shape=(jax.ShapeDtypeStruct((B, T, E), x.dtype),
                   jax.ShapeDtypeStruct((B, T, S_pad), jnp.float32)),
        grid=(B, n_q),
        in_specs=[
            pl.BlockSpec((1, T, E), lambda b, i: (b, 0, 0)),    # full x (K/V source)
            pl.BlockSpec((1, tq, E), lambda b, i: (b, i, 0)),   # q-tile / residual
            pl.BlockSpec((1, E), rep), pl.BlockSpec((1, E), rep),        # LN w, b
            pl.BlockSpec((E, E), rep), pl.BlockSpec((1, E), rep),        # wq (scaled, bf16), bq
            pl.BlockSpec((E, 2 * E), rep), pl.BlockSpec((1, 2 * E), rep),  # wkv, bkv
            pl.BlockSpec((1, E), rep), pl.BlockSpec((1, E), rep),        # bias_k, bias_v
            pl.BlockSpec((E, E), rep), pl.BlockSpec((1, E), rep),        # wo, bo
        ],
        out_specs=(pl.BlockSpec((1, tq, E), lambda b, i: (b, i, 0)),
                   pl.BlockSpec((1, tq, S_pad), lambda b, i: (b, i, 0))),
        scratch_shapes=[pltpu.VMEM((S_pad, E), jnp.bfloat16),
                        pltpu.VMEM((S_pad, E), jnp.bfloat16)],
        compiler_params=pltpu.CompilerParams(
            dimension_semantics=("parallel", "arbitrary"),
            vmem_limit_bytes=_VMEM_LIMIT),
    )(x, x, p["lnw"], p["lnb"], p["wq"], p["bq"], p["wkv"], p["bkv"],
      p["bk"], p["bv"], p["wo"], p["bo"])


def cross_attn_block(x, enc, p, *, num_heads, eps, q_tile=128):
    B, T, E = x.shape
    Tk, Ee = enc.shape[1], enc.shape[2]
    Dh = E // num_heads
    tq = min(q_tile, T)
    assert T % tq == 0
    n_q = T // tq
    S_pad = p["cosk"].shape[0]
    rep = lambda *_: (0, 0)

    kern = functools.partial(_cross_attn_kernel, num_heads=num_heads, eps=eps,
                             kv_len=Tk, s_real=Tk + 1)
    return pl.pallas_call(
        kern,
        out_shape=jax.ShapeDtypeStruct((B, T, E), x.dtype),
        grid=(B, n_q),
        in_specs=[
            pl.BlockSpec((1, tq, E), lambda b, i: (b, i, 0)),   # x q-tile / residual
            pl.BlockSpec((1, Tk, Ee), lambda b, i: (b, 0, 0)),  # encoder feats
            pl.BlockSpec((1, E), rep), pl.BlockSpec((1, E), rep),        # LN w, b
            pl.BlockSpec((E, E), rep), pl.BlockSpec((1, E), rep),        # wq (scaled), bq
            pl.BlockSpec((Ee, 2 * E), rep), pl.BlockSpec((1, 2 * E), rep),  # wkv, bkv
            pl.BlockSpec((1, E), rep), pl.BlockSpec((1, E), rep),        # bias_k, bias_v
            pl.BlockSpec((E, E), rep), pl.BlockSpec((1, E), rep),        # wo, bo
            pl.BlockSpec((tq, Dh), lambda b, i: (i, 0)),                 # cos_q
            pl.BlockSpec((tq, Dh), lambda b, i: (i, 0)),                 # sin_q
            pl.BlockSpec((S_pad, Dh), rep),                              # cos_k
            pl.BlockSpec((S_pad, Dh), rep),                              # sin_k
        ],
        out_specs=pl.BlockSpec((1, tq, E), lambda b, i: (b, i, 0)),
        scratch_shapes=[pltpu.VMEM((S_pad, E), jnp.bfloat16),
                        pltpu.VMEM((S_pad, E), jnp.bfloat16)],
        compiler_params=pltpu.CompilerParams(
            dimension_semantics=("parallel", "arbitrary"),
            vmem_limit_bytes=_VMEM_LIMIT),
    )(x, enc, p["lnw"], p["lnb"], p["wq"], p["bq"], p["wkv"], p["bkv"],
      p["bk"], p["bv"], p["wo"], p["bo"],
      p["cosq"], p["sinq"], p["cosk"], p["sink"])


def ln_ffn_residual(x2d, p, *, eps, base2d=None, tm=128, tf=128):
    M, E = x2d.shape
    F_ = p["w1"].shape[1]
    tm = min(tm, M)
    tf = min(tf, F_)
    assert M % tm == 0 and F_ % tf == 0
    n_m, n_f = M // tm, F_ // tf
    rep = lambda *_: (0, 0)

    x_spec = pl.BlockSpec((tm, E), lambda m, f: (m, 0))
    w_specs = [
        pl.BlockSpec((1, E), rep), pl.BlockSpec((1, E), rep),            # LN w, b
        pl.BlockSpec((E, tf), lambda m, f: (0, f)),                      # w1 tile
        pl.BlockSpec((1, tf), lambda m, f: (0, f)),                      # b1 tile
        pl.BlockSpec((tf, E), lambda m, f: (f, 0)),                      # w2 tile
        pl.BlockSpec((1, E), rep),                                       # b2
    ]
    args = [x2d, p["lnw"], p["lnb"], p["w1"], p["b1"], p["w2"], p["b2"]]
    if base2d is None:
        kern = functools.partial(_ffn_kernel, eps=eps)
        in_specs = [x_spec] + w_specs
    else:
        kern = functools.partial(_ffn_add_kernel, eps=eps)
        in_specs = [x_spec, x_spec] + w_specs
        args = [base2d] + args
    return pl.pallas_call(
        kern,
        out_shape=jax.ShapeDtypeStruct((M, E), x2d.dtype),
        grid=(n_m, n_f),
        in_specs=in_specs,
        out_specs=pl.BlockSpec((tm, E), lambda m, f: (m, 0)),
        scratch_shapes=[pltpu.VMEM((tm, E), jnp.bfloat16),
                        pltpu.VMEM((tm, E), jnp.float32)],
        compiler_params=pltpu.CompilerParams(
            dimension_semantics=("parallel", "arbitrary"),
            vmem_limit_bytes=_VMEM_LIMIT),
    )(*args)


# ----------------------------- parameter preparation -----------------------------

def rotary_tables(length, dim):
    """ESM RotaryEmbedding cos/sin tables, [x1,x2]-halves convention."""
    inv_freq = 1.0 / (10000.0 ** (jnp.arange(0, dim, 2, dtype=jnp.float32) / dim))
    t = jnp.arange(length, dtype=jnp.float32)
    freqs = jnp.einsum("i,j->ij", t, inv_freq)
    emb = jnp.concatenate([freqs, freqs], axis=-1)
    return jnp.cos(emb), jnp.sin(emb)


def prepare_params(params, *, num_heads, max_q_len, max_kv_len):
    """Hoisted, one-time weight fusion: Q-scaling folded in, K|V fused, bf16 weights,
    2D biases, rotary tables precomputed."""
    E = params["self_attn"]["wq"].shape[0]
    Dh = E // num_heads
    scaling = Dh ** -0.5
    bf = jnp.bfloat16
    v2 = lambda v: jnp.asarray(v, jnp.float32).reshape(1, -1)

    def attn_prep(a, ln):
        return dict(
            wq=(a["wq"] * scaling).astype(bf), bq=v2(a["bq"] * scaling),
            wkv=jnp.concatenate([a["wk"], a["wv"]], axis=1).astype(bf),
            bkv=v2(jnp.concatenate([a["bk"], a["bv"]])),
            bk=v2(a["bias_k"]), bv=v2(a["bias_v"]),
            wo=a["wo"].astype(bf), bo=v2(a["bo"]),
            lnw=v2(ln[0]), lnb=v2(ln[1]))

    def ffn_prep(ln, fc1, fc2):
        return dict(lnw=v2(ln[0]), lnb=v2(ln[1]),
                    w1=fc1[0].astype(bf), b1=v2(fc1[1]),
                    w2=fc2[0].astype(bf), b2=v2(fc2[1]))

    sa = attn_prep(params["self_attn"], params["self_attn_ln"])
    ca = attn_prep(params["adapter_attn"], params["adapter_attn_ln"])

    S_pad = _round_up(max_kv_len + 1, 128)
    cos, sin = rotary_tables(max(max_q_len, S_pad), Dh)
    ca.update(cosq=cos[:max_q_len], sinq=sin[:max_q_len],
              cosk=cos[:S_pad], sink=sin[:S_pad])

    return dict(
        sa=sa, ca=ca,
        ffn=ffn_prep(params["final_ln"], params["fc1"], params["fc2"]),
        adapter_ffn=ffn_prep(params["adapter_ffn_ln"], params["adapter_ffn_fc1"],
                             params["adapter_ffn_fc2"]))


# ----------------------------- model forward -----------------------------

def transformer_layer_with_structural_adapter(x_tbe, encoder_feats_bte, prep, *, num_heads):
    # TODO(synk): fold these layout transposes into the first/last kernels' BlockSpecs.
    x = jnp.transpose(x_tbe, (1, 0, 2))                     # (B, T, E) batch-major
    B, T, E = x.shape

    # --- self-attention block (ESM1LayerNorm eps=1e-12); returns head-averaged probs ---
    x, attn_pad = self_attn_block(x, prep["sa"], num_heads=num_heads, eps=1e-12)
    attn = attn_pad[:, :, :T + 1]                           # drop lane padding (+1 = bias_kv key)

    # --- main feed-forward block ---
    x2d = ln_ffn_residual(x.reshape(B * T, E), prep["ffn"], eps=1e-12)
    x = x2d.reshape(B, T, E)

    # --- structural adapter: rotary cross-attention (ESM1bLayerNorm eps=1e-5) ---
    a = cross_attn_block(x, encoder_feats_bte, prep["ca"], num_heads=num_heads, eps=1e-5)

    # --- adapter FFN fused with the final combine: out = x + (a + FFN(LN(a))) ---
    out2d = ln_ffn_residual(a.reshape(B * T, E), prep["adapter_ffn"], eps=1e-5,
                            base2d=x.reshape(B * T, E))
    out = out2d.reshape(B, T, E)

    return jnp.transpose(out, (1, 0, 2)), attn


# ------------------------------- parameters ---------------------------------

def init_params(key, E, F, H, Ee):
    keys = iter(jax.random.split(key, 64))

    def lin(din, dout):
        return (0.05 * jax.random.normal(next(keys), (din, dout), jnp.float32),
                0.05 * jax.random.normal(next(keys), (dout,), jnp.float32))

    def ln(d):
        return (1.0 + 0.05 * jax.random.normal(next(keys), (d,), jnp.float32),
                0.05 * jax.random.normal(next(keys), (d,), jnp.float32))

    def mha(kdim):
        wq, bq = lin(E, E)
        wk, bk = lin(kdim, E)
        wv, bv = lin(kdim, E)
        wo, bo = lin(E, E)
        return dict(wq=wq, bq=bq, wk=wk, bk=bk, wv=wv, bv=bv, wo=wo, bo=bo,
                    bias_k=0.05 * jax.random.normal(next(keys), (E,), jnp.float32),
                    bias_v=0.05 * jax.random.normal(next(keys), (E,), jnp.float32))

    return dict(
        self_attn=mha(E),
        self_attn_ln=ln(E),
        fc1=lin(E, F),
        fc2=lin(F, E),
        final_ln=ln(E),
        adapter_attn=mha(Ee),
        adapter_attn_ln=ln(E),
        adapter_ffn_fc1=lin(E, E // 2),
        adapter_ffn_fc2=lin(E // 2, E),
        adapter_ffn_ln=ln(E),
    )


# ----------------------------------- main ------------------------------------

if __name__ == "__main__":
    E, F, H, Ee = 128, 256, 4, 64        # embed_dim, ffn_embed_dim, heads, encoder_embed_dim
    T, B, Tenc = 16, 2, 8                # seq len, batch, encoder seq len

    key = jax.random.PRNGKey(0)
    kp, kx, ke = jax.random.split(key, 3)
    params = init_params(kp, E, F, H, Ee)
    prep = prepare_params(params, num_heads=H, max_q_len=T, max_kv_len=Tenc)

    x = jax.random.normal(kx, (T, B, E), jnp.float32)              # ESM layout (T, B, E)
    enc_feats = jax.random.normal(ke, (B, Tenc, Ee), jnp.float32)  # encoder_out['feats']

    fwd = jax.jit(functools.partial(transformer_layer_with_structural_adapter, num_heads=H))
    out, attn = fwd(x, enc_feats, prep)
    jax.block_until_ready((out, attn))

    assert out.shape == (T, B, E), out.shape
    assert attn.shape == (B, T, T + 1), attn.shape                 # +1 key from add_bias_kv
    assert bool(jnp.all(jnp.isfinite(out)))
    assert bool(jnp.allclose(attn.sum(-1), 1.0, atol=1e-3))        # exact-softmax probs
    print("KERNEL_OK")
</pallas_src>

<mosaic_0001>
module attributes {stable_mosaic.version = 11 : i64} {
  func.func @_ffn_kernel(%arg0: i32, %arg1: i32, %arg2: memref<32x128xf32, #tpu.memory_space<vmem>>, %arg3: memref<1x128xf32, #tpu.memory_space<vmem>>, %arg4: memref<1x128xf32, #tpu.memory_space<vmem>>, %arg5: memref<128x128xbf16, #tpu.memory_space<vmem>>, %arg6: memref<1x128xf32, #tpu.memory_space<vmem>>, %arg7: memref<128x128xbf16, #tpu.memory_space<vmem>>, %arg8: memref<1x128xf32, #tpu.memory_space<vmem>>, %arg9: memref<32x128xf32, #tpu.memory_space<vmem>>, %arg10: memref<32x128xbf16, #tpu.memory_space<vmem>>, %arg11: memref<32x128xf32, #tpu.memory_space<vmem>>) attributes {dimension_semantics = [#tpu.dimension_semantics<parallel>, #tpu.dimension_semantics<arbitrary>], iteration_bounds = array<i64: 1, 2>, scalar_prefetch = 0 : i64, scratch_operands = 2 : i64, tpu.core_type = #tpu.core_type<tc>, window_params = [{transform_indices = @transform_0, window_bounds = array<i64: 32, 128>}, {pipeline_mode = #tpu.pipeline_mode<synchronous>, transform_indices = @transform_1, window_bounds = array<i64: 1, 128>}, {pipeline_mode = #tpu.pipeline_mode<synchronous>, transform_indices = @transform_2, window_bounds = array<i64: 1, 128>}, {transform_indices = @transform_3, window_bounds = array<i64: 128, 128>}, {transform_indices = @transform_4, window_bounds = array<i64: 1, 128>}, {transform_indices = @transform_5, window_bounds = array<i64: 128, 128>}, {pipeline_mode = #tpu.pipeline_mode<synchronous>, transform_indices = @transform_6, window_bounds = array<i64: 1, 128>}, {transform_indices = @transform_7, window_bounds = array<i64: 32, 128>}]} {
    %c0_i32 = arith.constant 0 : i32
    %0 = arith.cmpi eq, %arg1, %c0_i32 : i32
    %1 = arith.extui %0 : i1 to i32
    %c0_i32_0 = arith.constant 0 : i32
    %2 = arith.cmpi ne, %1, %c0_i32_0 : i32
    scf.if %2 {
      %c0_17 = arith.constant 0 : index
      %c0_18 = arith.constant 0 : index
      %26 = vector.load %arg2[%c0_17, %c0_18] : memref<32x128xf32, #tpu.memory_space<vmem>>, vector<32x128xf32>
      %c0_19 = arith.constant 0 : index
      %c0_20 = arith.constant 0 : index
      %27 = vector.load %arg3[%c0_19, %c0_20] : memref<1x128xf32, #tpu.memory_space<vmem>>, vector<1x128xf32>
      %c0_21 = arith.constant 0 : index
      %c0_22 = arith.constant 0 : index
      %28 = vector.load %arg4[%c0_21, %c0_22] : memref<1x128xf32, #tpu.memory_space<vmem>>, vector<1x128xf32>
      %cst_23 = arith.constant dense<0.000000e+00> : vector<32xf32>
      %29 = vector.multi_reduction <add>, %26, %cst_23 [1] : vector<32x128xf32> to vector<32xf32>
      %30 = vector.shape_cast %29 : vector<32xf32> to vector<32x1xf32>
      %cst_24 = arith.constant 1.280000e+02 : f32
      %31 = vector.broadcast %cst_24 : f32 to vector<32x1xf32>
      %32 = arith.divf %30, %31 : vector<32x1xf32>
      %33 = vector.broadcast %32 : vector<32x1xf32> to vector<32x128xf32>
      %34 = arith.subf %26, %33 : vector<32x128xf32>
      %35 = arith.mulf %34, %34 : vector<32x128xf32>
      %cst_25 = arith.constant dense<0.000000e+00> : vector<32xf32>
      %36 = vector.multi_reduction <add>, %35, %cst_25 [1] : vector<32x128xf32> to vector<32xf32>
      %37 = vector.shape_cast %36 : vector<32xf32> to vector<32x1xf32>
      %cst_26 = arith.constant 1.280000e+02 : f32
      %38 = vector.broadcast %cst_26 : f32 to vector<32x1xf32>
      %39 = arith.divf %37, %38 : vector<32x1xf32>
      %cst_27 = arith.constant 9.99999996E-13 : f32
      %40 = vector.broadcast %cst_27 : f32 to vector<32x1xf32>
      %41 = arith.addf %39, %40 : vector<32x1xf32>
      %42 = math.rsqrt %41 : vector<32x1xf32>
      %43 = vector.broadcast %42 : vector<32x1xf32> to vector<32x128xf32>
      %44 = arith.mulf %34, %43 : vector<32x128xf32>
      %45 = vector.broadcast %27 : vector<1x128xf32> to vector<32x128xf32>
      %46 = arith.mulf %44, %45 : vector<32x128xf32>
      %47 = vector.broadcast %28 : vector<1x128xf32> to vector<32x128xf32>
      %48 = arith.addf %46, %47 : vector<32x128xf32>
      %49 = arith.truncf %48 : vector<32x128xf32> to vector<32x128xbf16>
      %c0_28 = arith.constant 0 : index
      %c0_29 = arith.constant 0 : index
      %50 = vector.load %arg10[%c0_28, %c0_29] : memref<32x128xbf16, #tpu.memory_space<vmem>>, vector<32x128xbf16>
      tpu.vector_store %arg10[%c0_28, %c0_29], %49 {strides = array<i32>} : memref<32x128xbf16, #tpu.memory_space<vmem>>, vector<32x128xbf16>,
      %cst_30 = arith.constant 0.000000e+00 : f32
      %51 = vector.broadcast %cst_30 : f32 to vector<32x128xf32>
      %c0_31 = arith.constant 0 : index
      %c0_32 = arith.constant 0 : index
      %52 = vector.load %arg11[%c0_31, %c0_32] : memref<32x128xf32, #tpu.memory_space<vmem>>, vector<32x128xf32>
      tpu.vector_store %arg11[%c0_31, %c0_32], %51 {strides = array<i32>} : memref<32x128xf32, #tpu.memory_space<vmem>>, vector<32x128xf32>,
    } else {
    }
    %c0 = arith.constant 0 : index
    %c0_1 = arith.constant 0 : index
    %3 = vector.load %arg10[%c0, %c0_1] : memref<32x128xbf16, #tpu.memory_space<vmem>>, vector<32x128xbf16>
    %c0_2 = arith.constant 0 : index
    %c0_3 = arith.constant 0 : index
    %4 = vector.load %arg5[%c0_2, %c0_3] : memref<128x128xbf16, #tpu.memory_space<vmem>>, vector<128x128xbf16>
    %cst = arith.constant dense<0.000000e+00> : vector<32x128xf32>
    %5 = tpu.matmul %3, %4, %cst {dimension_numbers = #tpu.dot_dimension_numbers<[1], [0], [0], [1], [0, 0, 1, 1], [], []>} : vector<32x128xbf16>, vector<128x128xbf16>, vector<32x128xf32> -> vector<32x128xf32>
    %c0_4 = arith.constant 0 : index
    %c0_5 = arith.constant 0 : index
    %6 = vector.load %arg6[%c0_4, %c0_5] : memref<1x128xf32, #tpu.memory_space<vmem>>, vector<1x128xf32>
    %7 = vector.broadcast %6 : vector<1x128xf32> to vector<32x128xf32>
    %8 = arith.addf %5, %7 : vector<32x128xf32>
    %cst_6 = arith.constant 5.000000e-01 : f32
    %9 = vector.broadcast %cst_6 : f32 to vector<32x128xf32>
    %10 = arith.mulf %9, %8 : vector<32x128xf32>
    %cst_7 = arith.constant 0.707106769 : f32
    %11 = vector.broadcast %cst_7 : f32 to vector<32x128xf32>
    %12 = arith.mulf %8, %11 : vector<32x128xf32>
    %13 = math.erf %12 : vector<32x128xf32>
    %cst_8 = arith.constant 1.000000e+00 : f32
    %14 = vector.broadcast %cst_8 : f32 to vector<32x128xf32>
    %15 = arith.addf %14, %13 : vector<32x128xf32>
    %16 = arith.mulf %10, %15 : vector<32x128xf32>
    %17 = arith.truncf %16 : vector<32x128xf32> to vector<32x128xbf16>
    %c0_9 = arith.constant 0 : index
    %c0_10 = arith.constant 0 : index
    %18 = vector.load %arg11[%c0_9, %c0_10] : memref<32x128xf32, #tpu.memory_space<vmem>>, vector<32x128xf32>
    %c0_11 = arith.constant 0 : index
    %c0_12 = arith.constant 0 : index
    %19 = vector.load %arg7[%c0_11, %c0_12] : memref<128x128xbf16, #tpu.memory_space<vmem>>, vector<128x128xbf16>
    %cst_13 = arith.constant dense<0.000000e+00> : vector<32x128xf32>
    %20 = tpu.matmul %17, %19, %cst_13 {dimension_numbers = #tpu.dot_dimension_numbers<[1], [0], [0], [1], [0, 0, 1, 1], [], []>} : vector<32x128xbf16>, vector<128x128xbf16>, vector<32x128xf32> -> vector<32x128xf32>
    %21 = arith.addf %18, %20 : vector<32x128xf32>
    %c0_14 = arith.constant 0 : index
    %c0_15 = arith.constant 0 : index
    %22 = vector.load %arg11[%c0_14, %c0_15] : memref<32x128xf32, #tpu.memory_space<vmem>>, vector<32x128xf32>
    tpu.vector_store %arg11[%c0_14, %c0_15], %21 {strides = array<i32>} : memref<32x128xf32, #tpu.memory_space<vmem>>, vector<32x128xf32>,
    %c1_i32 = arith.constant 1 : i32
    %23 = arith.cmpi eq, %arg1, %c1_i32 : i32
    %24 = arith.extui %23 : i1 to i32
    %c0_i32_16 = arith.constant 0 : i32
    %25 = arith.cmpi ne, %24, %c0_i32_16 : i32
    scf.if %25 {
      %c0_17 = arith.constant 0 : index
      %c0_18 = arith.constant 0 : index
      %26 = vector.load %arg2[%c0_17, %c0_18] : memref<32x128xf32, #tpu.memory_space<vmem>>, vector<32x128xf32>
      %c0_19 = arith.constant 0 : index
      %c0_20 = arith.constant 0 : index
      %27 = vector.load %arg11[%c0_19, %c0_20] : memref<32x128xf32, #tpu.memory_space<vmem>>, vector<32x128xf32>
      %28 = arith.addf %26, %27 : vector<32x128xf32>
      %c0_21 = arith.constant 0 : index
      %c0_22 = arith.constant 0 : index
      %29 = vector.load %arg8[%c0_21, %c0_22] : memref<1x128xf32, #tpu.memory_space<vmem>>, vector<1x128xf32>
      %30 = vector.broadcast %29 : vector<1x128xf32> to vector<32x128xf32>
      %31 = arith.addf %28, %30 : vector<32x128xf32>
      %c0_23 = arith.constant 0 : index
      %c0_24 = arith.constant 0 : index
      %32 = vector.load %arg9[%c0_23, %c0_24] : memref<32x128xf32, #tpu.memory_space<vmem>>, vector<32x128xf32>
      tpu.vector_store %arg9[%c0_23, %c0_24], %31 {strides = array<i32>} : memref<32x128xf32, #tpu.memory_space<vmem>>, vector<32x128xf32>,
    } else {
    }
    return
  }
  func.func @transform_0(%arg0: i32, %arg1: i32) -> (i32, i32) {
    %c0_i32 = arith.constant 0 : i32
    %c0_i32_0 = arith.constant 0 : i32
    return %arg0, %c0_i32 : i32, i32
  }
  func.func @transform_1(%arg0: i32, %arg1: i32) -> (i32, i32) {
    %c0_i32 = arith.constant 0 : i32
    %c0_i32_0 = arith.constant 0 : i32
    %c0_i32_1 = arith.constant 0 : i32
    return %c0_i32, %c0_i32_0 : i32, i32
  }
  func.func @transform_2(%arg0: i32, %arg1: i32) -> (i32, i32) {
    %c0_i32 = arith.constant 0 : i32
    %c0_i32_0 = arith.constant 0 : i32
    %c0_i32_1 = arith.constant 0 : i32
    return %c0_i32, %c0_i32_0 : i32, i32
  }
  func.func @transform_3(%arg0: i32, %arg1: i32) -> (i32, i32) {
    %c0_i32 = arith.constant 0 : i32
    %c0_i32_0 = arith.constant 0 : i32
    return %c0_i32, %arg1 : i32, i32
  }
  func.func @transform_4(%arg0: i32, %arg1: i32) -> (i32, i32) {
    %c0_i32 = arith.constant 0 : i32
    %c0_i32_0 = arith.constant 0 : i32
    return %c0_i32, %arg1 : i32, i32
  }
  func.func @transform_5(%arg0: i32, %arg1: i32) -> (i32, i32) {
    %c0_i32 = arith.constant 0 : i32
    %c0_i32_0 = arith.constant 0 : i32
    return %arg1, %c0_i32 : i32, i32
  }
  func.func @transform_6(%arg0: i32, %arg1: i32) -> (i32, i32) {
    %c0_i32 = arith.constant 0 : i32
    %c0_i32_0 = arith.constant 0 : i32
    %c0_i32_1 = arith.constant 0 : i32
    return %c0_i32, %c0_i32_0 : i32, i32
  }
  func.func @transform_7(%arg0: i32, %arg1: i32) -> (i32, i32) {
    %c0_i32 = arith.constant 0 : i32
    %c0_i32_0 = arith.constant 0 : i32
    return %arg0, %c0_i32 : i32, i32
  }
}

module attributes {stable_mosaic.version = 11 : i64} {
  func.func @_self_attn_kernel(%arg0: i32, %arg1: i32, %arg2: memref<1x16x128xf32, #tpu.memory_space<vmem>>, %arg3: memref<1x16x128xf32, #tpu.memory_space<vmem>>, %arg4: memref<1x128xf32, #tpu.memory_space<vmem>>, %arg5: memref<1x128xf32, #tpu.memory_space<vmem>>, %arg6: memref<128x128xbf16, #tpu.memory_space<vmem>>, %arg7: memref<1x128xf32, #tpu.memory_space<vmem>>, %arg8: memref<128x256xbf16, #tpu.memory_space<vmem>>, %arg9: memref<1x256xf32, #tpu.memory_space<vmem>>, %arg10: memref<1x128xf32, #tpu.memory_space<vmem>>, %arg11: memref<1x128xf32, #tpu.memory_space<vmem>>, %arg12: memref<128x128xbf16, #tpu.memory_space<vmem>>, %arg13: memref<1x128xf32, #tpu.memory_space<vmem>>, %arg14: memref<1x16x128xf32, #tpu.memory_space<vmem>>, %arg15: memref<1x16x128xf32, #tpu.memory_space<vmem>>, %arg16: memref<128x128xbf16, #tpu.memory_space<vmem>>, %arg17: memref<128x128xbf16, #tpu.memory_space<vmem>>) attributes {dimension_semantics = [#tpu.dimension_semantics<parallel>, #tpu.dimension_semantics<arbitrary>], iteration_bounds = array<i64: 2, 1>, scalar_prefetch = 0 : i64, scratch_operands = 2 : i64, tpu.core_type = #tpu.core_type<tc>, window_params = [{transform_indices = @transform_0, window_bounds = array<i64: 1, 16, 128>}, {transform_indices = @transform_1, window_bounds = array<i64: 1, 16, 128>}, {pipeline_mode = #tpu.pipeline_mode<synchronous>, transform_indices = @transform_2, window_bounds = array<i64: 1, 128>}, {pipeline_mode = #tpu.pipeline_mode<synchronous>, transform_indices = @transform_3, window_bounds = array<i64: 1, 128>}, {pipeline_mode = #tpu.pipeline_mode<synchronous>, transform_indices = @transform_4, window_bounds = array<i64: 128, 128>}, {pipeline_mode = #tpu.pipeline_mode<synchronous>, transform_indices = @transform_5, window_bounds = array<i64: 1, 128>}, {pipeline_mode = #tpu.pipeline_mode<synchronous>, transform_indices = @transform_6, window_bounds = array<i64: 128, 256>}, {pipeline_mode = #tpu.pipeline_mode<synchronous>, transform_indices = @transform_7, window_bounds = array<i64: 1, 256>}, {pipeline_mode = #tpu.pipeline_mode<synchronous>, transform_indices = @transform_8, window_bounds = array<i64: 1, 128>}, {pipeline_mode = #tpu.pipeline_mode<synchronous>, transform_indices = @transform_9, window_bounds = array<i64: 1, 128>}, {pipeline_mode = #tpu.pipeline_mode<synchronous>, transform_indices = @transform_10, window_bounds = array<i64: 128, 128>}, {pipeline_mode = #tpu.pipeline_mode<synchronous>, transform_indices = @transform_11, window_bounds = array<i64: 1, 128>}, {transform_indices = @transform_12, window_bounds = array<i64: 1, 16, 128>}, {transform_indices = @transform_13, window_bounds = array<i64: 1, 16, 128>}]} {
    %c0_i32 = arith.constant 0 : i32
    %0 = arith.cmpi eq, %arg1, %c0_i32 : i32
    %1 = arith.extui %0 : i1 to i32
    %c0_i32_0 = arith.constant 0 : i32
    %2 = arith.cmpi ne, %1, %c0_i32_0 : i32
    scf.if %2 {
      %c0_50 = arith.constant 0 : index
      %c0_51 = arith.constant 0 : index
      %c0_52 = arith.constant 0 : index
      %129 = vector.load %arg2[%c0_50, %c0_51, %c0_52] : memref<1x16x128xf32, #tpu.memory_space<vmem>>, vector<1x16x128xf32>
      %130 = vector.shape_cast %129 : vector<1x16x128xf32> to vector<16x128xf32>
      %c0_53 = arith.constant 0 : index
      %c0_54 = arith.constant 0 : index
      %131 = vector.load %arg4[%c0_53, %c0_54] : memref<1x128xf32, #tpu.memory_space<vmem>>, vector<1x128xf32>
      %c0_55 = arith.constant 0 : index
      %c0_56 = arith.constant 0 : index
      %132 = vector.load %arg5[%c0_55, %c0_56] : memref<1x128xf32, #tpu.memory_space<vmem>>, vector<1x128xf32>
      %cst_57 = arith.constant dense<0.000000e+00> : vector<16xf32>
      %133 = vector.multi_reduction <add>, %130, %cst_57 [1] : vector<16x128xf32> to vector<16xf32>
      %134 = vector.shape_cast %133 : vector<16xf32> to vector<16x1xf32>
      %cst_58 = arith.constant 1.280000e+02 : f32
      %135 = vector.broadcast %cst_58 : f32 to vector<16x1xf32>
      %136 = arith.divf %134, %135 : vector<16x1xf32>
      %137 = vector.broadcast %136 : vector<16x1xf32> to vector<16x128xf32>
      %138 = arith.subf %130, %137 : vector<16x128xf32>
      %139 = arith.mulf %138, %138 : vector<16x128xf32>
      %cst_59 = arith.constant dense<0.000000e+00> : vector<16xf32>
      %140 = vector.multi_reduction <add>, %139, %cst_59 [1] : vector<16x128xf32> to vector<16xf32>
      %141 = vector.shape_cast %140 : vector<16xf32> to vector<16x1xf32>
      %cst_60 = arith.constant 1.280000e+02 : f32
      %142 = vector.broadcast %cst_60 : f32 to vector<16x1xf32>
      %143 = arith.divf %141, %142 : vector<16x1xf32>
      %cst_61 = arith.constant 9.99999996E-13 : f32
      %144 = vector.broadcast %cst_61 : f32 to vector<16x1xf32>
      %145 = arith.addf %143, %144 : vector<16x1xf32>
      %146 = math.rsqrt %145 : vector<16x1xf32>
      %147 = vector.broadcast %146 : vector<16x1xf32> to vector<16x128xf32>
      %148 = arith.mulf %138, %147 : vector<16x128xf32>
      %149 = vector.broadcast %131 : vector<1x128xf32> to vector<16x128xf32>
      %150 = arith.mulf %148, %149 : vector<16x128xf32>
      %151 = vector.broadcast %132 : vector<1x128xf32> to vector<16x128xf32>
      %152 = arith.addf %150, %151 : vector<16x128xf32>
      %153 = arith.truncf %152 : vector<16x128xf32> to vector<16x128xbf16>
      %c0_62 = arith.constant 0 : index
      %c0_63 = arith.constant 0 : index
      %154 = vector.load %arg8[%c0_62, %c0_63] : memref<128x256xbf16, #tpu.memory_space<vmem>>, vector<128x256xbf16>
      %cst_64 = arith.constant dense<0.000000e+00> : vector<16x256xf32>
      %155 = tpu.matmul %153, %154, %cst_64 {dimension_numbers = #tpu.dot_dimension_numbers<[1], [0], [0], [1], [0, 0, 1, 1], [], []>} : vector<16x128xbf16>, vector<128x256xbf16>, vector<16x256xf32> -> vector<16x256xf32>
      %c0_65 = arith.constant 0 : index
      %c0_66 = arith.constant 0 : index
      %156 = vector.load %arg9[%c0_65, %c0_66] : memref<1x256xf32, #tpu.memory_space<vmem>>, vector<1x256xf32>
      %157 = vector.broadcast %156 : vector<1x256xf32> to vector<16x256xf32>
      %158 = arith.addf %155, %157 : vector<16x256xf32>
      %159 = vector.extract_strided_slice %158 {offsets = [0, 0], sizes = [16, 128], strides = [1, 1]} : vector<16x256xf32> to vector<16x128xf32>
      %c0_67 = arith.constant 0 : index
      %c0_68 = arith.constant 0 : index
      %160 = vector.load %arg10[%c0_67, %c0_68] : memref<1x128xf32, #tpu.memory_space<vmem>>, vector<1x128xf32>
      %161 = vector.extract_strided_slice %158 {offsets = [0, 128], sizes = [16, 128], strides = [1, 1]} : vector<16x256xf32> to vector<16x128xf32>
      %c0_69 = arith.constant 0 : index
      %c0_70 = arith.constant 0 : index
      %162 = vector.load %arg11[%c0_69, %c0_70] : memref<1x128xf32, #tpu.memory_space<vmem>>, vector<1x128xf32>
      %cst_71 = arith.constant 0.000000e+00 : f32
      %163 = vector.broadcast %cst_71 : f32 to vector<111x128xf32>
      %164 = tpu.concatenate %159, %160, %163 in 0 : vector<16x128xf32>, vector<1x128xf32>, vector<111x128xf32> -> vector<128x128xf32>
      %165 = arith.truncf %164 : vector<128x128xf32> to vector<128x128xbf16>
      %c0_72 = arith.constant 0 : index
      %c0_73 = arith.constant 0 : index
      %166 = vector.load %arg16[%c0_72, %c0_73] : memref<128x128xbf16, #tpu.memory_space<vmem>>, vector<128x128xbf16>
      tpu.vector_store %arg16[%c0_72, %c0_73], %165 {strides = array<i32>} : memref<128x128xbf16, #tpu.memory_space<vmem>>, vector<128x128xbf16>,
      %167 = tpu.concatenate %161, %162, %163 in 0 : vector<16x128xf32>, vector<1x128xf32>, vector<111x128xf32> -> vector<128x128xf32>
      %168 = arith.truncf %167 : vector<128x128xf32> to vector<128x128xbf16>
      %c0_74 = arith.constant 0 : index
      %c0_75 = arith.constant 0 : index
      %169 = vector.load %arg17[%c0_74, %c0_75] : memref<128x128xbf16, #tpu.memory_space<vmem>>, vector<128x128xbf16>
      tpu.vector_store %arg17[%c0_74, %c0_75], %168 {strides = array<i32>} : memref<128x128xbf16, #tpu.memory_space<vmem>>, vector<128x128xbf16>,
    } else {
    }
    %c0 = arith.constant 0 : index
    %c0_1 = arith.constant 0 : index
    %c0_2 = arith.constant 0 : index
    %3 = vector.load %arg3[%c0, %c0_1, %c0_2] : memref<1x16x128xf32, #tpu.memory_space<vmem>>, vector<1x16x128xf32>
    %4 = vector.shape_cast %3 : vector<1x16x128xf32> to vector<16x128xf32>
    %c0_3 = arith.constant 0 : index
    %c0_4 = arith.constant 0 : index
    %5 = vector.load %arg4[%c0_3, %c0_4] : memref<1x128xf32, #tpu.memory_space<vmem>>, vector<1x128xf32>
    %c0_5 = arith.constant 0 : index
    %c0_6 = arith.constant 0 : index
    %6 = vector.load %arg5[%c0_5, %c0_6] : memref<1x128xf32, #tpu.memory_space<vmem>>, vector<1x128xf32>
    %cst = arith.constant dense<0.000000e+00> : vector<16xf32>
    %7 = vector.multi_reduction <add>, %4, %cst [1] : vector<16x128xf32> to vector<16xf32>
    %8 = vector.shape_cast %7 : vector<16xf32> to vector<16x1xf32>
    %cst_7 = arith.constant 1.280000e+02 : f32
    %9 = vector.broadcast %cst_7 : f32 to vector<16x1xf32>
    %10 = arith.divf %8, %9 : vector<16x1xf32>
    %11 = vector.broadcast %10 : vector<16x1xf32> to vector<16x128xf32>
    %12 = arith.subf %4, %11 : vector<16x128xf32>
    %13 = arith.mulf %12, %12 : vector<16x128xf32>
    %cst_8 = arith.constant dense<0.000000e+00> : vector<16xf32>
    %14 = vector.multi_reduction <add>, %13, %cst_8 [1] : vector<16x128xf32> to vector<16xf32>
    %15 = vector.shape_cast %14 : vector<16xf32> to vector<16x1xf32>
    %cst_9 = arith.constant 1.280000e+02 : f32
    %16 = vector.broadcast %cst_9 : f32 to vector<16x1xf32>
    %17 = arith.divf %15, %16 : vector<16x1xf32>
    %cst_10 = arith.constant 9.99999996E-13 : f32
    %18 = vector.broadcast %cst_10 : f32 to vector<16x1xf32>
    %19 = arith.addf %17, %18 : vector<16x1xf32>
    %20 = math.rsqrt %19 : vector<16x1xf32>
    %21 = vector.broadcast %20 : vector<16x1xf32> to vector<16x128xf32>
    %22 = arith.mulf %12, %21 : vector<16x128xf32>
    %23 = vector.broadcast %5 : vector<1x128xf32> to vector<16x128xf32>
    %24 = arith.mulf %22, %23 : vector<16x128xf32>
    %25 = vector.broadcast %6 : vector<1x128xf32> to vector<16x128xf32>
    %26 = arith.addf %24, %25 : vector<16x128xf32>
    %27 = arith.truncf %26 : vector<16x128xf32> to vector<16x128xbf16>
    %c0_11 = arith.constant 0 : index
    %c0_12 = arith.constant 0 : index
    %28 = vector.load %arg6[%c0_11, %c0_12] : memref<128x128xbf16, #tpu.memory_space<vmem>>, vector<128x128xbf16>
    %cst_13 = arith.constant dense<0.000000e+00> : vector<16x128xf32>
    %29 = tpu.matmul %27, %28, %cst_13 {dimension_numbers = #tpu.dot_dimension_numbers<[1], [0], [0], [1], [0, 0, 1, 1], [], []>} : vector<16x128xbf16>, vector<128x128xbf16>, vector<16x128xf32> -> vector<16x128xf32>
    %c0_14 = arith.constant 0 : index
    %c0_15 = arith.constant 0 : index
    %30 = vector.load %arg7[%c0_14, %c0_15] : memref<1x128xf32, #tpu.memory_space<vmem>>, vector<1x128xf32>
    %31 = vector.broadcast %30 : vector<1x128xf32> to vector<16x128xf32>
    %32 = arith.addf %29, %31 : vector<16x128xf32>
    %33 = arith.truncf %32 : vector<16x128xf32> to vector<16x128xbf16>
    %c0_16 = arith.constant 0 : index
    %c0_17 = arith.constant 0 : index
    %34 = vector.load %arg16[%c0_16, %c0_17] : memref<128x128xbf16, #tpu.memory_space<vmem>>, vector<128x128xbf16>
    %c0_18 = arith.constant 0 : index
    %c0_19 = arith.constant 0 : index
    %35 = vector.load %arg17[%c0_18, %c0_19] : memref<128x128xbf16, #tpu.memory_space<vmem>>, vector<128x128xbf16>
    %36 = tpu.iota {dimensions = array<i32: 1>} : vector<1x128xi32>
    %c17_i32 = arith.constant 17 : i32
    %37 = vector.broadcast %c17_i32 : i32 to vector<1x128xi32>
    %38 = arith.cmpi slt, %36, %37 : vector<1x128xi32>
    %cst_20 = arith.constant 0.000000e+00 : f32
    %cst_21 = arith.constant -1.000000e+30 : f32
    %39 = vector.broadcast %cst_20 : f32 to vector<1x128xf32>
    %40 = vector.broadcast %cst_21 : f32 to vector<1x128xf32>
    %41 = arith.select %38, %39, %40 : vector<1x128xi1>, vector<1x128xf32>
    %42 = vector.extract_strided_slice %33 {offsets = [0, 0], sizes = [16, 32], strides = [1, 1]} : vector<16x128xbf16> to vector<16x32xbf16>
    %43 = vector.extract_strided_slice %34 {offsets = [0, 0], sizes = [128, 32], strides = [1, 1]} : vector<128x128xbf16> to vector<128x32xbf16>
    %cst_22 = arith.constant dense<0.000000e+00> : vector<16x128xf32>
    %44 = tpu.matmul %42, %43, %cst_22 {dimension_numbers = #tpu.dot_dimension_numbers<[1], [1], [0], [0], [0, 0, 1, 0], [], []>} : vector<16x32xbf16>, vector<128x32xbf16>, vector<16x128xf32> -> vector<16x128xf32>
    %45 = vector.broadcast %41 : vector<1x128xf32> to vector<16x128xf32>
    %46 = arith.addf %44, %45 : vector<16x128xf32>
    %cst_23 = arith.constant dense<0xFF800000> : vector<16xf32>
    %47 = vector.multi_reduction <maximumf>, %46, %cst_23 [1] : vector<16x128xf32> to vector<16xf32>
    %48 = vector.shape_cast %47 : vector<16xf32> to vector<16x1xf32>
    %49 = vector.broadcast %48 : vector<16x1xf32> to vector<16x128xf32>
    %50 = arith.subf %46, %49 : vector<16x128xf32>
    %51 = math.exp %50 : vector<16x128xf32>
    %cst_24 = arith.constant dense<0.000000e+00> : vector<16xf32>
    %52 = vector.multi_reduction <add>, %51, %cst_24 [1] : vector<16x128xf32> to vector<16xf32>
    %53 = vector.shape_cast %52 : vector<16xf32> to vector<16x1xf32>
    %54 = vector.broadcast %53 : vector<16x1xf32> to vector<16x128xf32>
    %55 = arith.divf %51, %54 : vector<16x128xf32>
    %56 = arith.truncf %55 : vector<16x128xf32> to vector<16x128xbf16>
    %57 = vector.extract_strided_slice %35 {offsets = [0, 0], sizes = [128, 32], strides = [1, 1]} : vector<128x128xbf16> to vector<128x32xbf16>
    %cst_25 = arith.constant dense<0.000000e+00> : vector<16x32xf32>
    %58 = tpu.matmul %56, %57, %cst_25 {dimension_numbers = #tpu.dot_dimension_numbers<[1], [0], [0], [1], [0, 0, 1, 1], [], []>} : vector<16x128xbf16>, vector<128x32xbf16>, vector<16x32xf32> -> vector<16x32xf32>
    %59 = vector.extract_strided_slice %33 {offsets = [0, 32], sizes = [16, 32], strides = [1, 1]} : vector<16x128xbf16> to vector<16x32xbf16>
    %60 = vector.extract_strided_slice %34 {offsets = [0, 32], sizes = [128, 32], strides = [1, 1]} : vector<128x128xbf16> to vector<128x32xbf16>
    %cst_26 = arith.constant dense<0.000000e+00> : vector<16x128xf32>
    %61 = tpu.matmul %59, %60, %cst_26 {dimension_numbers = #tpu.dot_dimension_numbers<[1], [1], [0], [0], [0, 0, 1, 0], [], []>} : vector<16x32xbf16>, vector<128x32xbf16>, vector<16x128xf32> -> vector<16x128xf32>
    %62 = vector.broadcast %41 : vector<1x128xf32> to vector<16x128xf32>
    %63 = arith.addf %61, %62 : vector<16x128xf32>
    %cst_27 = arith.constant dense<0xFF800000> : vector<16xf32>
    %64 = vector.multi_reduction <maximumf>, %63, %cst_27 [1] : vector<16x128xf32> to vector<16xf32>
    %65 = vector.shape_cast %64 : vector<16xf32> to vector<16x1xf32>
    %66 = vector.broadcast %65 : vector<16x1xf32> to vector<16x128xf32>
    %67 = arith.subf %63, %66 : vector<16x128xf32>
    %68 = math.exp %67 : vector<16x128xf32>
    %cst_28 = arith.constant dense<0.000000e+00> : vector<16xf32>
    %69 = vector.multi_reduction <add>, %68, %cst_28 [1] : vector<16x128xf32> to vector<16xf32>
    %70 = vector.shape_cast %69 : vector<16xf32> to vector<16x1xf32>
    %71 = vector.broadcast %70 : vector<16x1xf32> to vector<16x128xf32>
    %72 = arith.divf %68, %71 : vector<16x128xf32>
    %73 = arith.truncf %72 : vector<16x128xf32> to vector<16x128xbf16>
    %74 = vector.extract_strided_slice %35 {offsets = [0, 32], sizes = [128, 32], strides = [1, 1]} : vector<128x128xbf16> to vector<128x32xbf16>
    %cst_29 = arith.constant dense<0.000000e+00> : vector<16x32xf32>
    %75 = tpu.matmul %73, %74, %cst_29 {dimension_numbers = #tpu.dot_dimension_numbers<[1], [0], [0], [1], [0, 0, 1, 1], [], []>} : vector<16x128xbf16>, vector<128x32xbf16>, vector<16x32xf32> -> vector<16x32xf32>
    %76 = arith.addf %55, %72 : vector<16x128xf32>
    %77 = vector.extract_strided_slice %33 {offsets = [0, 64], sizes = [16, 32], strides = [1, 1]} : vector<16x128xbf16> to vector<16x32xbf16>
    %78 = vector.extract_strided_slice %34 {offsets = [0, 64], sizes = [128, 32], strides = [1, 1]} : vector<128x128xbf16> to vector<128x32xbf16>
    %cst_30 = arith.constant dense<0.000000e+00> : vector<16x128xf32>
    %79 = tpu.matmul %77, %78, %cst_30 {dimension_numbers = #tpu.dot_dimension_numbers<[1], [1], [0], [0], [0, 0, 1, 0], [], []>} : vector<16x32xbf16>, vector<128x32xbf16>, vector<16x128xf32> -> vector<16x128xf32>
    %80 = vector.broadcast %41 : vector<1x128xf32> to vector<16x128xf32>
    %81 = arith.addf %79, %80 : vector<16x128xf32>
    %cst_31 = arith.constant dense<0xFF800000> : vector<16xf32>
    %82 = vector.multi_reduction <maximumf>, %81, %cst_31 [1] : vector<16x128xf32> to vector<16xf32>
    %83 = vector.shape_cast %82 : vector<16xf32> to vector<16x1xf32>
    %84 = vector.broadcast %83 : vector<16x1xf32> to vector<16x128xf32>
    %85 = arith.subf %81, %84 : vector<16x128xf32>
    %86 = math.exp %85 : vector<16x128xf32>
    %cst_32 = arith.constant dense<0.000000e+00> : vector<16xf32>
    %87 = vector.multi_reduction <add>, %86, %cst_32 [1] : vector<16x128xf32> to vector<16xf32>
    %88 = vector.shape_cast %87 : vector<16xf32> to vector<16x1xf32>
    %89 = vector.broadcast %88 : vector<16x1xf32> to vector<16x128xf32>
    %90 = arith.divf %86, %89 : vector<16x128xf32>
    %91 = arith.truncf %90 : vector<16x128xf32> to vector<16x128xbf16>
    %92 = vector.extract_strided_slice %35 {offsets = [0, 64], sizes = [128, 32], strides = [1, 1]} : vector<128x128xbf16> to vector<128x32xbf16>
    %cst_33 = arith.constant dense<0.000000e+00> : vector<16x32xf32>
    %93 = tpu.matmul %91, %92, %cst_33 {dimension_numbers = #tpu.dot_dimension_numbers<[1], [0], [0], [1], [0, 0, 1, 1], [], []>} : vector<16x128xbf16>, vector<128x32xbf16>, vector<16x32xf32> -> vector<16x32xf32>
    %94 = arith.addf %76, %90 : vector<16x128xf32>
    %95 = vector.extract_strided_slice %33 {offsets = [0, 96], sizes = [16, 32], strides = [1, 1]} : vector<16x128xbf16> to vector<16x32xbf16>
    %96 = vector.extract_strided_slice %34 {offsets = [0, 96], sizes = [128, 32], strides = [1, 1]} : vector<128x128xbf16> to vector<128x32xbf16>
    %cst_34 = arith.constant dense<0.000000e+00> : vector<16x128xf32>
    %97 = tpu.matmul %95, %96, %cst_34 {dimension_numbers = #tpu.dot_dimension_numbers<[1], [1], [0], [0], [0, 0, 1, 0], [], []>} : vector<16x32xbf16>, vector<128x32xbf16>, vector<16x128xf32> -> vector<16x128xf32>
    %98 = vector.broadcast %41 : vector<1x128xf32> to vector<16x128xf32>
    %99 = arith.addf %97, %98 : vector<16x128xf32>
    %cst_35 = arith.constant dense<0xFF800000> : vector<16xf32>
    %100 = vector.multi_reduction <maximumf>, %99, %cst_35 [1] : vector<16x128xf32> to vector<16xf32>
    %101 = vector.shape_cast %100 : vector<16xf32> to vector<16x1xf32>
    %102 = vector.broadcast %101 : vector<16x1xf32> to vector<16x128xf32>
    %103 = arith.subf %99, %102 : vector<16x128xf32>
    %104 = math.exp %103 : vector<16x128xf32>
    %cst_36 = arith.constant dense<0.000000e+00> : vector<16xf32>
    %105 = vector.multi_reduction <add>, %104, %cst_36 [1] : vector<16x128xf32> to vector<16xf32>
    %106 = vector.shape_cast %105 : vector<16xf32> to vector<16x1xf32>
    %107 = vector.broadcast %106 : vector<16x1xf32> to vector<16x128xf32>
    %108 = arith.divf %104, %107 : vector<16x128xf32>
    %109 = arith.truncf %108 : vector<16x128xf32> to vector<16x128xbf16>
    %110 = vector.extract_strided_slice %35 {offsets = [0, 96], sizes = [128, 32], strides = [1, 1]} : vector<128x128xbf16> to vector<128x32xbf16>
    %cst_37 = arith.constant dense<0.000000e+00> : vector<16x32xf32>
    %111 = tpu.matmul %109, %110, %cst_37 {dimension_numbers = #tpu.dot_dimension_numbers<[1], [0], [0], [1], [0, 0, 1, 1], [], []>} : vector<16x128xbf16>, vector<128x32xbf16>, vector<16x32xf32> -> vector<16x32xf32>
    %112 = arith.addf %94, %108 : vector<16x128xf32>
    %113 = tpu.concatenate %58, %75, %93, %111 in 1 : vector<16x32xf32>, vector<16x32xf32>, vector<16x32xf32>, vector<16x32xf32> -> vector<16x128xf32>
    %114 = arith.truncf %113 : vector<16x128xf32> to vector<16x128xbf16>
    %c0_38 = arith.constant 0 : index
    %c0_39 = arith.constant 0 : index
    %115 = vector.load %arg12[%c0_38, %c0_39] : memref<128x128xbf16, #tpu.memory_space<vmem>>, vector<128x128xbf16>
    %cst_40 = arith.constant dense<0.000000e+00> : vector<16x128xf32>
    %116 = tpu.matmul %114, %115, %cst_40 {dimension_numbers = #tpu.dot_dimension_numbers<[1], [0], [0], [1], [0, 0, 1, 1], [], []>} : vector<16x128xbf16>, vector<128x128xbf16>, vector<16x128xf32> -> vector<16x128xf32>
    %c0_41 = arith.constant 0 : index
    %c0_42 = arith.constant 0 : index
    %117 = vector.load %arg13[%c0_41, %c0_42] : memref<1x128xf32, #tpu.memory_space<vmem>>, vector<1x128xf32>
    %118 = vector.broadcast %117 : vector<1x128xf32> to vector<16x128xf32>
    %119 = arith.addf %116, %118 : vector<16x128xf32>
    %120 = arith.addf %119, %4 : vector<16x128xf32>
    %c0_43 = arith.constant 0 : index
    %c0_44 = arith.constant 0 : index
    %c0_45 = arith.constant 0 : index
    %121 = vector.load %arg14[%c0_43, %c0_44, %c0_45] : memref<1x16x128xf32, #tpu.memory_space<vmem>>, vector<1x16x128xf32>
    %122 = vector.shape_cast %121 : vector<1x16x128xf32> to vector<16x128xf32>
    %123 = vector.shape_cast %120 : vector<16x128xf32> to vector<1x16x128xf32>
    tpu.vector_store %arg14[%c0_43, %c0_44, %c0_45], %123 {strides = array<i32>} : memref<1x16x128xf32, #tpu.memory_space<vmem>>, vector<1x16x128xf32>,
    %cst_46 = arith.constant 2.500000e-01 : f32
    %124 = vector.broadcast %cst_46 : f32 to vector<16x128xf32>
    %125 = arith.mulf %112, %124 : vector<16x128xf32>
    %c0_47 = arith.constant 0 : index
    %c0_48 = arith.constant 0 : index
    %c0_49 = arith.constant 0 : index
    %126 = vector.load %arg15[%c0_47, %c0_48, %c0_49] : memref<1x16x128xf32, #tpu.memory_space<vmem>>, vector<1x16x128xf32>
    %127 = vector.shape_cast %126 : vector<1x16x128xf32> to vector<16x128xf32>
    %128 = vector.shape_cast %125 : vector<16x128xf32> to vector<1x16x128xf32>
    tpu.vector_store %arg15[%c0_47, %c0_48, %c0_49], %128 {strides = array<i32>} : memref<1x16x128xf32, #tpu.memory_space<vmem>>, vector<1x16x128xf32>,
    return
  }
  func.func @transform_0(%arg0: i32, %arg1: i32) -> (i32, i32, i32) {
    %c0_i32 = arith.constant 0 : i32
    %c0_i32_0 = arith.constant 0 : i32
    %c0_i32_1 = arith.constant 0 : i32
    return %arg0, %c0_i32, %c0_i32_0 : i32, i32, i32
  }
  func.func @transform_1(%arg0: i32, %arg1: i32) -> (i32, i32, i32) {
    %c0_i32 = arith.constant 0 : i32
    %c0_i32_0 = arith.constant 0 : i32
    return %arg0, %arg1, %c0_i32 : i32, i32, i32
  }
  func.func @transform_2(%arg0: i32, %arg1: i32) -> (i32, i32) {
    %c0_i32 = arith.constant 0 : i32
    %c0_i32_0 = arith.constant 0 : i32
    %c0_i32_1 = arith.constant 0 : i32
    return %c0_i32, %c0_i32_0 : i32, i32
  }
  func.func @transform_3(%arg0: i32, %arg1: i32) -> (i32, i32) {
    %c0_i32 = arith.constant 0 : i32
    %c0_i32_0 = arith.constant 0 : i32
    %c0_i32_1 = arith.constant 0 : i32
    return %c0_i32, %c0_i32_0 : i32, i32
  }
  func.func @transform_4(%arg0: i32, %arg1: i32) -> (i32, i32) {
    %c0_i32 = arith.constant 0 : i32
    %c0_i32_0 = arith.constant 0 : i32
    %c0_i32_1 = arith.constant 0 : i32
    return %c0_i32, %c0_i32_0 : i32, i32
  }
  func.func @transform_5(%arg0: i32, %arg1: i32) -> (i32, i32) {
    %c0_i32 = arith.constant 0 : i32
    %c0_i32_0 = arith.constant 0 : i32
    %c0_i32_1 = arith.constant 0 : i32
    return %c0_i32, %c0_i32_0 : i32, i32
  }
  func.func @transform_6(%arg0: i32, %arg1: i32) -> (i32, i32) {
    %c0_i32 = arith.constant 0 : i32
    %c0_i32_0 = arith.constant 0 : i32
    %c0_i32_1 = arith.constant 0 : i32
    return %c0_i32, %c0_i32_0 : i32, i32
  }
  func.func @transform_7(%arg0: i32, %arg1: i32) -> (i32, i32) {
    %c0_i32 = arith.constant 0 : i32
    %c0_i32_0 = arith.constant 0 : i32
    %c0_i32_1 = arith.constant 0 : i32
    return %c0_i32, %c0_i32_0 : i32, i32
  }
  func.func @transform_8(%arg0: i32, %arg1: i32) -> (i32, i32) {
    %c0_i32 = arith.constant 0 : i32
    %c0_i32_0 = arith.constant 0 : i32
    %c0_i32_1 = arith.constant 0 : i32
    return %c0_i32, %c0_i32_0 : i32, i32
  }
  func.func @transform_9(%arg0: i32, %arg1: i32) -> (i32, i32) {
    %c0_i32 = arith.constant 0 : i32
    %c0_i32_0 = arith.constant 0 : i32
    %c0_i32_1 = arith.constant 0 : i32
    return %c0_i32, %c0_i32_0 : i32, i32
  }
  func.func @transform_10(%arg0: i32, %arg1: i32) -> (i32, i32) {
    %c0_i32 = arith.constant 0 : i32
    %c0_i32_0 = arith.constant 0 : i32
    %c0_i32_1 = arith.constant 0 : i32
    return %c0_i32, %c0_i32_0 : i32, i32
  }
  func.func @transform_11(%arg0: i32, %arg1: i32) -> (i32, i32) {
    %c0_i32 = arith.constant 0 : i32
    %c0_i32_0 = arith.constant 0 : i32
    %c0_i32_1 = arith.constant 0 : i32
    return %c0_i32, %c0_i32_0 : i32, i32
  }
  func.func @transform_12(%arg0: i32, %arg1: i32) -> (i32, i32, i32) {
    %c0_i32 = arith.constant 0 : i32
    %c0_i32_0 = arith.constant 0 : i32
    return %arg0, %arg1, %c0_i32 : i32, i32, i32
  }
  func.func @transform_13(%arg0: i32, %arg1: i32) -> (i32, i32, i32) {
    %c0_i32 = arith.constant 0 : i32
    %c0_i32_0 = arith.constant 0 : i32
    return %arg0, %arg1, %c0_i32 : i32, i32, i32
  }
}

module attributes {stable_mosaic.version = 11 : i64} {
  func.func @_cross_attn_kernel(%arg0: i32, %arg1: i32, %arg2: memref<1x16x128xf32, #tpu.memory_space<vmem>>, %arg3: memref<1x8x64xf32, #tpu.memory_space<vmem>>, %arg4: memref<1x128xf32, #tpu.memory_space<vmem>>, %arg5: memref<1x128xf32, #tpu.memory_space<vmem>>, %arg6: memref<128x128xbf16, #tpu.memory_space<vmem>>, %arg7: memref<1x128xf32, #tpu.memory_space<vmem>>, %arg8: memref<64x256xbf16, #tpu.memory_space<vmem>>, %arg9: memref<1x256xf32, #tpu.memory_space<vmem>>, %arg10: memref<1x128xf32, #tpu.memory_space<vmem>>, %arg11: memref<1x128xf32, #tpu.memory_space<vmem>>, %arg12: memref<128x128xbf16, #tpu.memory_space<vmem>>, %arg13: memref<1x128xf32, #tpu.memory_space<vmem>>, %arg14: memref<16x32xf32, #tpu.memory_space<vmem>>, %arg15: memref<16x32xf32, #tpu.memory_space<vmem>>, %arg16: memref<128x32xf32, #tpu.memory_space<vmem>>, %arg17: memref<128x32xf32, #tpu.memory_space<vmem>>, %arg18: memref<1x16x128xf32, #tpu.memory_space<vmem>>, %arg19: memref<128x128xbf16, #tpu.memory_space<vmem>>, %arg20: memref<128x128xbf16, #tpu.memory_space<vmem>>) attributes {dimension_semantics = [#tpu.dimension_semantics<parallel>, #tpu.dimension_semantics<arbitrary>], iteration_bounds = array<i64: 2, 1>, scalar_prefetch = 0 : i64, scratch_operands = 2 : i64, tpu.core_type = #tpu.core_type<tc>, window_params = [{transform_indices = @transform_0, window_bounds = array<i64: 1, 16, 128>}, {transform_indices = @transform_1, window_bounds = array<i64: 1, 8, 64>}, {pipeline_mode = #tpu.pipeline_mode<synchronous>, transform_indices = @transform_2, window_bounds = array<i64: 1, 128>}, {pipeline_mode = #tpu.pipeline_mode<synchronous>, transform_indices = @transform_3, window_bounds = array<i64: 1, 128>}, {pipeline_mode = #tpu.pipeline_mode<synchronous>, transform_indices = @transform_4, window_bounds = array<i64: 128, 128>}, {pipeline_mode = #tpu.pipeline_mode<synchronous>, transform_indices = @transform_5, window_bounds = array<i64: 1, 128>}, {pipeline_mode = #tpu.pipeline_mode<synchronous>, transform_indices = @transform_6, window_bounds = array<i64: 64, 256>}, {pipeline_mode = #tpu.pipeline_mode<synchronous>, transform_indices = @transform_7, window_bounds = array<i64: 1, 256>}, {pipeline_mode = #tpu.pipeline_mode<synchronous>, transform_indices = @transform_8, window_bounds = array<i64: 1, 128>}, {pipeline_mode = #tpu.pipeline_mode<synchronous>, transform_indices = @transform_9, window_bounds = array<i64: 1, 128>}, {pipeline_mode = #tpu.pipeline_mode<synchronous>, transform_indices = @transform_10, window_bounds = array<i64: 128, 128>}, {pipeline_mode = #tpu.pipeline_mode<synchronous>, transform_indices = @transform_11, window_bounds = array<i64: 1, 128>}, {transform_indices = @transform_12, window_bounds = array<i64: 16, 32>}, {transform_indices = @transform_13, window_bounds = array<i64: 16, 32>}, {pipeline_mode = #tpu.pipeline_mode<synchronous>, transform_indices = @transform_14, window_bounds = array<i64: 128, 32>}, {pipeline_mode = #tpu.pipeline_mode<synchronous>, transform_indices = @transform_15, window_bounds = array<i64: 128, 32>}, {transform_indices = @transform_16, window_bounds = array<i64: 1, 16, 128>}]} {
    %c0_i32 = arith.constant 0 : i32
    %0 = arith.cmpi eq, %arg1, %c0_i32 : i32
    %1 = arith.extui %0 : i1 to i32
    %c0_i32_0 = arith.constant 0 : i32
    %2 = arith.cmpi ne, %1, %c0_i32_0 : i32
    scf.if %2 {
      %c0_54 = arith.constant 0 : index
      %c0_55 = arith.constant 0 : index
      %c0_56 = arith.constant 0 : index
      %162 = vector.load %arg3[%c0_54, %c0_55, %c0_56] : memref<1x8x64xf32, #tpu.memory_space<vmem>>, vector<1x8x64xf32>
      %163 = vector.shape_cast %162 : vector<1x8x64xf32> to vector<8x64xf32>
      %164 = arith.truncf %163 : vector<8x64xf32> to vector<8x64xbf16>
      %c0_57 = arith.constant 0 : index
      %c0_58 = arith.constant 0 : index
      %165 = vector.load %arg8[%c0_57, %c0_58] : memref<64x256xbf16, #tpu.memory_space<vmem>>, vector<64x256xbf16>
      %cst_59 = arith.constant dense<0.000000e+00> : vector<8x256xf32>
      %166 = tpu.matmul %164, %165, %cst_59 {dimension_numbers = #tpu.dot_dimension_numbers<[1], [0], [0], [1], [0, 0, 1, 1], [], []>} : vector<8x64xbf16>, vector<64x256xbf16>, vector<8x256xf32> -> vector<8x256xf32>
      %c0_60 = arith.constant 0 : index
      %c0_61 = arith.constant 0 : index
      %167 = vector.load %arg9[%c0_60, %c0_61] : memref<1x256xf32, #tpu.memory_space<vmem>>, vector<1x256xf32>
      %168 = vector.broadcast %167 : vector<1x256xf32> to vector<8x256xf32>
      %169 = arith.addf %166, %168 : vector<8x256xf32>
      %170 = vector.extract_strided_slice %169 {offsets = [0, 0], sizes = [8, 128], strides = [1, 1]} : vector<8x256xf32> to vector<8x128xf32>
      %c0_62 = arith.constant 0 : index
      %c0_63 = arith.constant 0 : index
      %171 = vector.load %arg10[%c0_62, %c0_63] : memref<1x128xf32, #tpu.memory_space<vmem>>, vector<1x128xf32>
      %172 = vector.extract_strided_slice %169 {offsets = [0, 128], sizes = [8, 128], strides = [1, 1]} : vector<8x256xf32> to vector<8x128xf32>
      %c0_64 = arith.constant 0 : index
      %c0_65 = arith.constant 0 : index
      %173 = vector.load %arg11[%c0_64, %c0_65] : memref<1x128xf32, #tpu.memory_space<vmem>>, vector<1x128xf32>
      %cst_66 = arith.constant 0.000000e+00 : f32
      %174 = vector.broadcast %cst_66 : f32 to vector<119x128xf32>
      %175 = tpu.concatenate %170, %171, %174 in 0 : vector<8x128xf32>, vector<1x128xf32>, vector<119x128xf32> -> vector<128x128xf32>
      %176 = tpu.concatenate %172, %173, %174 in 0 : vector<8x128xf32>, vector<1x128xf32>, vector<119x128xf32> -> vector<128x128xf32>
      %c0_67 = arith.constant 0 : index
      %c0_68 = arith.constant 0 : index
      %177 = vector.load %arg16[%c0_67, %c0_68] : memref<128x32xf32, #tpu.memory_space<vmem>>, vector<128x32xf32>
      %c0_69 = arith.constant 0 : index
      %c0_70 = arith.constant 0 : index
      %178 = vector.load %arg17[%c0_69, %c0_70] : memref<128x32xf32, #tpu.memory_space<vmem>>, vector<128x32xf32>
      %179 = vector.extract_strided_slice %175 {offsets = [0, 0], sizes = [128, 32], strides = [1, 1]} : vector<128x128xf32> to vector<128x32xf32>
      %180 = arith.mulf %179, %177 : vector<128x32xf32>
      %181 = vector.extract_strided_slice %179 {offsets = [0, 16], sizes = [128, 16], strides = [1, 1]} : vector<128x32xf32> to vector<128x16xf32>
      %cst_71 = arith.constant 0.000000e+00 : f32
      %182 = vector.broadcast %cst_71 : f32 to vector<128x16xf32>
      %183 = arith.subf %182, %181 : vector<128x16xf32>
      %184 = vector.extract_strided_slice %179 {offsets = [0, 0], sizes = [128, 16], strides = [1, 1]} : vector<128x32xf32> to vector<128x16xf32>
      %185 = tpu.concatenate %183, %184 in 1 : vector<128x16xf32>, vector<128x16xf32> -> vector<128x32xf32>
      %186 = arith.mulf %185, %178 : vector<128x32xf32>
      %187 = arith.addf %180, %186 : vector<128x32xf32>
      %188 = vector.extract_strided_slice %175 {offsets = [0, 32], sizes = [128, 32], strides = [1, 1]} : vector<128x128xf32> to vector<128x32xf32>
      %189 = arith.mulf %188, %177 : vector<128x32xf32>
      %190 = vector.extract_strided_slice %188 {offsets = [0, 16], sizes = [128, 16], strides = [1, 1]} : vector<128x32xf32> to vector<128x16xf32>
      %cst_72 = arith.constant 0.000000e+00 : f32
      %191 = vector.broadcast %cst_72 : f32 to vector<128x16xf32>
      %192 = arith.subf %191, %190 : vector<128x16xf32>
      %193 = vector.extract_strided_slice %188 {offsets = [0, 0], sizes = [128, 16], strides = [1, 1]} : vector<128x32xf32> to vector<128x16xf32>
      %194 = tpu.concatenate %192, %193 in 1 : vector<128x16xf32>, vector<128x16xf32> -> vector<128x32xf32>
      %195 = arith.mulf %194, %178 : vector<128x32xf32>
      %196 = arith.addf %189, %195 : vector<128x32xf32>
      %197 = vector.extract_strided_slice %175 {offsets = [0, 64], sizes = [128, 32], strides = [1, 1]} : vector<128x128xf32> to vector<128x32xf32>
      %198 = arith.mulf %197, %177 : vector<128x32xf32>
      %199 = vector.extract_strided_slice %197 {offsets = [0, 16], sizes = [128, 16], strides = [1, 1]} : vector<128x32xf32> to vector<128x16xf32>
      %cst_73 = arith.constant 0.000000e+00 : f32
      %200 = vector.broadcast %cst_73 : f32 to vector<128x16xf32>
      %201 = arith.subf %200, %199 : vector<128x16xf32>
      %202 = vector.extract_strided_slice %197 {offsets = [0, 0], sizes = [128, 16], strides = [1, 1]} : vector<128x32xf32> to vector<128x16xf32>
      %203 = tpu.concatenate %201, %202 in 1 : vector<128x16xf32>, vector<128x16xf32> -> vector<128x32xf32>
      %204 = arith.mulf %203, %178 : vector<128x32xf32>
      %205 = arith.addf %198, %204 : vector<128x32xf32>
      %206 = vector.extract_strided_slice %175 {offsets = [0, 96], sizes = [128, 32], strides = [1, 1]} : vector<128x128xf32> to vector<128x32xf32>
      %207 = arith.mulf %206, %177 : vector<128x32xf32>
      %208 = vector.extract_strided_slice %206 {offsets = [0, 16], sizes = [128, 16], strides = [1, 1]} : vector<128x32xf32> to vector<128x16xf32>
      %cst_74 = arith.constant 0.000000e+00 : f32
      %209 = vector.broadcast %cst_74 : f32 to vector<128x16xf32>
      %210 = arith.subf %209, %208 : vector<128x16xf32>
      %211 = vector.extract_strided_slice %206 {offsets = [0, 0], sizes = [128, 16], strides = [1, 1]} : vector<128x32xf32> to vector<128x16xf32>
      %212 = tpu.concatenate %210, %211 in 1 : vector<128x16xf32>, vector<128x16xf32> -> vector<128x32xf32>
      %213 = arith.mulf %212, %178 : vector<128x32xf32>
      %214 = arith.addf %207, %213 : vector<128x32xf32>
      %215 = tpu.concatenate %187, %196, %205, %214 in 1 : vector<128x32xf32>, vector<128x32xf32>, vector<128x32xf32>, vector<128x32xf32> -> vector<128x128xf32>
      %216 = arith.truncf %215 : vector<128x128xf32> to vector<128x128xbf16>
      %c0_75 = arith.constant 0 : index
      %c0_76 = arith.constant 0 : index
      %217 = vector.load %arg19[%c0_75, %c0_76] : memref<128x128xbf16, #tpu.memory_space<vmem>>, vector<128x128xbf16>
      tpu.vector_store %arg19[%c0_75, %c0_76], %216 {strides = array<i32>} : memref<128x128xbf16, #tpu.memory_space<vmem>>, vector<128x128xbf16>,
      %218 = arith.truncf %176 : vector<128x128xf32> to vector<128x128xbf16>
      %c0_77 = arith.constant 0 : index
      %c0_78 = arith.constant 0 : index
      %219 = vector.load %arg20[%c0_77, %c0_78] : memref<128x128xbf16, #tpu.memory_space<vmem>>, vector<128x128xbf16>
      tpu.vector_store %arg20[%c0_77, %c0_78], %218 {strides = array<i32>} : memref<128x128xbf16, #tpu.memory_space<vmem>>, vector<128x128xbf16>,
    } else {
    }
    %c0 = arith.constant 0 : index
    %c0_1 = arith.constant 0 : index
    %c0_2 = arith.constant 0 : index
    %3 = vector.load %arg2[%c0, %c0_1, %c0_2] : memref<1x16x128xf32, #tpu.memory_space<vmem>>, vector<1x16x128xf32>
    %4 = vector.shape_cast %3 : vector<1x16x128xf32> to vector<16x128xf32>
    %c0_3 = arith.constant 0 : index
    %c0_4 = arith.constant 0 : index
    %5 = vector.load %arg4[%c0_3, %c0_4] : memref<1x128xf32, #tpu.memory_space<vmem>>, vector<1x128xf32>
    %c0_5 = arith.constant 0 : index
    %c0_6 = arith.constant 0 : index
    %6 = vector.load %arg5[%c0_5, %c0_6] : memref<1x128xf32, #tpu.memory_space<vmem>>, vector<1x128xf32>
    %cst = arith.constant dense<0.000000e+00> : vector<16xf32>
    %7 = vector.multi_reduction <add>, %4, %cst [1] : vector<16x128xf32> to vector<16xf32>
    %8 = vector.shape_cast %7 : vector<16xf32> to vector<16x1xf32>
    %cst_7 = arith.constant 1.280000e+02 : f32
    %9 = vector.broadcast %cst_7 : f32 to vector<16x1xf32>
    %10 = arith.divf %8, %9 : vector<16x1xf32>
    %11 = vector.broadcast %10 : vector<16x1xf32> to vector<16x128xf32>
    %12 = arith.subf %4, %11 : vector<16x128xf32>
    %13 = arith.mulf %12, %12 : vector<16x128xf32>
    %cst_8 = arith.constant dense<0.000000e+00> : vector<16xf32>
    %14 = vector.multi_reduction <add>, %13, %cst_8 [1] : vector<16x128xf32> to vector<16xf32>
    %15 = vector.shape_cast %14 : vector<16xf32> to vector<16x1xf32>
    %cst_9 = arith.constant 1.280000e+02 : f32
    %16 = vector.broadcast %cst_9 : f32 to vector<16x1xf32>
    %17 = arith.divf %15, %16 : vector<16x1xf32>
    %cst_10 = arith.constant 9.99999974E-6 : f32
    %18 = vector.broadcast %cst_10 : f32 to vector<16x1xf32>
    %19 = arith.addf %17, %18 : vector<16x1xf32>
    %20 = math.rsqrt %19 : vector<16x1xf32>
    %21 = vector.broadcast %20 : vector<16x1xf32> to vector<16x128xf32>
    %22 = arith.mulf %12, %21 : vector<16x128xf32>
    %23 = vector.broadcast %5 : vector<1x128xf32> to vector<16x128xf32>
    %24 = arith.mulf %22, %23 : vector<16x128xf32>
    %25 = vector.broadcast %6 : vector<1x128xf32> to vector<16x128xf32>
    %26 = arith.addf %24, %25 : vector<16x128xf32>
    %27 = arith.truncf %26 : vector<16x128xf32> to vector<16x128xbf16>
    %c0_11 = arith.constant 0 : index
    %c0_12 = arith.constant 0 : index
    %28 = vector.load %arg6[%c0_11, %c0_12] : memref<128x128xbf16, #tpu.memory_space<vmem>>, vector<128x128xbf16>
    %cst_13 = arith.constant dense<0.000000e+00> : vector<16x128xf32>
    %29 = tpu.matmul %27, %28, %cst_13 {dimension_numbers = #tpu.dot_dimension_numbers<[1], [0], [0], [1], [0, 0, 1, 1], [], []>} : vector<16x128xbf16>, vector<128x128xbf16>, vector<16x128xf32> -> vector<16x128xf32>
    %c0_14 = arith.constant 0 : index
    %c0_15 = arith.constant 0 : index
    %30 = vector.load %arg7[%c0_14, %c0_15] : memref<1x128xf32, #tpu.memory_space<vmem>>, vector<1x128xf32>
    %31 = vector.broadcast %30 : vector<1x128xf32> to vector<16x128xf32>
    %32 = arith.addf %29, %31 : vector<16x128xf32>
    %c0_16 = arith.constant 0 : index
    %c0_17 = arith.constant 0 : index
    %33 = vector.load %arg14[%c0_16, %c0_17] : memref<16x32xf32, #tpu.memory_space<vmem>>, vector<16x32xf32>
    %c0_18 = arith.constant 0 : index
    %c0_19 = arith.constant 0 : index
    %34 = vector.load %arg15[%c0_18, %c0_19] : memref<16x32xf32, #tpu.memory_space<vmem>>, vector<16x32xf32>
    %c0_20 = arith.constant 0 : index
    %c0_21 = arith.constant 0 : index
    %35 = vector.load %arg19[%c0_20, %c0_21] : memref<128x128xbf16, #tpu.memory_space<vmem>>, vector<128x128xbf16>
    %c0_22 = arith.constant 0 : index
    %c0_23 = arith.constant 0 : index
    %36 = vector.load %arg20[%c0_22, %c0_23] : memref<128x128xbf16, #tpu.memory_space<vmem>>, vector<128x128xbf16>
    %37 = tpu.iota {dimensions = array<i32: 1>} : vector<1x128xi32>
    %c9_i32 = arith.constant 9 : i32
    %38 = vector.broadcast %c9_i32 : i32 to vector<1x128xi32>
    %39 = arith.cmpi slt, %37, %38 : vector<1x128xi32>
    %cst_24 = arith.constant 0.000000e+00 : f32
    %cst_25 = arith.constant -1.000000e+30 : f32
    %40 = vector.broadcast %cst_24 : f32 to vector<1x128xf32>
    %41 = vector.broadcast %cst_25 : f32 to vector<1x128xf32>
    %42 = arith.select %39, %40, %41 : vector<1x128xi1>, vector<1x128xf32>
    %43 = vector.extract_strided_slice %32 {offsets = [0, 0], sizes = [16, 32], strides = [1, 1]} : vector<16x128xf32> to vector<16x32xf32>
    %44 = arith.mulf %43, %33 : vector<16x32xf32>
    %45 = vector.extract_strided_slice %43 {offsets = [0, 16], sizes = [16, 16], strides = [1, 1]} : vector<16x32xf32> to vector<16x16xf32>
    %cst_26 = arith.constant 0.000000e+00 : f32
    %46 = vector.broadcast %cst_26 : f32 to vector<16x16xf32>
    %47 = arith.subf %46, %45 : vector<16x16xf32>
    %48 = vector.extract_strided_slice %43 {offsets = [0, 0], sizes = [16, 16], strides = [1, 1]} : vector<16x32xf32> to vector<16x16xf32>
    %49 = tpu.concatenate %47, %48 in 1 : vector<16x16xf32>, vector<16x16xf32> -> vector<16x32xf32>
    %50 = arith.mulf %49, %34 : vector<16x32xf32>
    %51 = arith.addf %44, %50 : vector<16x32xf32>
    %52 = arith.truncf %51 : vector<16x32xf32> to vector<16x32xbf16>
    %53 = vector.extract_strided_slice %35 {offsets = [0, 0], sizes = [128, 32], strides = [1, 1]} : vector<128x128xbf16> to vector<128x32xbf16>
    %cst_27 = arith.constant dense<0.000000e+00> : vector<16x128xf32>
    %54 = tpu.matmul %52, %53, %cst_27 {dimension_numbers = #tpu.dot_dimension_numbers<[1], [1], [0], [0], [0, 0, 1, 0], [], []>} : vector<16x32xbf16>, vector<128x32xbf16>, vector<16x128xf32> -> vector<16x128xf32>
    %55 = vector.broadcast %42 : vector<1x128xf32> to vector<16x128xf32>
    %56 = arith.addf %54, %55 : vector<16x128xf32>
    %cst_28 = arith.constant dense<0xFF800000> : vector<16xf32>
    %57 = vector.multi_reduction <maximumf>, %56, %cst_28 [1] : vector<16x128xf32> to vector<16xf32>
    %58 = vector.shape_cast %57 : vector<16xf32> to vector<16x1xf32>
    %59 = vector.broadcast %58 : vector<16x1xf32> to vector<16x128xf32>
    %60 = arith.subf %56, %59 : vector<16x128xf32>
    %61 = math.exp %60 : vector<16x128xf32>
    %cst_29 = arith.constant dense<0.000000e+00> : vector<16xf32>
    %62 = vector.multi_reduction <add>, %61, %cst_29 [1] : vector<16x128xf32> to vector<16xf32>
    %63 = vector.shape_cast %62 : vector<16xf32> to vector<16x1xf32>
    %64 = tpu.reciprocal %63 {approx = true} : vector<16x1xf32> -> vector<16x1xf32>
    %65 = vector.broadcast %64 : vector<16x1xf32> to vector<16x128xf32>
    %66 = arith.mulf %61, %65 : vector<16x128xf32>
    %67 = arith.truncf %66 : vector<16x128xf32> to vector<16x128xbf16>
    %68 = vector.extract_strided_slice %36 {offsets = [0, 0], sizes = [128, 32], strides = [1, 1]} : vector<128x128xbf16> to vector<128x32xbf16>
    %cst_30 = arith.constant dense<0.000000e+00> : vector<16x32xf32>
    %69 = tpu.matmul %67, %68, %cst_30 {dimension_numbers = #tpu.dot_dimension_numbers<[1], [0], [0], [1], [0, 0, 1, 1], [], []>} : vector<16x128xbf16>, vector<128x32xbf16>, vector<16x32xf32> -> vector<16x32xf32>
    %70 = vector.extract_strided_slice %32 {offsets = [0, 32], sizes = [16, 32], strides = [1, 1]} : vector<16x128xf32> to vector<16x32xf32>
    %71 = arith.mulf %70, %33 : vector<16x32xf32>
    %72 = vector.extract_strided_slice %70 {offsets = [0, 16], sizes = [16, 16], strides = [1, 1]} : vector<16x32xf32> to vector<16x16xf32>
    %cst_31 = arith.constant 0.000000e+00 : f32
    %73 = vector.broadcast %cst_31 : f32 to vector<16x16xf32>
    %74 = arith.subf %73, %72 : vector<16x16xf32>
    %75 = vector.extract_strided_slice %70 {offsets = [0, 0], sizes = [16, 16], strides = [1, 1]} : vector<16x32xf32> to vector<16x16xf32>
    %76 = tpu.concatenate %74, %75 in 1 : vector<16x16xf32>, vector<16x16xf32> -> vector<16x32xf32>
    %77 = arith.mulf %76, %34 : vector<16x32xf32>
    %78 = arith.addf %71, %77 : vector<16x32xf32>
    %79 = arith.truncf %78 : vector<16x32xf32> to vector<16x32xbf16>
    %80 = vector.extract_strided_slice %35 {offsets = [0, 32], sizes = [128, 32], strides = [1, 1]} : vector<128x128xbf16> to vector<128x32xbf16>
    %cst_32 = arith.constant dense<0.000000e+00> : vector<16x128xf32>
    %81 = tpu.matmul %79, %80, %cst_32 {dimension_numbers = #tpu.dot_dimension_numbers<[1], [1], [0], [0], [0, 0, 1, 0], [], []>} : vector<16x32xbf16>, vector<128x32xbf16>, vector<16x128xf32> -> vector<16x128xf32>
    %82 = vector.broadcast %42 : vector<1x128xf32> to vector<16x128xf32>
    %83 = arith.addf %81, %82 : vector<16x128xf32>
    %cst_33 = arith.constant dense<0xFF800000> : vector<16xf32>
    %84 = vector.multi_reduction <maximumf>, %83, %cst_33 [1] : vector<16x128xf32> to vector<16xf32>
    %85 = vector.shape_cast %84 : vector<16xf32> to vector<16x1xf32>
    %86 = vector.broadcast %85 : vector<16x1xf32> to vector<16x128xf32>
    %87 = arith.subf %83, %86 : vector<16x128xf32>
    %88 = math.exp %87 : vector<16x128xf32>
    %cst_34 = arith.constant dense<0.000000e+00> : vector<16xf32>
    %89 = vector.multi_reduction <add>, %88, %cst_34 [1] : vector<16x128xf32> to vector<16xf32>
    %90 = vector.shape_cast %89 : vector<16xf32> to vector<16x1xf32>
    %91 = tpu.reciprocal %90 {approx = true} : vector<16x1xf32> -> vector<16x1xf32>
    %92 = vector.broadcast %91 : vector<16x1xf32> to vector<16x128xf32>
    %93 = arith.mulf %88, %92 : vector<16x128xf32>
    %94 = arith.truncf %93 : vector<16x128xf32> to vector<16x128xbf16>
    %95 = vector.extract_strided_slice %36 {offsets = [0, 32], sizes = [128, 32], strides = [1, 1]} : vector<128x128xbf16> to vector<128x32xbf16>
    %cst_35 = arith.constant dense<0.000000e+00> : vector<16x32xf32>
    %96 = tpu.matmul %94, %95, %cst_35 {dimension_numbers = #tpu.dot_dimension_numbers<[1], [0], [0], [1], [0, 0, 1, 1], [], []>} : vector<16x128xbf16>, vector<128x32xbf16>, vector<16x32xf32> -> vector<16x32xf32>
    %97 = vector.extract_strided_slice %32 {offsets = [0, 64], sizes = [16, 32], strides = [1, 1]} : vector<16x128xf32> to vector<16x32xf32>
    %98 = arith.mulf %97, %33 : vector<16x32xf32>
    %99 = vector.extract_strided_slice %97 {offsets = [0, 16], sizes = [16, 16], strides = [1, 1]} : vector<16x32xf32> to vector<16x16xf32>
    %cst_36 = arith.constant 0.000000e+00 : f32
    %100 = vector.broadcast %cst_36 : f32 to vector<16x16xf32>
    %101 = arith.subf %100, %99 : vector<16x16xf32>
    %102 = vector.extract_strided_slice %97 {offsets = [0, 0], sizes = [16, 16], strides = [1, 1]} : vector<16x32xf32> to vector<16x16xf32>
    %103 = tpu.concatenate %101, %102 in 1 : vector<16x16xf32>, vector<16x16xf32> -> vector<16x32xf32>
    %104 = arith.mulf %103, %34 : vector<16x32xf32>
    %105 = arith.addf %98, %104 : vector<16x32xf32>
    %106 = arith.truncf %105 : vector<16x32xf32> to vector<16x32xbf16>
    %107 = vector.extract_strided_slice %35 {offsets = [0, 64], sizes = [128, 32], strides = [1, 1]} : vector<128x128xbf16> to vector<128x32xbf16>
    %cst_37 = arith.constant dense<0.000000e+00> : vector<16x128xf32>
    %108 = tpu.matmul %106, %107, %cst_37 {dimension_numbers = #tpu.dot_dimension_numbers<[1], [1], [0], [0], [0, 0, 1, 0], [], []>} : vector<16x32xbf16>, vector<128x32xbf16>, vector<16x128xf32> -> vector<16x128xf32>
    %109 = vector.broadcast %42 : vector<1x128xf32> to vector<16x128xf32>
    %110 = arith.addf %108, %109 : vector<16x128xf32>
    %cst_38 = arith.constant dense<0xFF800000> : vector<16xf32>
    %111 = vector.multi_reduction <maximumf>, %110, %cst_38 [1] : vector<16x128xf32> to vector<16xf32>
    %112 = vector.shape_cast %111 : vector<16xf32> to vector<16x1xf32>
    %113 = vector.broadcast %112 : vector<16x1xf32> to vector<16x128xf32>
    %114 = arith.subf %110, %113 : vector<16x128xf32>
    %115 = math.exp %114 : vector<16x128xf32>
    %cst_39 = arith.constant dense<0.000000e+00> : vector<16xf32>
    %116 = vector.multi_reduction <add>, %115, %cst_39 [1] : vector<16x128xf32> to vector<16xf32>
    %117 = vector.shape_cast %116 : vector<16xf32> to vector<16x1xf32>
    %118 = tpu.reciprocal %117 {approx = true} : vector<16x1xf32> -> vector<16x1xf32>
    %119 = vector.broadcast %118 : vector<16x1xf32> to vector<16x128xf32>
    %120 = arith.mulf %115, %119 : vector<16x128xf32>
    %121 = arith.truncf %120 : vector<16x128xf32> to vector<16x128xbf16>
    %122 = vector.extract_strided_slice %36 {offsets = [0, 64], sizes = [128, 32], strides = [1, 1]} : vector<128x128xbf16> to vector<128x32xbf16>
    %cst_40 = arith.constant dense<0.000000e+00> : vector<16x32xf32>
    %123 = tpu.matmul %121, %122, %cst_40 {dimension_numbers = #tpu.dot_dimension_numbers<[1], [0], [0], [1], [0, 0, 1, 1], [], []>} : vector<16x128xbf16>, vector<128x32xbf16>, vector<16x32xf32> -> vector<16x32xf32>
    %124 = vector.extract_strided_slice %32 {offsets = [0, 96], sizes = [16, 32], strides = [1, 1]} : vector<16x128xf32> to vector<16x32xf32>
    %125 = arith.mulf %124, %33 : vector<16x32xf32>
    %126 = vector.extract_strided_slice %124 {offsets = [0, 16], sizes = [16, 16], strides = [1, 1]} : vector<16x32xf32> to vector<16x16xf32>
    %cst_41 = arith.constant 0.000000e+00 : f32
    %127 = vector.broadcast %cst_41 : f32 to vector<16x16xf32>
    %128 = arith.subf %127, %126 : vector<16x16xf32>
    %129 = vector.extract_strided_slice %124 {offsets = [0, 0], sizes = [16, 16], strides = [1, 1]} : vector<16x32xf32> to vector<16x16xf32>
    %130 = tpu.concatenate %128, %129 in 1 : vector<16x16xf32>, vector<16x16xf32> -> vector<16x32xf32>
    %131 = arith.mulf %130, %34 : vector<16x32xf32>
    %132 = arith.addf %125, %131 : vector<16x32xf32>
    %133 = arith.truncf %132 : vector<16x32xf32> to vector<16x32xbf16>
    %134 = vector.extract_strided_slice %35 {offsets = [0, 96], sizes = [128, 32], strides = [1, 1]} : vector<128x128xbf16> to vector<128x32xbf16>
    %cst_42 = arith.constant dense<0.000000e+00> : vector<16x128xf32>
    %135 = tpu.matmul %133, %134, %cst_42 {dimension_numbers = #tpu.dot_dimension_numbers<[1], [1], [0], [0], [0, 0, 1, 0], [], []>} : vector<16x32xbf16>, vector<128x32xbf16>, vector<16x128xf32> -> vector<16x128xf32>
    %136 = vector.broadcast %42 : vector<1x128xf32> to vector<16x128xf32>
    %137 = arith.addf %135, %136 : vector<16x128xf32>
    %cst_43 = arith.constant dense<0xFF800000> : vector<16xf32>
    %138 = vector.multi_reduction <maximumf>, %137, %cst_43 [1] : vector<16x128xf32> to vector<16xf32>
    %139 = vector.shape_cast %138 : vector<16xf32> to vector<16x1xf32>
    %140 = vector.broadcast %139 : vector<16x1xf32> to vector<16x128xf32>
    %141 = arith.subf %137, %140 : vector<16x128xf32>
    %142 = math.exp %141 : vector<16x128xf32>
    %cst_44 = arith.constant dense<0.000000e+00> : vector<16xf32>
    %143 = vector.multi_reduction <add>, %142, %cst_44 [1] : vector<16x128xf32> to vector<16xf32>
    %144 = vector.shape_cast %143 : vector<16xf32> to vector<16x1xf32>
    %145 = tpu.reciprocal %144 {approx = true} : vector<16x1xf32> -> vector<16x1xf32>
    %146 = vector.broadcast %145 : vector<16x1xf32> to vector<16x128xf32>
    %147 = arith.mulf %142, %146 : vector<16x128xf32>
    %148 = arith.truncf %147 : vector<16x128xf32> to vector<16x128xbf16>
    %149 = vector.extract_strided_slice %36 {offsets = [0, 96], sizes = [128, 32], strides = [1, 1]} : vector<128x128xbf16> to vector<128x32xbf16>
    %cst_45 = arith.constant dense<0.000000e+00> : vector<16x32xf32>
    %150 = tpu.matmul %148, %149, %cst_45 {dimension_numbers = #tpu.dot_dimension_numbers<[1], [0], [0], [1], [0, 0, 1, 1], [], []>} : vector<16x128xbf16>, vector<128x32xbf16>, vector<16x32xf32> -> vector<16x32xf32>
    %151 = tpu.concatenate %69, %96, %123, %150 in 1 : vector<16x32xf32>, vector<16x32xf32>, vector<16x32xf32>, vector<16x32xf32> -> vector<16x128xf32>
    %152 = arith.truncf %151 : vector<16x128xf32> to vector<16x128xbf16>
    %c0_46 = arith.constant 0 : index
    %c0_47 = arith.constant 0 : index
    %153 = vector.load %arg12[%c0_46, %c0_47] : memref<128x128xbf16, #tpu.memory_space<vmem>>, vector<128x128xbf16>
    %cst_48 = arith.constant dense<0.000000e+00> : vector<16x128xf32>
    %154 = tpu.matmul %152, %153, %cst_48 {dimension_numbers = #tpu.dot_dimension_numbers<[1], [0], [0], [1], [0, 0, 1, 1], [], []>} : vector<16x128xbf16>, vector<128x128xbf16>, vector<16x128xf32> -> vector<16x128xf32>
    %c0_49 = arith.constant 0 : index
    %c0_50 = arith.constant 0 : index
    %155 = vector.load %arg13[%c0_49, %c0_50] : memref<1x128xf32, #tpu.memory_space<vmem>>, vector<1x128xf32>
    %156 = vector.broadcast %155 : vector<1x128xf32> to vector<16x128xf32>
    %157 = arith.addf %154, %156 : vector<16x128xf32>
    %158 = arith.addf %157, %4 : vector<16x128xf32>
    %c0_51 = arith.constant 0 : index
    %c0_52 = arith.constant 0 : index
    %c0_53 = arith.constant 0 : index
    %159 = vector.load %arg18[%c0_51, %c0_52, %c0_53] : memref<1x16x128xf32, #tpu.memory_space<vmem>>, vector<1x16x128xf32>
    %160 = vector.shape_cast %159 : vector<1x16x128xf32> to vector<16x128xf32>
    %161 = vector.shape_cast %158 : vector<16x128xf32> to vector<1x16x128xf32>
    tpu.vector_store %arg18[%c0_51, %c0_52, %c0_53], %161 {strides = array<i32>} : memref<1x16x128xf32, #tpu.memory_space<vmem>>, vector<1x16x128xf32>,
    return
  }
  func.func @transform_0(%arg0: i32, %arg1: i32) -> (i32, i32, i32) {
    %c0_i32 = arith.constant 0 : i32
    %c0_i32_0 = arith.constant 0 : i32
    return %arg0, %arg1, %c0_i32 : i32, i32, i32
  }
  func.func @transform_1(%arg0: i32, %arg1: i32) -> (i32, i32, i32) {
    %c0_i32 = arith.constant 0 : i32
    %c0_i32_0 = arith.constant 0 : i32
    %c0_i32_1 = arith.constant 0 : i32
    return %arg0, %c0_i32, %c0_i32_0 : i32, i32, i32
  }
  func.func @transform_2(%arg0: i32, %arg1: i32) -> (i32, i32) {
    %c0_i32 = arith.constant 0 : i32
    %c0_i32_0 = arith.constant 0 : i32
    %c0_i32_1 = arith.constant 0 : i32
    return %c0_i32, %c0_i32_0 : i32, i32
  }
  func.func @transform_3(%arg0: i32, %arg1: i32) -> (i32, i32) {
    %c0_i32 = arith.constant 0 : i32
    %c0_i32_0 = arith.constant 0 : i32
    %c0_i32_1 = arith.constant 0 : i32
    return %c0_i32, %c0_i32_0 : i32, i32
  }
  func.func @transform_4(%arg0: i32, %arg1: i32) -> (i32, i32) {
    %c0_i32 = arith.constant 0 : i32
    %c0_i32_0 = arith.constant 0 : i32
    %c0_i32_1 = arith.constant 0 : i32
    return %c0_i32, %c0_i32_0 : i32, i32
  }
  func.func @transform_5(%arg0: i32, %arg1: i32) -> (i32, i32) {
    %c0_i32 = arith.constant 0 : i32
    %c0_i32_0 = arith.constant 0 : i32
    %c0_i32_1 = arith.constant 0 : i32
    return %c0_i32, %c0_i32_0 : i32, i32
  }
  func.func @transform_6(%arg0: i32, %arg1: i32) -> (i32, i32) {
    %c0_i32 = arith.constant 0 : i32
    %c0_i32_0 = arith.constant 0 : i32
    %c0_i32_1 = arith.constant 0 : i32
    return %c0_i32, %c0_i32_0 : i32, i32
  }
  func.func @transform_7(%arg0: i32, %arg1: i32) -> (i32, i32) {
    %c0_i32 = arith.constant 0 : i32
    %c0_i32_0 = arith.constant 0 : i32
    %c0_i32_1 = arith.constant 0 : i32
    return %c0_i32, %c0_i32_0 : i32, i32
  }
  func.func @transform_8(%arg0: i32, %arg1: i32) -> (i32, i32) {
    %c0_i32 = arith.constant 0 : i32
    %c0_i32_0 = arith.constant 0 : i32
    %c0_i32_1 = arith.constant 0 : i32
    return %c0_i32, %c0_i32_0 : i32, i32
  }
  func.func @transform_9(%arg0: i32, %arg1: i32) -> (i32, i32) {
    %c0_i32 = arith.constant 0 : i32
    %c0_i32_0 = arith.constant 0 : i32
    %c0_i32_1 = arith.constant 0 : i32
    return %c0_i32, %c0_i32_0 : i32, i32
  }
  func.func @transform_10(%arg0: i32, %arg1: i32) -> (i32, i32) {
    %c0_i32 = arith.constant 0 : i32
    %c0_i32_0 = arith.constant 0 : i32
    %c0_i32_1 = arith.constant 0 : i32
    return %c0_i32, %c0_i32_0 : i32, i32
  }
  func.func @transform_11(%arg0: i32, %arg1: i32) -> (i32, i32) {
    %c0_i32 = arith.constant 0 : i32
    %c0_i32_0 = arith.constant 0 : i32
    %c0_i32_1 = arith.constant 0 : i32
    return %c0_i32, %c0_i32_0 : i32, i32
  }
  func.func @transform_12(%arg0: i32, %arg1: i32) -> (i32, i32) {
    %c0_i32 = arith.constant 0 : i32
    %c0_i32_0 = arith.constant 0 : i32
    return %arg1, %c0_i32 : i32, i32
  }
  func.func @transform_13(%arg0: i32, %arg1: i32) -> (i32, i32) {
    %c0_i32 = arith.constant 0 : i32
    %c0_i32_0 = arith.constant 0 : i32
    return %arg1, %c0_i32 : i32, i32
  }
  func.func @transform_14(%arg0: i32, %arg1: i32) -> (i32, i32) {
    %c0_i32 = arith.constant 0 : i32
    %c0_i32_0 = arith.constant 0 : i32
    %c0_i32_1 = arith.constant 0 : i32
    return %c0_i32, %c0_i32_0 : i32, i32
  }
  func.func @transform_15(%arg0: i32, %arg1: i32) -> (i32, i32) {
    %c0_i32 = arith.constant 0 : i32
    %c0_i32_0 = arith.constant 0 : i32
    %c0_i32_1 = arith.constant 0 : i32
    return %c0_i32, %c0_i32_0 : i32, i32
  }
  func.func @transform_16(%arg0: i32, %arg1: i32) -> (i32, i32, i32) {
    %c0_i32 = arith.constant 0 : i32
    %c0_i32_0 = arith.constant 0 : i32
    return %arg0, %arg1, %c0_i32 : i32, i32, i32
  }
}

module attributes {stable_mosaic.version = 11 : i64} {
  func.func @_ffn_add_kernel(%arg0: i32, %arg1: i32, %arg2: memref<32x128xf32, #tpu.memory_space<vmem>>, %arg3: memref<32x128xf32, #tpu.memory_space<vmem>>, %arg4: memref<1x128xf32, #tpu.memory_space<vmem>>, %arg5: memref<1x128xf32, #tpu.memory_space<vmem>>, %arg6: memref<128x64xbf16, #tpu.memory_space<vmem>>, %arg7: memref<1x64xf32, #tpu.memory_space<vmem>>, %arg8: memref<64x128xbf16, #tpu.memory_space<vmem>>, %arg9: memref<1x128xf32, #tpu.memory_space<vmem>>, %arg10: memref<32x128xf32, #tpu.memory_space<vmem>>, %arg11: memref<32x128xbf16, #tpu.memory_space<vmem>>, %arg12: memref<32x128xf32, #tpu.memory_space<vmem>>) attributes {dimension_semantics = [#tpu.dimension_semantics<parallel>, #tpu.dimension_semantics<arbitrary>], iteration_bounds = array<i64: 1, 1>, scalar_prefetch = 0 : i64, scratch_operands = 2 : i64, tpu.core_type = #tpu.core_type<tc>, window_params = [{transform_indices = @transform_0, window_bounds = array<i64: 32, 128>}, {transform_indices = @transform_1, window_bounds = array<i64: 32, 128>}, {pipeline_mode = #tpu.pipeline_mode<synchronous>, transform_indices = @transform_2, window_bounds = array<i64: 1, 128>}, {pipeline_mode = #tpu.pipeline_mode<synchronous>, transform_indices = @transform_3, window_bounds = array<i64: 1, 128>}, {transform_indices = @transform_4, window_bounds = array<i64: 128, 64>}, {transform_indices = @transform_5, window_bounds = array<i64: 1, 64>}, {transform_indices = @transform_6, window_bounds = array<i64: 64, 128>}, {pipeline_mode = #tpu.pipeline_mode<synchronous>, transform_indices = @transform_7, window_bounds = array<i64: 1, 128>}, {transform_indices = @transform_8, window_bounds = array<i64: 32, 128>}]} {
    %c0_i32 = arith.constant 0 : i32
    %0 = arith.cmpi eq, %arg1, %c0_i32 : i32
    %1 = arith.extui %0 : i1 to i32
    %c0_i32_0 = arith.constant 0 : i32
    %2 = arith.cmpi ne, %1, %c0_i32_0 : i32
    scf.if %2 {
      %c0_18 = arith.constant 0 : index
      %c0_19 = arith.constant 0 : index
      %26 = vector.load %arg3[%c0_18, %c0_19] : memref<32x128xf32, #tpu.memory_space<vmem>>, vector<32x128xf32>
      %c0_20 = arith.constant 0 : index
      %c0_21 = arith.constant 0 : index
      %27 = vector.load %arg4[%c0_20, %c0_21] : memref<1x128xf32, #tpu.memory_space<vmem>>, vector<1x128xf32>
      %c0_22 = arith.constant 0 : index
      %c0_23 = arith.constant 0 : index
      %28 = vector.load %arg5[%c0_22, %c0_23] : memref<1x128xf32, #tpu.memory_space<vmem>>, vector<1x128xf32>
      %cst_24 = arith.constant dense<0.000000e+00> : vector<32xf32>
      %29 = vector.multi_reduction <add>, %26, %cst_24 [1] : vector<32x128xf32> to vector<32xf32>
      %30 = vector.shape_cast %29 : vector<32xf32> to vector<32x1xf32>
      %cst_25 = arith.constant 1.280000e+02 : f32
      %31 = vector.broadcast %cst_25 : f32 to vector<32x1xf32>
      %32 = arith.divf %30, %31 : vector<32x1xf32>
      %33 = vector.broadcast %32 : vector<32x1xf32> to vector<32x128xf32>
      %34 = arith.subf %26, %33 : vector<32x128xf32>
      %35 = arith.mulf %34, %34 : vector<32x128xf32>
      %cst_26 = arith.constant dense<0.000000e+00> : vector<32xf32>
      %36 = vector.multi_reduction <add>, %35, %cst_26 [1] : vector<32x128xf32> to vector<32xf32>
      %37 = vector.shape_cast %36 : vector<32xf32> to vector<32x1xf32>
      %cst_27 = arith.constant 1.280000e+02 : f32
      %38 = vector.broadcast %cst_27 : f32 to vector<32x1xf32>
      %39 = arith.divf %37, %38 : vector<32x1xf32>
      %cst_28 = arith.constant 9.99999974E-6 : f32
      %40 = vector.broadcast %cst_28 : f32 to vector<32x1xf32>
      %41 = arith.addf %39, %40 : vector<32x1xf32>
      %42 = math.rsqrt %41 : vector<32x1xf32>
      %43 = vector.broadcast %42 : vector<32x1xf32> to vector<32x128xf32>
      %44 = arith.mulf %34, %43 : vector<32x128xf32>
      %45 = vector.broadcast %27 : vector<1x128xf32> to vector<32x128xf32>
      %46 = arith.mulf %44, %45 : vector<32x128xf32>
      %47 = vector.broadcast %28 : vector<1x128xf32> to vector<32x128xf32>
      %48 = arith.addf %46, %47 : vector<32x128xf32>
      %49 = arith.truncf %48 : vector<32x128xf32> to vector<32x128xbf16>
      %c0_29 = arith.constant 0 : index
      %c0_30 = arith.constant 0 : index
      %50 = vector.load %arg11[%c0_29, %c0_30] : memref<32x128xbf16, #tpu.memory_space<vmem>>, vector<32x128xbf16>
      tpu.vector_store %arg11[%c0_29, %c0_30], %49 {strides = array<i32>} : memref<32x128xbf16, #tpu.memory_space<vmem>>, vector<32x128xbf16>,
      %cst_31 = arith.constant 0.000000e+00 : f32
      %51 = vector.broadcast %cst_31 : f32 to vector<32x128xf32>
      %c0_32 = arith.constant 0 : index
      %c0_33 = arith.constant 0 : index
      %52 = vector.load %arg12[%c0_32, %c0_33] : memref<32x128xf32, #tpu.memory_space<vmem>>, vector<32x128xf32>
      tpu.vector_store %arg12[%c0_32, %c0_33], %51 {strides = array<i32>} : memref<32x128xf32, #tpu.memory_space<vmem>>, vector<32x128xf32>,
    } else {
    }
    %c0 = arith.constant 0 : index
    %c0_1 = arith.constant 0 : index
    %3 = vector.load %arg11[%c0, %c0_1] : memref<32x128xbf16, #tpu.memory_space<vmem>>, vector<32x128xbf16>
    %c0_2 = arith.constant 0 : index
    %c0_3 = arith.constant 0 : index
    %4 = vector.load %arg6[%c0_2, %c0_3] : memref<128x64xbf16, #tpu.memory_space<vmem>>, vector<128x64xbf16>
    %cst = arith.constant dense<0.000000e+00> : vector<32x64xf32>
    %5 = tpu.matmul %3, %4, %cst {dimension_numbers = #tpu.dot_dimension_numbers<[1], [0], [0], [1], [0, 0, 1, 1], [], []>} : vector<32x128xbf16>, vector<128x64xbf16>, vector<32x64xf32> -> vector<32x64xf32>
    %c0_4 = arith.constant 0 : index
    %c0_5 = arith.constant 0 : index
    %6 = vector.load %arg7[%c0_4, %c0_5] : memref<1x64xf32, #tpu.memory_space<vmem>>, vector<1x64xf32>
    %7 = vector.broadcast %6 : vector<1x64xf32> to vector<32x64xf32>
    %8 = arith.addf %5, %7 : vector<32x64xf32>
    %cst_6 = arith.constant 5.000000e-01 : f32
    %9 = vector.broadcast %cst_6 : f32 to vector<32x64xf32>
    %10 = arith.mulf %9, %8 : vector<32x64xf32>
    %cst_7 = arith.constant 0.707106769 : f32
    %11 = vector.broadcast %cst_7 : f32 to vector<32x64xf32>
    %12 = arith.mulf %8, %11 : vector<32x64xf32>
    %13 = math.erf %12 : vector<32x64xf32>
    %cst_8 = arith.constant 1.000000e+00 : f32
    %14 = vector.broadcast %cst_8 : f32 to vector<32x64xf32>
    %15 = arith.addf %14, %13 : vector<32x64xf32>
    %16 = arith.mulf %10, %15 : vector<32x64xf32>
    %17 = arith.truncf %16 : vector<32x64xf32> to vector<32x64xbf16>
    %c0_9 = arith.constant 0 : index
    %c0_10 = arith.constant 0 : index
    %18 = vector.load %arg12[%c0_9, %c0_10] : memref<32x128xf32, #tpu.memory_space<vmem>>, vector<32x128xf32>
    %c0_11 = arith.constant 0 : index
    %c0_12 = arith.constant 0 : index
    %19 = vector.load %arg8[%c0_11, %c0_12] : memref<64x128xbf16, #tpu.memory_space<vmem>>, vector<64x128xbf16>
    %cst_13 = arith.constant dense<0.000000e+00> : vector<32x128xf32>
    %20 = tpu.matmul %17, %19, %cst_13 {dimension_numbers = #tpu.dot_dimension_numbers<[1], [0], [0], [1], [0, 0, 1, 1], [], []>} : vector<32x64xbf16>, vector<64x128xbf16>, vector<32x128xf32> -> vector<32x128xf32>
    %21 = arith.addf %18, %20 : vector<32x128xf32>
    %c0_14 = arith.constant 0 : index
    %c0_15 = arith.constant 0 : index
    %22 = vector.load %arg12[%c0_14, %c0_15] : memref<32x128xf32, #tpu.memory_space<vmem>>, vector<32x128xf32>
    tpu.vector_store %arg12[%c0_14, %c0_15], %21 {strides = array<i32>} : memref<32x128xf32, #tpu.memory_space<vmem>>, vector<32x128xf32>,
    %c0_i32_16 = arith.constant 0 : i32
    %23 = arith.cmpi eq, %arg1, %c0_i32_16 : i32
    %24 = arith.extui %23 : i1 to i32
    %c0_i32_17 = arith.constant 0 : i32
    %25 = arith.cmpi ne, %24, %c0_i32_17 : i32
    scf.if %25 {
      %c0_18 = arith.constant 0 : index
      %c0_19 = arith.constant 0 : index
      %26 = vector.load %arg2[%c0_18, %c0_19] : memref<32x128xf32, #tpu.memory_space<vmem>>, vector<32x128xf32>
      %c0_20 = arith.constant 0 : index
      %c0_21 = arith.constant 0 : index
      %27 = vector.load %arg3[%c0_20, %c0_21] : memref<32x128xf32, #tpu.memory_space<vmem>>, vector<32x128xf32>
      %28 = arith.addf %26, %27 : vector<32x128xf32>
      %c0_22 = arith.constant 0 : index
      %c0_23 = arith.constant 0 : index
      %29 = vector.load %arg12[%c0_22, %c0_23] : memref<32x128xf32, #tpu.memory_space<vmem>>, vector<32x128xf32>
      %30 = arith.addf %28, %29 : vector<32x128xf32>
      %c0_24 = arith.constant 0 : index
      %c0_25 = arith.constant 0 : index
      %31 = vector.load %arg9[%c0_24, %c0_25] : memref<1x128xf32, #tpu.memory_space<vmem>>, vector<1x128xf32>
      %32 = vector.broadcast %31 : vector<1x128xf32> to vector<32x128xf32>
      %33 = arith.addf %30, %32 : vector<32x128xf32>
      %c0_26 = arith.constant 0 : index
      %c0_27 = arith.constant 0 : index
      %34 = vector.load %arg10[%c0_26, %c0_27] : memref<32x128xf32, #tpu.memory_space<vmem>>, vector<32x128xf32>
      tpu.vector_store %arg10[%c0_26, %c0_27], %33 {strides = array<i32>} : memref<32x128xf32, #tpu.memory_space<vmem>>, vector<32x128xf32>,
    } else {
    }
    return
  }
  func.func @transform_0(%arg0: i32, %arg1: i32) -> (i32, i32) {
    %c0_i32 = arith.constant 0 : i32
    %c0_i32_0 = arith.constant 0 : i32
    return %arg0, %c0_i32 : i32, i32
  }
  func.func @transform_1(%arg0: i32, %arg1: i32) -> (i32, i32) {
    %c0_i32 = arith.constant 0 : i32
    %c0_i32_0 = arith.constant 0 : i32
    return %arg0, %c0_i32 : i32, i32
  }
  func.func @transform_2(%arg0: i32, %arg1: i32) -> (i32, i32) {
    %c0_i32 = arith.constant 0 : i32
    %c0_i32_0 = arith.constant 0 : i32
    %c0_i32_1 = arith.constant 0 : i32
    return %c0_i32, %c0_i32_0 : i32, i32
  }
  func.func @transform_3(%arg0: i32, %arg1: i32) -> (i32, i32) {
    %c0_i32 = arith.constant 0 : i32
    %c0_i32_0 = arith.constant 0 : i32
    %c0_i32_1 = arith.constant 0 : i32
    return %c0_i32, %c0_i32_0 : i32, i32
  }
  func.func @transform_4(%arg0: i32, %arg1: i32) -> (i32, i32) {
    %c0_i32 = arith.constant 0 : i32
    %c0_i32_0 = arith.constant 0 : i32
    return %c0_i32, %arg1 : i32, i32
  }
  func.func @transform_5(%arg0: i32, %arg1: i32) -> (i32, i32) {
    %c0_i32 = arith.constant 0 : i32
    %c0_i32_0 = arith.constant 0 : i32
    return %c0_i32, %arg1 : i32, i32
  }
  func.func @transform_6(%arg0: i32, %arg1: i32) -> (i32, i32) {
    %c0_i32 = arith.constant 0 : i32
    %c0_i32_0 = arith.constant 0 : i32
    return %arg1, %c0_i32 : i32, i32
  }
  func.func @transform_7(%arg0: i32, %arg1: i32) -> (i32, i32) {
    %c0_i32 = arith.constant 0 : i32
    %c0_i32_0 = arith.constant 0 : i32
    %c0_i32_1 = arith.constant 0 : i32
    return %c0_i32, %c0_i32_0 : i32, i32
  }
  func.func @transform_8(%arg0: i32, %arg1: i32) -> (i32, i32) {
    %c0_i32 = arith.constant 0 : i32
    %c0_i32_0 = arith.constant 0 : i32
    return %arg0, %c0_i32 : i32, i32
  }
}

</mosaic_0001>

<bundles_post_ra>
// kernel: transformer_layer_with_structural_adapter.7
= control target key start
LH: loop header
LB: loop body
LE: loop exit
PB: predicated region body
PF: predicated region fallthrough
CT: control target
= control target key end

     0   :  { %vm293_vm0 = vcmask 523264   ;;  %s642_s1 = inlined_call_operand.vmem [shape: f32[32,128], index: 1, kind: input, shape index: {}]   ;;  %s643_s4 = inlined_call_operand.vmem [shape: bf16[128,64], index: 4, kind: input, shape index: {}]   ;;  %s644_s2 = inlined_call_operand.vmem [shape: f32[1,128], index: 2, kind: input, shape index: {}]   ;;  %s645_s3 = inlined_call_operand.vmem [shape: f32[1,128], index: 3, kind: input, shape index: {}]   ;;  %s646_s6 = inlined_call_operand.vmem [shape: bf16[64,128], index: 6, kind: input, shape index: {}]   ;;  %s647_s5 = inlined_call_operand.vmem [shape: f32[1,64], index: 5, kind: input, shape index: {}]   ;;  %s648_s0 = inlined_call_operand.vmem [shape: f32[32,128], index: 0, kind: input, shape index: {}]   ;;  %s649_s7 = inlined_call_operand.vmem [shape: f32[1,128], index: 7, kind: input, shape index: {}]   ;;  %s650_s8 = inlined_call_operand.vmem [shape: f32[32,128], index: 8, kind: output, shape index: {}]  }
   0x1   :  { %v541_v0 = vld [vmem:[%s642_s1] sm:$0xff]  ;;  %v546_v1 = vld [vmem:[%s642_s1 + $0x10] sm:$0xff]  ;;  %v553_v2 = vld [vmem:[%s642_s1 + $0x8] sm:$0xff] }
   0x2   :  { %40 = vadd.xlane.f32.xlu0 %v541_v0  ;;  %44 = vadd.xlane.f32.xlu1 %v546_v1  ;;  %v558_v3 = vld [vmem:[%s642_s1 + $0x18] sm:$0xff]  ;;  %v465_v4 = vld [vmem:[%s643_s4] sm:$0xff]   ;;  %v466_v21 = vld [vmem:[%s643_s4 + $0x8] sm:$0xff]  }
   0x3   :  { %433 = vmatprep.subr.bf16.mxu0 %v465_v4  ;;  %v467_v22 = vld [vmem:[%s643_s4 + $0x10] sm:$0xff]   ;;  %v468_v23 = vld [vmem:[%s643_s4 + $0x18] sm:$0xff]   ;;  %v469_v24 = vld [vmem:[%s643_s4 + $0x20] sm:$0xff]  }
   0x4   :  { %434 = vmatpush3.bf16.msra.mxu0 %v465_v4  ;;  %v470_v25 = vld [vmem:[%s643_s4 + $0x28] sm:$0xff]   ;;  %v471_v26 = vld [vmem:[%s643_s4 + $0x30] sm:$0xff]   ;;  %v472_v27 = vld [vmem:[%s643_s4 + $0x38] sm:$0xff]  }
   0x5   :  { %435 = vmatprep.subr.bf16.mxu0 %v466_v21  ;;  %v399_v42 = vld [vmem:[%s644_s2] ss:$0 sm:$0xff]  ;;  %v474_v61 = vld [vmem:[%s646_s6 + $0x8] sm:$0xff]   ;;  %v475_v62 = vld [vmem:[%s646_s6 + $0x10] sm:$0xff]  }
   0x6   :  { %42 = vadd.xlane.f32.xlu0 %v553_v2  ;;  %46 = vadd.xlane.f32.xlu1 %v558_v3  ;;  %v400_v47 = vld [vmem:[%s645_s3] ss:$0 sm:$0xff]  ;;  %v476_v63 = vld [vmem:[%s646_s6 + $0x18] sm:$0xff]  }
   0x7   :  { %v473_v60 = vld [vmem:[%s646_s6] sm:$0xff]  }
   0x8   :  { %436 = vmatpush3.bf16.msra.mxu0 %v466_v21  ;;  %453 = vmatprep.subr.bf16.mxu1 %v473_v60  ;;  %v401_v4 = vld [vmem:[%s647_s5] ss:$0 sm:$0xff] }
   0x9   :  { %437 = vmatprep.subr.bf16.mxu0 %v467_v22  ;;  %454 = vmatpush3.bf16.msra.mxu1 %v473_v60 }
   0xa   :  { %455 = vmatprep.subr.bf16.mxu1 %v474_v61 }
   0xc   :  { %438 = vmatpush3.bf16.msra.mxu0 %v467_v22 }
   0xd   :  { %439 = vmatprep.subr.bf16.mxu0 %v468_v23  ;;  %456 = vmatpush3.bf16.msra.mxu1 %v474_v61 }
   0xe   :  { %457 = vmatprep.subr.bf16.mxu1 %v475_v62 }
  0x10   :  { %440 = vmatpush3.bf16.msra.mxu0 %v468_v23 }
  0x11   :  { %441 = vmatprep.subr.bf16.mxu0 %v469_v24  ;;  %458 = vmatpush3.bf16.msra.mxu1 %v475_v62 }
  0x12   :  { %459 = vmatprep.subr.bf16.mxu1 %v476_v63 }
  0x14   :  { %442 = vmatpush3.bf16.msra.mxu0 %v469_v24 }
  0x15   :  { %443 = vmatprep.subr.bf16.mxu0 %v470_v25  ;;  %460 = vmatpush3.bf16.msra.mxu1 %v476_v63 }
  0x18   :  { %444 = vmatpush3.bf16.msra.mxu0 %v470_v25 }
  0x19   :  { %445 = vmatprep.subr.bf16.mxu0 %v471_v26 }
  0x1c   :  { %446 = vmatpush3.bf16.msra.mxu0 %v471_v26 }
  0x1d   :  { %447 = vmatprep.subr.bf16.mxu0 %v472_v27 }
  0x20   :  { %448 = vmatpush3.bf16.msra.mxu0 %v472_v27 }
  0x8f   :  { %v41_v5 = vpop.xlane.xlu0 %40  ;;  %v45_v6 = vpop.xlane.xlu1 %44 }
  0x90   :  { %v49_v7 = vmul.f32 0.0078125, %v41_v5  ;;  %v51_v8 = vmul.f32 0.0078125, %v45_v6 }
  0x92   :  { %v53_v9 = vsub.f32 %v541_v0, %v49_v7  ;;  %v55_v10 = vsub.f32 %v546_v1, %v51_v8 }
  0x93   :  { %v43_v11 = vpop.xlane.xlu0 %42  ;;  %v47_v12 = vpop.xlane.xlu1 %46 }
  0x94   :  { %v50_v13 = vmul.f32 0.0078125, %v43_v11  ;;  %v57_v14 = vmul.f32 %v53_v9, %v53_v9  ;;  %v52_v15 = vmul.f32 0.0078125, %v47_v12  ;;  %v59_v18 = vmul.f32 %v55_v10, %v55_v10 }
  0x96   :  { %v54_v16 = vsub.f32 %v553_v2, %v50_v13  ;;  %61 = vadd.xlane.f32.xlu0 %v57_v14  ;;  %v56_v17 = vsub.f32 %v558_v3, %v52_v15 }
  0x98   :  { %v58_v19 = vmul.f32 %v54_v16, %v54_v16  ;;  %v60_v20 = vmul.f32 %v56_v17, %v56_v17 }
  0x9a   :  { %65 = vadd.xlane.f32.xlu0 %v59_v18  ;;  %63 = vadd.xlane.f32.xlu1 %v58_v19 }
  0x9e   :  { %67 = vadd.xlane.f32.xlu1 %v60_v20 }
 0x123   :  { %v62_v28 = vpop.xlane.xlu0 %61 }
 0x124   :  { %v69_v29 = vmul.f32 0.0078125, %v62_v28 }
 0x126   :  { %v73_v30 = vadd.f32 1e-05, %v69_v29 }
 0x127   :  { %v64_v31 = vpop.xlane.xlu1 %63  ;;  %v66_v32 = vpop.xlane.xlu0 %65 }
 0x128   :  { %477 = vrsqrt.f32 %v73_v30  ;;  %v70_v33 = vmul.f32 0.0078125, %v64_v31  ;;  %v71_v34 = vmul.f32 0.0078125, %v66_v32 }
 0x12a   :  { %v74_v35 = vadd.f32 1e-05, %v70_v33  ;;  %v75_v36 = vadd.f32 1e-05, %v71_v34 }
 0x12b   :  { %v68_v37 = vpop.xlane.xlu1 %67 }
 0x12c   :  { %479 = vrsqrt.f32 %v74_v35  ;;  %v72_v38 = vmul.f32 0.0078125, %v68_v37  ;;  %v362_v35 = vld [vmem:[%s648_s0 + $0x10] sm:$0xff]  ;;  %v363_v37 = vld [vmem:[%s648_s0 + $0x18] sm:$0xff] }
 0x12d   :  { %481 = vrsqrt.f32 %v75_v36  ;;  %v360_v36 = vld [vmem:[%s648_s0] sm:$0xff] }
 0x12e   :  { %v76_v39 = vadd.f32 1e-05, %v72_v38  ;;  %v370_v38 = vadd.f32 %v362_v35, %v546_v1 }
 0x130   :  { %483 = vrsqrt.f32 %v76_v39  ;;  %v361_v39 = vld [vmem:[%s648_s0 + $0x8] sm:$0xff] }
 0x132   :  { %v478_v40 = vpop.eup %477 }
 0x133   :  { %v81_v41 = vmul.f32 %v478_v40, %v53_v9  ;;  %v368_v40 = vadd.f32 %v360_v36, %v541_v0 }
 0x135   :  { %v91_v46 = vmul.f32 %v399_v42, %v81_v41  ;;  %v371_v41 = vadd.f32 %v363_v37, %v558_v3 }
 0x136   :  { %v480_v43 = vpop.eup %479 }
 0x137   :  { %v482_v44 = vpop.eup %481  ;;  %v82_v45 = vmul.f32 %v480_v43, %v54_v16  ;;  %v101_v51 = vadd.f32 %v400_v47, %v91_v46  ;;  %v416_v43 = vld [vmem:[%s649_s7] ss:$0 sm:$0xff] }
 0x138   :  { %v83_v48 = vmul.f32 %v482_v44, %v55_v10  ;;  %v369_v44 = vadd.f32 %v361_v39, %v553_v2 }
 0x139   :  { %v92_v49 = vmul.f32 %v399_v42, %v82_v45 }
 0x13a   :  { %v484_v50 = vpop.eup %483  ;;  %v93_v54 = vmul.f32 %v399_v42, %v83_v48 }
 0x13b   :  { %v102_v52 = vadd.f32 %v400_v47, %v92_v49  ;;  %v84_v53 = vmul.f32 %v484_v50, %v56_v17 }
 0x13c   :  { %v103_v57 = vadd.f32 %v400_v47, %v93_v54 }
 0x13d   :  { %v105_v55 = vpack.c.bf16 %v102_v52, %v101_v51  ;;  %v94_v56 = vmul.f32 %v399_v42, %v84_v53 }
 0x13f   :  { %449 = vmatprep.mubr.bf16.mxu0 %v105_v55  ;;  %v104_v58 = vadd.f32 %v400_v47, %v94_v56 }
 0x141   :  { %v106_v59 = vpack.c.bf16 %v104_v58, %v103_v57 }
 0x143   :  { %450 = vmatmul.mubr.bf16.vlgmr.msra.gmra.mrb[0].mxu0 %v106_v59 }
 0x216   :  { %v451_v5 = vpop.f32.mrb[0].mxu0 }
 0x217   :  { %v229_v6 = vadd.f32 %v451_v5, %v401_v4  ;;  %v220_v7 = vpop.f32.mrb[1].mxu0 }
 0x218   :  { %v221_v8 = vadd.f32 %v401_v4, %v220_v7  ;;  %v452_v9 = vpop.f32.mrb[2].mxu0 }
 0x219   :  { %v241_v10 = vmul.f32 0.70710677, %v229_v6  ;;  %v232_v11 = vadd.f32 %v452_v9, %v401_v4  ;;  %v223_v12 = vpop.f32.mrb[3].mxu0  ;;  %v237_v23 = vmul.f32 0.5, %v229_v6 }
 0x21a   :  { %v239_v13 = vmul.f32 0.70710677, %v221_v8  ;;  %v224_v14 = vadd.f32 %v401_v4, %v223_v12  ;;  %v235_v26 = vmul.f32 0.5, %v221_v8 }
 0x21b   :  { %485 = verf.f32 %v241_v10  ;;  %v242_v15 = vmul.f32 0.70710677, %v232_v11  ;;  %v238_v24 = vmul.f32 0.5, %v232_v11 }
 0x21c   :  { %487 = verf.f32 %v239_v13  ;;  %v240_v16 = vmul.f32 0.70710677, %v224_v14  ;;  %v236_v27 = vmul.f32 0.5, %v224_v14 }
 0x21d   :  { %489 = verf.f32 %v242_v15 }
 0x21e   :  { %491 = verf.f32 %v240_v16 }
 0x225   :  { %v486_v17 = vpop.eup %485 }
 0x226   :  { %v488_v18 = vpop.eup %487  ;;  %v249_v19 = vadd.f32 1.0, %v486_v17 }
 0x227   :  { %v490_v20 = vpop.eup %489  ;;  %v247_v21 = vadd.f32 1.0, %v488_v18 }
 0x228   :  { %v492_v22 = vpop.eup %491  ;;  %v250_v25 = vadd.f32 1.0, %v490_v20  ;;  %v253_v29 = vmul.f32 %v249_v19, %v237_v23 }
 0x229   :  { %v248_v28 = vadd.f32 1.0, %v492_v22  ;;  %v251_v31 = vmul.f32 %v247_v21, %v235_v26 }
 0x22a   :  { %v254_v30 = vmul.f32 %v250_v25, %v238_v24 }
 0x22b   :  { %v252_v32 = vmul.f32 %v248_v28, %v236_v27 }
 0x22c   :  { %v256_v33 = vpack.c.bf16 %v254_v30, %v253_v29 }
 0x22d   :  { %v255_v34 = vpack.c.bf16 %v252_v32, %v251_v31 }
 0x22f   :  { %461 = vmatprep.mubr.msk.bf16.mxu1 %vm293_vm0, %v255_v34 }
 0x230   :  { %462 = vmatmul.mubr.msk.bf16.vlgmr.msra.gmra.mrb[0].mxu1 %vm293_vm0, %v256_v33 }
 0x303   :  { %v463_v42 = vpop.f32.mrb[0].mxu1 }
 0x304   :  { %v378_v45 = vadd.f32 %v463_v42, %v370_v38  ;;  %v334_v46 = vpop.f32.mrb[1].mxu1 }
 0x305   :  { %v376_v47 = vadd.f32 %v368_v40, %v334_v46  ;;  %v464_v48 = vpop.f32.mrb[2].mxu1 }
 0x306   :  { %v389_v1 = vadd.f32 %v416_v43, %v378_v45  ;;  %v379_v49 = vadd.f32 %v464_v48, %v371_v41  ;;  %v337_v50 = vpop.f32.mrb[3].mxu1 }
 0x307   :  { %v387_v51 = vadd.f32 %v416_v43, %v376_v47  ;;  %v377_v52 = vadd.f32 %v369_v44, %v337_v50 }
 0x308   :  { %393 = vst [vmem:[%s650_s8 + $0x10] sm:$0xff] %v389_v1  ;;  %v390_v0 = vadd.f32 %v416_v43, %v379_v49 }
 0x309   :  { %391 = vst [vmem:[%s650_s8] sm:$0xff] %v387_v51  ;;  %v388_v3 = vadd.f32 %v416_v43, %v377_v52 }
 0x30a   :  { %394 = vst [vmem:[%s650_s8 + $0x18] sm:$0xff] %v390_v0 }
 0x30b   :  { %392 = vst [vmem:[%s650_s8 + $0x8] sm:$0xff] %v388_v3 }

// kernel: transformer_layer_with_structural_adapter.5
= control target key start
LH: loop header
LB: loop body
LE: loop exit
PB: predicated region body
PF: predicated region fallthrough
CT: control target
= control target key end

     0   :  { %s1189_s24 = smov 0   ;;  %s1191_s25 = smov 0   ;;  %s1352_s0 = inlined_call_operand.vmem [shape: f32[32,128], index: 0, kind: input, shape index: {}]   ;;  %s1353_s1 = inlined_call_operand.vmem [shape: f32[1,128], index: 1, kind: input, shape index: {}]   ;;  %s1354_s2 = inlined_call_operand.vmem [shape: f32[1,128], index: 2, kind: input, shape index: {}]   ;;  %s1355_s3 = inlined_call_operand.vmem [shape: bf16[128,256], index: 3, kind: input, shape index: {}]   ;;  %s1356_s4 = inlined_call_operand.vmem [shape: f32[1,256], index: 4, kind: input, shape index: {}]   ;;  %s1357_s5 = inlined_call_operand.vmem [shape: bf16[256,128], index: 5, kind: input, shape index: {}]   ;;  %s1358_s6 = inlined_call_operand.vmem [shape: f32[1,128], index: 6, kind: input, shape index: {}]   ;;  %s1359_s7 = inlined_call_operand.vmem [shape: f32[32,128], index: 7, kind: output, shape index: {}]  }
   0x1   :  { %s1193_s26 = smov 0   ;;  %s1195_s27 = smov 0  }
   0x2   :  { %s1197_s28 = smov 0  }
   0x3 LB: > { %s26_s29 = sadd.s32 1, %s1142_s27  ;;  %p111_p1 = scmp.ne.s32.totalorder %s1134_s25, %s1130_s24  ;;  %s1146_s28 = sphi %s1197_s28, %s17_s28   ;;  %s1142_s27 = sphi %s1195_s27, %s1363_s27   ;;  %s1138_s26 = sphi %s1193_s26, %s1362_s26   ;;  %s1134_s25 = sphi %s1191_s25, %s1361_s25   ;;  %s1130_s24 = sphi %s1189_s24, %s1360_s24  }
   0x4   : > { %p27_p0 = scmp.ge.s32.totalorder %s26_s29, 2  ;;  %p112_p2 = scmp.eq.s32.totalorder %s1146_s28, 0 }
   0x5   : > { %s104_s8 = sadd.s32 1, %s1134_s25  ;;  %p942_p5 = scmp.ge.s32.totalorder %s1146_s28, 2 }
   0x6   : > { %s1365_s29 = smov (%p27_p0, %s26_s29), 0  ;;  %p113_p3 = por %p112_p2, %p111_p1 }
   0x7   : > { %s101_s30 = ssub.s32 %s1142_s27, %s1365_s29  ;;  %254 = sbr.rel (%p942_p5) target bundleno = 28 (0x1c), region = 32 }
   0x8   : > { %p102_p4 = scmp.eq.s32.totalorder %s101_s30, 0 }
   0xa   : > { %s1224_s9 = scalar_select %p102_p4, %s1134_s25, %s104_s8  }
   0xe   : > { %257 = sbr.rel (!%p113_p3) target bundleno = 28 (0x1c), region = 36  ;;  %s259_s10 = sand.u32 (%p113_p3), 1, %s1134_s25  }
   0xf   : > { %s944_s11 = sshll.u32 (%p113_p3), %s1142_s27, 2  ;;  %s943_s12 = sshll.u32 (%p113_p3), %s259_s10, 6 }
  0x10   : > { %s1232_s15 = scalar_lea.vmem (%p113_p3), %s1355_s3, %s944_s11  ;;  %s261_s16 = scalar_lea.vmem (%p113_p3), [#allocation4], %s943_s12 }
  0x11   : > { %v279_v0 = vld [vmem:[%s1232_s15] sm:$0xf] (%p113_p3)  ;;  %v281_v1 = vld [vmem:[%s1232_s15 + $0x8] sm:$0xf] (%p113_p3)  ;;  %v283_v2 = vld [vmem:[%s1232_s15 + $0x10] sm:$0xf] (%p113_p3) }
  0x12   : > { %280 = vst [vmem:[%s261_s16] sm:$0xf] (%p113_p3), %v279_v0  ;;  %282 = vst [vmem:[%s261_s16 + $0x4] sm:$0xf] (%p113_p3), %v281_v1  ;;  %v285_v3 = vld [vmem:[%s1232_s15 + $0x18] sm:$0xf] (%p113_p3) }
  0x13   : > { %v287_v4 = vld [vmem:[%s1232_s15 + $0x20] sm:$0xf] (%p113_p3)  ;;  %284 = vst [vmem:[%s261_s16 + $0x8] sm:$0xf] (%p113_p3), %v283_v2  ;;  %286 = vst [vmem:[%s261_s16 + $0xc] sm:$0xf] (%p113_p3), %v285_v3 }
  0x14   : > { %288 = vst [vmem:[%s261_s16 + $0x10] sm:$0xf] (%p113_p3), %v287_v4  ;;  %v289_v5 = vld [vmem:[%s1232_s15 + $0x28] sm:$0xf] (%p113_p3)  ;;  %v291_v6 = vld [vmem:[%s1232_s15 + $0x30] sm:$0xf] (%p113_p3) }
  0x15   : > { %v293_v7 = vld [vmem:[%s1232_s15 + $0x38] sm:$0xf]  ;;  %290 = vst [vmem:[%s261_s16 + $0x14] sm:$0xf] %v289_v5  ;;  %292 = vst [vmem:[%s261_s16 + $0x18] sm:$0xf] %v291_v6 }
  0x16   : > { %294 = vst [vmem:[%s261_s16 + $0x1c] sm:$0xf] %v293_v7  ;;  %v295_v8 = vld [vmem:[%s1232_s15 + $0x40] sm:$0xf]  ;;  %v297_v9 = vld [vmem:[%s1232_s15 + $0x48] sm:$0xf] }
  0x17   : > { %v299_v10 = vld [vmem:[%s1232_s15 + $0x50] sm:$0xf]  ;;  %296 = vst [vmem:[%s261_s16 + $0x20] sm:$0xf] %v295_v8  ;;  %298 = vst [vmem:[%s261_s16 + $0x24] sm:$0xf] %v297_v9 }
  0x18   : > { %300 = vst [vmem:[%s261_s16 + $0x28] sm:$0xf] %v299_v10  ;;  %v301_v11 = vld [vmem:[%s1232_s15 + $0x58] sm:$0xf]  ;;  %v303_v12 = vld [vmem:[%s1232_s15 + $0x60] sm:$0xf] }
  0x19   : > { %v305_v13 = vld [vmem:[%s1232_s15 + $0x68] sm:$0xf]  ;;  %302 = vst [vmem:[%s261_s16 + $0x2c] sm:$0xf] %v301_v11  ;;  %304 = vst [vmem:[%s261_s16 + $0x30] sm:$0xf] %v303_v12 }
  0x1a   : > { %306 = vst [vmem:[%s261_s16 + $0x34] sm:$0xf] %v305_v13  ;;  %v307_v14 = vld [vmem:[%s1232_s15 + $0x70] sm:$0xf]  ;;  %v309_v15 = vld [vmem:[%s1232_s15 + $0x78] sm:$0xf] }
  0x1b   : > { %308 = vst [vmem:[%s261_s16 + $0x38] sm:$0xf] %v307_v14  ;;  %310 = vst [vmem:[%s261_s16 + $0x3c] sm:$0xf] %v309_v15 }
  0x1c PF: > { %p945_p6 = scmp.ge.s32.totalorder %s1146_s28, 1  ;;  %p379_p7 = scmp.lt.s32.totalorder %s1146_s28, 3 }
  0x1e   : > { %p380_p8 = pnand %p945_p6, %p379_p7 }
  0x1f   : > { %s386_s17 = sand.u32 (!%p380_p8), 1, %s1130_s24   ;;  %p436_p9 = scmp.lt.s32.totalorder (!%p380_p8), %s1138_s26, 1 }
  0x20   : > { %383 = sbr.rel (%p380_p8) target bundleno = 864 (0x360), region = 85  ;;  %s946_s18 = sshll.u32 (!%p380_p8), %s386_s17, 6 }
  0x21   : > { %s947_s19 = sshll.u32 (!%p380_p8), %s1138_s26, 4  ;;  %s1267_s12 = scalar_lea.vmem (!%p380_p8), [#allocation4], %s946_s18 }
  0x22   : > { %p440_p10 = scmp.lt.s32.totalorder (!%p380_p8), %s947_s19, 31  ;;  %p949_p11 = scmp.ne.s32.totalorder (!%p380_p8), %s1138_s26, 0 }
  0x27   : > { %s1256_s20 = scalar_select %p436_p9, %s1138_s26, 1 }
  0x28   : > { %s1367_s19 = smov (!%p440_p10, %s947_s19), 31  ;;  %455 = sbr.rel (%p949_p11) target bundleno = 364 (0x16c), region = 93 }
  0x29   : > { %s438_s23 = scalar_lea.vmem %s1356_s4, %s1256_s20  ;;  %s948_s30 = sshll.u32 %s1367_s19, 2  ;;  %v456_v16 = vld [vmem:[%s1352_s0] sm:$0xff] (!%p949_p11)  ;;  %v458_v17 = vld [vmem:[%s1352_s0 + $0x10] sm:$0xff] (!%p949_p11)  ;;  %v457_v18 = vld [vmem:[%s1352_s0 + $0x8] sm:$0xff] (!%p949_p11)  ;;  %v1148_v36 = vmov (!%p949_p11), 0.0  }
  0x2a   : > { %s1265_s11 = scalar_lea.vmem %s1357_s5, %s948_s30  ;;  %462 = vadd.xlane.f32.xlu0 (!%p949_p11), %v456_v16  ;;  %466 = vadd.xlane.f32.xlu1 (!%p949_p11), %v458_v17  ;;  %v459_v19 = vld [vmem:[%s1352_s0 + $0x18] sm:$0xff] (!%p949_p11)  ;;  %531 = vst [vmem:[#allocation3] sm:$0xff] (!%p949_p11), %v1148_v36  ;;  %532 = vst [vmem:[#allocation3 + $0x8] sm:$0xff] (!%p949_p11), %v1148_v36  ;;  %v950_v51 = vld [vmem:[%s1353_s1] ss:$0 sm:$0xff] (!%p949_p11) }
  0x2b   : > { %533 = vst [vmem:[#allocation3 + $0x10] sm:$0xff] (!%p949_p11), %v1148_v36  ;;  %534 = vst [vmem:[#allocation3 + $0x18] sm:$0xff] (!%p949_p11), %v1148_v36  ;;  %v951_v56 = vld [vmem:[%s1354_s2] ss:$0 sm:$0xff] (!%p949_p11) }
  0x2e   : > { %464 = vadd.xlane.f32.xlu0 (!%p949_p11), %v457_v18  ;;  %468 = vadd.xlane.f32.xlu1 (!%p949_p11), %v459_v19 }
  0xb7   : > { %v463_v20 = vpop.xlane.xlu0 %462  ;;  %v467_v21 = vpop.xlane.xlu1 %466 }
  0xb8   : > { %v471_v22 = vmul.f32 0.0078125, %v463_v20  ;;  %v473_v23 = vmul.f32 0.0078125, %v467_v21 }
  0xba   : > { %v475_v24 = vsub.f32 %v456_v16, %v471_v22  ;;  %v477_v25 = vsub.f32 %v458_v17, %v473_v23 }
  0xbb   : > { %v465_v26 = vpop.xlane.xlu0 %464  ;;  %v469_v27 = vpop.xlane.xlu1 %468 }
  0xbc   : > { %v472_v28 = vmul.f32 0.0078125, %v465_v26  ;;  %v479_v29 = vmul.f32 %v475_v24, %v475_v24  ;;  %v474_v30 = vmul.f32 0.0078125, %v469_v27  ;;  %v481_v33 = vmul.f32 %v477_v25, %v477_v25 }
  0xbe   : > { %v476_v31 = vsub.f32 %v457_v18, %v472_v28  ;;  %483 = vadd.xlane.f32.xlu0 %v479_v29  ;;  %v478_v32 = vsub.f32 %v459_v19, %v474_v30 }
  0xc0   : > { %v480_v34 = vmul.f32 %v476_v31, %v476_v31  ;;  %v482_v35 = vmul.f32 %v478_v32, %v478_v32 }
  0xc2   : > { %487 = vadd.xlane.f32.xlu0 %v481_v33  ;;  %485 = vadd.xlane.f32.xlu1 %v480_v34 }
  0xc6   : > { %489 = vadd.xlane.f32.xlu1 %v482_v35 }
 0x14b   : > { %v484_v37 = vpop.xlane.xlu0 %483 }
 0x14c   : > { %v491_v38 = vmul.f32 0.0078125, %v484_v37 }
 0x14e   : > { %v495_v39 = vadd.f32 1e-12, %v491_v38 }
 0x14f   : > { %v486_v40 = vpop.xlane.xlu1 %485  ;;  %v488_v41 = vpop.xlane.xlu0 %487 }
 0x150   : > { %1076 = vrsqrt.f32 %v495_v39  ;;  %v492_v42 = vmul.f32 0.0078125, %v486_v40  ;;  %v493_v43 = vmul.f32 0.0078125, %v488_v41 }
 0x152   : > { %v496_v44 = vadd.f32 1e-12, %v492_v42  ;;  %v497_v45 = vadd.f32 1e-12, %v493_v43 }
 0x153   : > { %v490_v46 = vpop.xlane.xlu1 %489 }
 0x154   : > { %1078 = vrsqrt.f32 %v496_v44  ;;  %v494_v47 = vmul.f32 0.0078125, %v490_v46 }
 0x155   : > { %1080 = vrsqrt.f32 %v497_v45 }
 0x156   : > { %v498_v48 = vadd.f32 1e-12, %v494_v47 }
 0x158   : > { %1082 = vrsqrt.f32 %v498_v48 }
 0x15a   : > { %v1077_v49 = vpop.eup %1076 }
 0x15b   : > { %v503_v50 = vmul.f32 %v1077_v49, %v475_v24 }
 0x15d   : > { %v513_v54 = vmul.f32 %v950_v51, %v503_v50 }
 0x15e   : > { %v1079_v52 = vpop.eup %1078 }
 0x15f   : > { %v1081_v53 = vpop.eup %1080  ;;  %v504_v55 = vmul.f32 %v1079_v52, %v476_v31  ;;  %v523_v60 = vadd.f32 %v951_v56, %v513_v54 }
 0x160   : > { %v505_v57 = vmul.f32 %v1081_v53, %v477_v25 }
 0x161   : > { %v514_v58 = vmul.f32 %v950_v51, %v504_v55 }
 0x162   : > { %v1083_v59 = vpop.eup %1082  ;;  %v515_v62 = vmul.f32 %v950_v51, %v505_v57 }
 0x163   : > { %v524_v61 = vadd.f32 %v951_v56, %v514_v58  ;;  %v506_v63 = vmul.f32 %v1083_v59, %v478_v32 }
 0x164   : > { %v525_v2 = vadd.f32 %v951_v56, %v515_v62 }
 0x165   : > { %v527_v0 = vpack.c.bf16 %v524_v61, %v523_v60  ;;  %v516_v1 = vmul.f32 %v950_v51, %v506_v63 }
 0x167   : > { %529 = vst [vmem:[#allocation2] sm:$0xff] %v527_v0  ;;  %v526_v3 = vadd.f32 %v951_v56, %v516_v1 }
 0x169   : > { %v528_v4 = vpack.c.bf16 %v526_v3, %v525_v2 }
 0x16b   : > { %530 = vst [vmem:[#allocation2 + $0x8] sm:$0xff] %v528_v4 }
 0x16c PF: > { %v1084_v5 = vld [vmem:[%s1267_s12] sm:$0xff]   ;;  %v1085_v6 = vld [vmem:[%s1267_s12 + $0x8] sm:$0xff]   ;;  %v1086_v7 = vld [vmem:[%s1267_s12 + $0x10] sm:$0xff]   ;;  %p969_p12 = scmp.ne.s32.totalorder %s1138_s26, 1 }
 0x16d   : > { %995 = vmatprep.subr.bf16.mxu0 %v1084_v5  ;;  %v1087_v8 = vld [vmem:[%s1267_s12 + $0x18] sm:$0xff]   ;;  %v1092_v10 = vld [vmem:[%s1265_s11] sm:$0xff]   ;;  %v1088_v11 = vld [vmem:[%s1267_s12 + $0x20] sm:$0xff]  }
 0x16e   : > { %996 = vmatpush3.bf16.msra.mxu0 %v1084_v5  ;;  %v535_v9 = vld [vmem:[#allocation2] sm:$0xff]  ;;  %v1093_v12 = vld [vmem:[%s1265_s11 + $0x8] sm:$0xff]   ;;  %1015 = vmatprep.subr.bf16.mxu1 %v1092_v10  ;;  %v1089_v13 = vld [vmem:[%s1267_s12 + $0x28] sm:$0xff]  }
 0x16f   : > { %997 = vmatprep.subr.bf16.mxu0 %v1085_v6  ;;  %1011 = vmatprep.mubr.bf16.mxu0 %v535_v9  ;;  %v1090_v14 = vld [vmem:[%s1267_s12 + $0x30] sm:$0xff]   ;;  %v1091_v15 = vld [vmem:[%s1267_s12 + $0x38] sm:$0xff]   ;;  %v1094_v17 = vld [vmem:[%s1265_s11 + $0x10] sm:$0xff]  }
 0x170   : > { %1016 = vmatpush3.bf16.msra.mxu1 %v1092_v10  ;;  %v1095_v18 = vld [vmem:[%s1265_s11 + $0x18] sm:$0xff]   ;;  %v1096_v19 = vld [vmem:[%s1265_s11 + $0x20] sm:$0xff]   ;;  %v1097_v20 = vld [vmem:[%s1265_s11 + $0x28] sm:$0xff]  }
 0x171   : > { %1017 = vmatprep.subr.bf16.mxu1 %v1093_v12  ;;  %v1098_v21 = vld [vmem:[%s1265_s11 + $0x30] sm:$0xff]   ;;  %v1099_v22 = vld [vmem:[%s1265_s11 + $0x38] sm:$0xff]   ;;  %v952_v23 = vld [vmem:[%s438_s23] ss:$0 sm:$0xff] }
 0x172   : > { %998 = vmatpush3.bf16.msra.mxu0 %v1085_v6  ;;  %v536_v16 = vld [vmem:[#allocation2 + $0x8] sm:$0xff]  ;;  %v681_v54 = vld [vmem:[#allocation3 + $0x10] sm:$0xff]  ;;  %v679_v55 = vld [vmem:[#allocation3] sm:$0xff] }
 0x173   : > { %999 = vmatprep.subr.bf16.mxu0 %v1086_v7  ;;  %v682_v57 = vld [vmem:[#allocation3 + $0x18] sm:$0xff]  ;;  %v680_v60 = vld [vmem:[#allocation3 + $0x8] sm:$0xff]  ;;  %v808_v2 = vld [vmem:[%s1352_s0] sm:$0xff] (!%p969_p12) }
 0x174   : > { %1018 = vmatpush3.bf16.msra.mxu1 %v1093_v12  ;;  %v970_v4 = vld [vmem:[%s1358_s6] ss:$0 sm:$0xff] (!%p969_p12)  ;;  %v809_v6 = vld [vmem:[%s1352_s0 + $0x8] sm:$0xff] (!%p969_p12) }
 0x175   : > { %1019 = vmatprep.subr.bf16.mxu1 %v1094_v17 }
 0x176   : > { %1000 = vmatpush3.bf16.msra.mxu0 %v1086_v7 }
 0x177   : > { %1001 = vmatprep.subr.bf16.mxu0 %v1087_v8 }
 0x178   : > { %1020 = vmatpush3.bf16.msra.mxu1 %v1094_v17 }
 0x179   : > { %1021 = vmatprep.subr.bf16.mxu1 %v1095_v18 }
 0x17a   : > { %1002 = vmatpush3.bf16.msra.mxu0 %v1087_v8  ;;  %v810_v8 = vld [vmem:[%s1352_s0 + $0x10] sm:$0xff] (!%p969_p12) }
 0x17b   : > { %1003 = vmatprep.subr.bf16.mxu0 %v1088_v11 }
 0x17c   : > { %1022 = vmatpush3.bf16.msra.mxu1 %v1095_v18 }
 0x17d   : > { %1023 = vmatprep.subr.bf16.mxu1 %v1096_v19 }
 0x17e   : > { %1004 = vmatpush3.bf16.msra.mxu0 %v1088_v11  ;;  %v811_v11 = vld [vmem:[%s1352_s0 + $0x18] sm:$0xff] (!%p969_p12) }
 0x17f   : > { %1005 = vmatprep.subr.bf16.mxu0 %v1089_v13 }
 0x180   : > { %1024 = vmatpush3.bf16.msra.mxu1 %v1096_v19 }
 0x181   : > { %1025 = vmatprep.subr.bf16.mxu1 %v1097_v20 }
 0x182   : > { %1006 = vmatpush3.bf16.msra.mxu0 %v1089_v13 }
 0x183   : > { %1007 = vmatprep.subr.bf16.mxu0 %v1090_v14 }
 0x184   : > { %1026 = vmatpush3.bf16.msra.mxu1 %v1097_v20 }
 0x185   : > { %1027 = vmatprep.subr.bf16.mxu1 %v1098_v21 }
 0x186   : > { %1008 = vmatpush3.bf16.msra.mxu0 %v1090_v14 }
 0x187   : > { %1009 = vmatprep.subr.bf16.mxu0 %v1091_v15 }
 0x188   : > { %1028 = vmatpush3.bf16.msra.mxu1 %v1098_v21 }
 0x189   : > { %1029 = vmatprep.subr.bf16.mxu1 %v1099_v22 }
 0x18a   : > { %1010 = vmatpush3.bf16.msra.mxu0 %v1091_v15 }
 0x18c   : > { %1030 = vmatpush3.bf16.msra.mxu1 %v1099_v22 }
 0x18d   : > { %1012 = vmatmul.mubr.bf16.vlgmr.msra.gmra.mrb[0].mxu0 %v536_v16 }
 0x260   : > { %v1013_v24 = vpop.f32.mrb[0].mxu0 }
 0x261   : > { %v651_v25 = vadd.f32 %v1013_v24, %v952_v23  ;;  %v642_v26 = vpop.f32.mrb[1].mxu0 }
 0x262   : > { %v643_v27 = vadd.f32 %v952_v23, %v642_v26  ;;  %v1014_v28 = vpop.f32.mrb[2].mxu0 }
 0x263   : > { %v663_v29 = vmul.f32 0.70710677, %v651_v25  ;;  %v654_v30 = vadd.f32 %v1014_v28, %v952_v23  ;;  %v645_v31 = vpop.f32.mrb[3].mxu0  ;;  %v659_v42 = vmul.f32 0.5, %v651_v25 }
 0x264   : > { %v661_v32 = vmul.f32 0.70710677, %v643_v27  ;;  %v646_v33 = vadd.f32 %v952_v23, %v645_v31  ;;  %v657_v45 = vmul.f32 0.5, %v643_v27 }
 0x265   : > { %1100 = verf.f32 %v663_v29  ;;  %v664_v34 = vmul.f32 0.70710677, %v654_v30  ;;  %v660_v43 = vmul.f32 0.5, %v654_v30 }
 0x266   : > { %1102 = verf.f32 %v661_v32  ;;  %v662_v35 = vmul.f32 0.70710677, %v646_v33  ;;  %v658_v46 = vmul.f32 0.5, %v646_v33 }
 0x267   : > { %1104 = verf.f32 %v664_v34 }
 0x268   : > { %1106 = verf.f32 %v662_v35 }
 0x26f   : > { %v1101_v36 = vpop.eup %1100 }
 0x270   : > { %v1103_v37 = vpop.eup %1102  ;;  %v671_v38 = vadd.f32 1.0, %v1101_v36 }
 0x271   : > { %v1105_v39 = vpop.eup %1104  ;;  %v669_v40 = vadd.f32 1.0, %v1103_v37 }
 0x272   : > { %v1107_v41 = vpop.eup %1106  ;;  %v672_v44 = vadd.f32 1.0, %v1105_v39  ;;  %v675_v48 = vmul.f32 %v671_v38, %v659_v42 }
 0x273   : > { %v670_v47 = vadd.f32 1.0, %v1107_v41  ;;  %v673_v50 = vmul.f32 %v669_v40, %v657_v45 }
 0x274   : > { %v676_v49 = vmul.f32 %v672_v44, %v660_v43 }
 0x275   : > { %v674_v51 = vmul.f32 %v670_v47, %v658_v46 }
 0x276   : > { %v678_v52 = vpack.c.bf16 %v676_v49, %v675_v48 }
 0x277   : > { %v677_v53 = vpack.c.bf16 %v674_v51, %v673_v50 }
 0x279   : > { %1031 = vmatprep.mubr.bf16.mxu1 %v677_v53 }
 0x27a   : > { %1032 = vmatmul.mubr.bf16.vlgmr.msra.gmra.mrb[0].mxu1 %v678_v52 }
 0x34d   : > { %v1033_v56 = vpop.f32.mrb[0].mxu1  ;;  %807 = sbr.rel (%p969_p12) target bundleno = 864 (0x360), region = 97 }
 0x34e   : > { %v798_v58 = vadd.f32 %v1033_v56, %v681_v54  ;;  %v781_v59 = vpop.f32.mrb[1].mxu1 }
 0x34f   : > { %v796_v61 = vadd.f32 %v781_v59, %v679_v55  ;;  %v1034_v62 = vpop.f32.mrb[2].mxu1 }
 0x350   : > { %802 = vst [vmem:[#allocation3 + $0x10] sm:$0xff] %v798_v58  ;;  %v799_v63 = vadd.f32 %v1034_v62, %v682_v57  ;;  %v784_v0 = vpop.f32.mrb[3].mxu1 }
 0x351   : > { %800 = vst [vmem:[#allocation3] sm:$0xff] %v796_v61  ;;  %v797_v1 = vadd.f32 %v784_v0, %v680_v60 }
 0x352   : > { %803 = vst [vmem:[#allocation3 + $0x18] sm:$0xff] %v799_v63 }
 0x353   : > { %801 = vst [vmem:[#allocation3 + $0x8] sm:$0xff] %v797_v1 }
 0x357   : > { %v814_v10 = vld [vmem:[#allocation3 + $0x10] sm:$0xff] }
 0x358   : > { %v812_v3 = vld [vmem:[#allocation3] sm:$0xff]  ;;  %v818_v14 = vadd.f32 %v814_v10, %v810_v8 }
 0x359   : > { %v816_v5 = vadd.f32 %v812_v3, %v808_v2  ;;  %v815_v12 = vld [vmem:[#allocation3 + $0x18] sm:$0xff] }
 0x35a   : > { %v813_v7 = vld [vmem:[#allocation3 + $0x8] sm:$0xff]  ;;  %v819_v15 = vadd.f32 %v815_v12, %v811_v11  ;;  %v829_v17 = vadd.f32 %v970_v4, %v818_v14 }
 0x35b   : > { %v817_v9 = vadd.f32 %v813_v7, %v809_v6  ;;  %v827_v13 = vadd.f32 %v970_v4, %v816_v5 }
 0x35c   : > { %v830_v18 = vadd.f32 %v970_v4, %v819_v15  ;;  %833 = vst [vmem:[%s1359_s7 + $0x10] sm:$0xff] %v829_v17 }
 0x35d   : > { %v828_v16 = vadd.f32 %v970_v4, %v817_v9  ;;  %831 = vst [vmem:[%s1359_s7] sm:$0xff] %v827_v13 }
 0x35e   : > { %834 = vst [vmem:[%s1359_s7 + $0x18] sm:$0xff] %v830_v18 }
 0x35f   : > { %832 = vst [vmem:[%s1359_s7 + $0x8] sm:$0xff] %v828_v16 }
 0x360 PF: > { %s17_s28 = sadd.s32 1, %s1146_s28   ;;  %s1360_s24 = smov %s1134_s25 }
 0x361   : > { %p14_p13 = scmp.ge.s32.totalorder %s17_s28, 4   ;;  %s1361_s25 = smov %s1224_s9 }
 0x362   : > { %s1362_s26 = smov %s1142_s27  ;;  %s1363_s27 = smov %s1365_s29 }
 0x363   :  { %16 = sbr.rel (!%p14_p13) target bundleno = 3 (0x3), region = 141 }

// kernel: transformer_layer_with_structural_adapter.4
= control target key start
LH: loop header
LB: loop body
LE: loop exit
PB: predicated region body
PF: predicated region fallthrough
CT: control target
= control target key end

     0   :  { %s3282_s0 = inlined_call_operand.vmem [shape: f32[2,16,128], index: 0, kind: input, shape index: {}, may-alias: {0,1}]   ;;  %s3283_s1 = inlined_call_operand.vmem [shape: f32[2,16,128], index: 1, kind: input, shape index: {}, may-alias: {0,1}]   ;;  %s3284_s2 = inlined_call_operand.vmem [shape: f32[1,128], index: 2, kind: input, shape index: {}]   ;;  %s3285_s3 = inlined_call_operand.vmem [shape: f32[1,128], index: 3, kind: input, shape index: {}]   ;;  %s3286_s4 = inlined_call_operand.hbm [shape: bf16[128,128], index: 4, kind: input, shape index: {}]   ;;  %s3287_s5 = inlined_call_operand.vmem [shape: f32[1,128], index: 5, kind: input, shape index: {}]   ;;  %s3288_s6 = inlined_call_operand.vmem [shape: bf16[128,256], index: 6, kind: input, shape index: {}]   ;;  %s3289_s7 = inlined_call_operand.vmem [shape: f32[1,256], index: 7, kind: input, shape index: {}]   ;;  %s3290_s8 = inlined_call_operand.vmem [shape: f32[1,128], index: 8, kind: input, shape index: {}]   ;;  %s3291_s9 = inlined_call_operand.vmem [shape: f32[1,128], index: 9, kind: input, shape index: {}]   ;;  %s3292_s10 = inlined_call_operand.hbm [shape: bf16[128,128], index: 10, kind: input, shape index: {}]   ;;  %s3293_s11 = inlined_call_operand.vmem [shape: f32[1,128], index: 11, kind: input, shape index: {}]   ;;  %s3294_s12 = inlined_call_operand.vmem [shape: f32[2,16,128], index: 12, kind: output, shape index: {0}]   ;;  %s3295_s13 = inlined_call_operand.hbm [shape: f32[2,16,128], index: 13, kind: output, shape index: {1}]  }
   0x1   :  { %3307 = sst [smem:[#allocation20_spill]] %s3293_s11 }
   0x2   :  { %3308 = sst [smem:[#allocation21_spill]] %s3294_s12 }
   0x3   :  { %19 = vsyncpa [#allocation5], 0 }
   0x4   :  { %20 = vsyncpa [#allocation8], 0 }
   0x5   :  { %21 = vsyncpa [#allocation6], 0 }
   0x6   :  { %23 = vsyncpa [#allocation6 + $0x1], 0  ;;  %s2681_s25 = smov 0   ;;  %s2683_s26 = smov 0  }
   0x7   :  { %s2685_s27 = smov 0   ;;  %s2687_s28 = smov 0  }
   0x8   :  { %s2689_s29 = smov 0   ;;  %s2691_s30 = smov 0  }
   0x9 LB: > { %3309 = sst [smem:[#allocation13_spill]] %s2573_s25  ;;  %s1941_s14 = sadd.s32 4294967295, %s2593_s30   ;;  %s2593_s30 = sphi %s2691_s30, %s29_s30   ;;  %s2589_s29 = sphi %s2689_s29, %s3333_s29   ;;  %s2585_s28 = sphi %s2687_s28, %s3332_s28   ;;  %s2581_s27 = sphi %s2685_s27, %s3331_s27   ;;  %s2577_s26 = sphi %s2683_s26, %s3335_s26   ;;  %s2573_s25 = sphi %s2681_s25, %s3334_s25  }
   0xa   : > { %3310 = sst [smem:[#allocation14_spill]] %s2581_s27  ;;  %s1942_s15 = sadd.s32 4294967294, %s2593_s30  }
   0xb   : > { %3311 = sst [smem:[#allocation15_spill]] %s2589_s29  ;;  %s41_s16 = sadd.s32 1, %s2589_s29 }
   0xc   : > { %3312 = sst [smem:[#allocation16_spill]] %s2593_s30  ;;  %s342_s17 = sadd.s32 1, %s2581_s27 }
   0xd   : > { %p43_p0 = scmp.ge.s32.totalorder %s41_s16, 2  ;;  %p352_p1 = scmp.ne.s32.totalorder %s2581_s27, %s2577_s26 }
   0xe   : > { %p353_p2 = scmp.eq.s32.totalorder %s1941_s14, 1  ;;  %p358_p3 = scmp.ne.s32.totalorder %s2577_s26, %s2573_s25 }
   0xf   : > { %s3337_s16 = smov (%p43_p0, %s41_s16), 0  ;;  %p359_p5 = scmp.eq.s32.totalorder %s1942_s15, 1 }
  0x10   : > { %3313 = sst [smem:[#allocation17_spill]] %s3337_s16  ;;  %p2721_p4 = por %p353_p2, %p352_p1 }
  0x11   : > { %s337_s19 = ssub.s32 %s2589_s29, %s3337_s16  ;;  %p1943_p6 = scmp.ge.s32.totalorder %s2593_s30, 1 }
  0x12   : > { %s3314_s18 = scalar_select %p2721_p4, 1, 0 }
  0x13   : > { %p340_p7 = scmp.eq.s32.totalorder %s337_s19, 0  ;;  %p2728_p8 = por %p359_p5, %p358_p3 }
  0x14   : > { %p366_p9 = scmp.lt.s32.totalorder %s2593_s30, 3  ;;  %p2740_p11 = scmp.eq.s32.totalorder %s1941_s14, 0 }
  0x15   : > { %s3315_s20 = scalar_select %p2728_p8, 1, 0 }
  0x16   : > { %s2734_s21 = scalar_select %p340_p7, %s2581_s27, %s342_s17  }
  0x17   : > { %3316 = sst [smem:[#allocation18_spill]] %s3315_s20  ;;  %p2736_p10 = pnand %p1943_p6, %p366_p9 }
  0x18   : > { %3317 = sst [smem:[#allocation19_spill]] %s2734_s21  ;;  %s2595_s24 = smov [#allocation4]  }
  0x19   : > { %s3318_s22 = scalar_select %p2736_p10, 1, 0 }
  0x1a   : > { %s3319_s23 = scalar_select %p2740_p11, 1, 0 }
  0x1b   : > { %p2275_p12 = pneg %p2736_p10  ;;  %s384_s15 = sshll.u32 %s2595_s24, 4  ;;  %s385_s15 = int_to_ptr.vmem [resolvable:$true] %s384_s15 }
  0x1c   : > { %s2596_s17 = smov [#allocation7]   ;;  %s2451_s21 = scalar_lea.hbm %s3286_s4, 1024 }
  0x1d   : > { %p2748_p13 = pnand %p2740_p11, %p2275_p12  ;;  %s412_s16 = sshll.u32 %s2596_s17, 4  ;;  %s2752_s16 = int_to_ptr.vmem [resolvable:$true] %s412_s16 }
  0x1e   : > { %p2452_p0 = scmp.ne.s32.totalorder %s3286_s4, %s2451_s21  ;;  %p2458_p5 = scmp.lt.u32.totalorder %s2451_s21, %s3286_s4 }
  0x1f   : > { %p2453_p1 = pneg %p2748_p13 }
  0x21   : > { %p2454_p2 = pnand %p2453_p1, %p2452_p0 }
  0x23   : > { %p2455_p3 = pneg %p2454_p2 }
  0x25   : > { %p2460_p6 = pnand %p2458_p5, %p2455_p3 }
  0x27   : > { %2463 = shalt.err (!%p2460_p6)
}
  0x28   : > { %s2464_s17 = scalar_lea.vmem %s385_s15, 1024  ;;  %p2472_p8 = scmp.lt.s32.totalorder %s385_s15, %s385_s15 }
  0x29   : > { %p2465_p7 = scmp.ne.s32.totalorder %s385_s15, %s2464_s17  ;;  %p2473_p4 = scmp.lt.s32.totalorder %s2464_s17, %s2464_s17 }
  0x2b   : > { %p2467_p9 = pnand %p2465_p7, %p2453_p1  ;;  %p2474_p11 = por %p2473_p4, %p2472_p8 }
  0x2d   : > { %p2468_p12 = pneg %p2467_p9 }
  0x2f   : > { %p2475_p10 = pnand %p2474_p11, %p2468_p12 }
  0x31   : > { %2478 = shalt.err (!%p2475_p10)
}
  0x32   : > { %s2597_s27 = smov 64   ;;  %s2598_s29 = smov 4  }
  0x33   : > { %2278 = dma.hbm_to_vmem [thread:$0]  (!%p2748_p13), %s3286_s4, 1024, %s385_s15, [#allocation5], %s2597_s27, %s2597_s27, %s2598_s29  }
  0x34   : > { %s2479_s24 = scalar_lea.hbm %s3292_s10, 1024 }
  0x35   : > { %p2480_p0 = scmp.ne.s32.totalorder %s3292_s10, %s2479_s24  ;;  %p2486_p10 = scmp.lt.u32.totalorder %s2479_s24, %s3292_s10 }
  0x37   : > { %p2482_p4 = pnand %p2480_p0, %p2453_p1 }
  0x39   : > { %p2483_p8 = pneg %p2482_p4 }
  0x3b   : > { %p2488_p11 = pnand %p2486_p10, %p2483_p8 }
  0x3d   : > { %2491 = shalt.err (!%p2488_p11)
}
  0x3e   : > { %s2492_s15 = scalar_lea.vmem %s2752_s16, 1024  ;;  %p2500_p6 = scmp.lt.s32.totalorder %s2752_s16, %s2752_s16 }
  0x3f   : > { %p2493_p2 = scmp.ne.s32.totalorder %s2752_s16, %s2492_s15  ;;  %p2501_p7 = scmp.lt.s32.totalorder %s2492_s15, %s2492_s15 }
  0x41   : > { %p2495_p3 = pnand %p2493_p2, %p2453_p1  ;;  %p2502_p9 = por %p2501_p7, %p2500_p6 }
  0x43   : > { %p2496_p5 = pneg %p2495_p3 }
  0x45   : > { %p2503_p12 = pnand %p2502_p9, %p2496_p5 }
  0x47   : > { %2506 = shalt.err (!%p2503_p12)
}
  0x48   : > { %2281 = dma.hbm_to_vmem [thread:$0]  (!%p2748_p13), %s3292_s10, 1024, %s2752_s16, [#allocation8], %s2597_s27, %s2597_s27, %s2598_s29  }
  0x49   : > { %p3321_p0 = scmp.ne.s32.totalorder %s3318_s22, 0 }
  0x4a   : > { %p3322_p4 = scmp.ne.s32.totalorder (!%p3321_p0), %s3319_s23, 0 }
  0x4b   : > { %452 = sbr.rel (%p3321_p0) target bundleno = 3512 (0xdb8), region = 68 }
  0x52   : > { %2560 = dma.done.wait (%p3322_p4), [#allocation5], 1024  }
  0x53   : > { %2562 = vsyncadd (%p3322_p4), [#allocation5], 4294966272 }
  0x54   : > { %2564 = dma.done.wait (%p3322_p4), [#allocation8], 1024  }
  0x55   : > { %2566 = vsyncadd (%p3322_p4), [#allocation8], 4294966272  ;;  %p518_p1 = scmp.lt.s32.totalorder %s2585_s28, 1  ;;  %v2369_v4 = vld [vmem:[%s3288_s6 + $0x4] ss:$8 sps:$4 sm:$0xff]   ;;  %v2599_v7 = vmov 0.0  }
  0x56   : > { %v2371_v5 = vld [vmem:[%s3288_s6] ss:$8 sps:$4 sm:$0xff]   ;;  %v2372_v6 = vld [vmem:[%s3288_s6 + $0x14] ss:$8 sps:$4 sm:$0xff]   ;;  %701 = vmatprep.subr.bf16.mxu0 %v2369_v4  ;;  %2089 = vmatprep.subr.bf16.mxu1 %v2599_v7  ;;  %v2374_v24 = vld [vmem:[%s3288_s6 + $0x10] ss:$8 sps:$4 sm:$0xff]  }
  0x57   : > { %s519_s30 = scalar_select %p518_p1, %s2585_s28, 1  ;;  %702 = vmatpush1.bf16.msra.mxu0 %v2371_v5  ;;  %v2375_v25 = vld [vmem:[#allocation4] sm:$0xff]   ;;  %v2379_v28 = vld [vmem:[#allocation4 + $0x8] sm:$0xff]   ;;  %v2380_v29 = vld [vmem:[%s3288_s6 + $0x34] ss:$8 sps:$4 sm:$0xff]   ;;  %v2600_v39 = vmov 0  }
  0x58   : > { %703 = vmatprep.subr.bf16.mxu0 %v2372_v6  ;;  %2090 = vmatpush3.bf16.msra.mxu1 %v2375_v25  ;;  %v2376_v26 = vld [vmem:[%s3288_s6 + $0x24] ss:$8 sps:$4 sm:$0xff]   ;;  %v2378_v27 = vld [vmem:[%s3288_s6 + $0x20] ss:$8 sps:$4 sm:$0xff]   ;;  %v2382_v30 = vld [vmem:[%s3288_s6 + $0x30] ss:$8 sps:$4 sm:$0xff]  }
  0x59   : > { %s2813_s16 = sshll.u32 %s519_s30, 4  ;;  %2091 = vmatprep.subr.bf16.mxu1 %v2599_v7  ;;  %v2383_v31 = vld [vmem:[#allocation4 + $0x10] sm:$0xff]   ;;  %v2384_v32 = vld [vmem:[%s3288_s6 + $0x44] ss:$8 sps:$4 sm:$0xff]   ;;  %v2386_v33 = vld [vmem:[%s3288_s6 + $0x40] ss:$8 sps:$4 sm:$0xff]   ;;  %733 = vmatprep.mubr.bf16.mxu0 %v2600_v39 }
  0x5a   : > { %s522_s27 = scalar_lea.vmem %s3282_s0, %s2813_s16  ;;  %s2823_s20 = scalar_lea.vmem %s3283_s1, %s2813_s16  ;;  %v2387_v34 = vld [vmem:[#allocation4 + $0x18] sm:$0xff]   ;;  %v2391_v37 = vld [vmem:[#allocation4 + $0x20] sm:$0xff]   ;;  %v2395_v41 = vld [vmem:[#allocation4 + $0x28] sm:$0xff]   ;;  %vm2601_vm0 = vmmov 0   ;;  %vm746_vm1 = vcmask 1040384   ;;  %vm947_vm2 = vcmask 261120  }
  0x5b   : > { %v549_v0 = vld [vmem:[%s522_s27] sm:$0xff]  ;;  %v550_v2 = vld [vmem:[%s522_s27 + $0x8] sm:$0xff]  ;;  %704 = vmatpush1.bf16.msra.mxu0 %v2374_v24  ;;  %v2388_v35 = vld [vmem:[%s3288_s6 + $0x54] ss:$8 sps:$4 sm:$0xff]   ;;  %2105 = vmatprep.mubr.msk.bf16.mxu1 %vm2601_vm0, %v2599_v7  ;;  %s2603_s23 = smov 96   ;;  %vm2604_vm4 = vmmov 1  }
  0x5c   : > { %v770_v1 = vld [vmem:[%s2823_s20] sm:$0xff]  ;;  %553 = vadd.xlane.f32.xlu0 %v549_v0  ;;  %v771_v3 = vld [vmem:[%s2823_s20 + $0x8] sm:$0xff]  ;;  %705 = vmatprep.subr.bf16.mxu0 %v2376_v26  ;;  %v2390_v36 = vld [vmem:[%s3288_s6 + $0x50] ss:$8 sps:$4 sm:$0xff]   ;;  %s2606_s24 = smov 64   ;;  %s2607_s17 = smov 32  }
  0x5d   : > { %774 = vadd.xlane.f32.xlu1 %v770_v1  ;;  %2092 = vmatpush3.bf16.msra.mxu1 %v2379_v28  ;;  %v2392_v38 = vld [vmem:[%s3288_s6 + $0x64] ss:$8 sps:$4 sm:$0xff]   ;;  %v2394_v40 = vld [vmem:[%s3288_s6 + $0x60] ss:$8 sps:$4 sm:$0xff]   ;;  %v2396_v42 = vld [vmem:[%s3288_s6 + $0x74] ss:$8 sps:$4 sm:$0xff]  }
  0x5e   : > { %2093 = vmatprep.subr.bf16.mxu1 %v2599_v7  ;;  %v2398_v43 = vld [vmem:[%s3288_s6 + $0x70] ss:$8 sps:$4 sm:$0xff]   ;;  %v1957_v60 = vld [vmem:[%s3284_s2] ss:$0 sm:$0xff]  ;;  %vm2008_vm5 = vmpackc.low %vm2604_vm4, %vm746_vm1  ;;  %s515_s15 = sand.u32 1, %s2577_s26   ;;  %vm1635_vm6 = vcmask 523264  }
  0x5f   : > { %706 = vmatpush1.bf16.msra.mxu0 %v2378_v27  ;;  %v2399_v44 = vld [vmem:[#allocation4 + $0x30] sm:$0xff]   ;;  %v2400_v45 = vld [vmem:[#allocation4 + $0x38] sm:$0xff]   ;;  %v744_v28 = vld [vmem:[%s3290_s8] sm:$0x1]  ;;  %s1950_s11 = sshll.u32 %s515_s15, 4  ;;  %vm1638_vm7 = vcmask 785408  }
  0x60   : > { %555 = vadd.xlane.f32.xlu0 %v550_v2  ;;  %707 = vmatprep.subr.bf16.mxu0 %v2380_v29  ;;  %s3198_s12 = scalar_lea.vmem [#allocation9], %s1950_s11  ;;  %s2007_s30 = sshll.u32 %s2585_s28, 8 }
  0x61   : > { %776 = vadd.xlane.f32.xlu1 %v771_v3  ;;  %2094 = vmatpush3.bf16.msra.mxu1 %v2383_v31  ;;  %v1977_v31 = vld [vmem:[%s3287_s5] ss:$0 sm:$0xff]  ;;  %s1791_s22 = sshll.u32 %s3198_s12, 4  ;;  %s3221_s29 = scalar_lea.hbm %s3295_s13, %s2007_s30  ;;  %s3223_s22 = int_to_ptr.vmem [resolvable:$true] %s1791_s22 }
  0x62   : > { %2095 = vmatprep.subr.bf16.mxu1 %v2599_v7  ;;  %s3227_s25 = scalar_lea.sflag [#allocation6], %s515_s15  ;;  %p3323_p8 = scmp.ne.s32.totalorder %s3314_s18, 0 }
  0x63   : > { %708 = vmatpush1.bf16.msra.mxu0 %v2382_v30  ;;  %s2608_s28 = smov [#allocation9]  }
  0x64   : > { %709 = vmatprep.subr.bf16.mxu0 %v2384_v32  ;;  %s2511_s21 = sshll.u32 %s2608_s28, 4  ;;  %s2512_s21 = int_to_ptr.vmem [resolvable:$false] %s2511_s21 }
  0x65   : > { %2096 = vmatpush3.bf16.msra.mxu1 %v2387_v34  ;;  %s2513_s14 = scalar_lea.vmem %s2512_s21, 512  ;;  %p2514_p2 = scmp.lt.s32.totalorder %s3223_s22, %s2512_s21 }
  0x66   : > { %2097 = vmatprep.subr.bf16.mxu1 %v2599_v7 }
  0x67   : > { %710 = vmatpush1.bf16.msra.mxu0 %v2386_v33 }
  0x68   : > { %711 = vmatprep.subr.bf16.mxu0 %v2388_v35 }
  0x69   : > { %2098 = vmatpush3.bf16.msra.mxu1 %v2391_v37  ;;  %v747_v37 = vsel %vm746_vm1, %v744_v28, 0.0 }
  0x6a   : > { %2099 = vmatprep.subr.bf16.mxu1 %v2599_v7 }
  0x6b   : > { %712 = vmatpush1.bf16.msra.mxu0 %v2390_v36 }
  0x6c   : > { %713 = vmatprep.subr.bf16.mxu0 %v2392_v38 }
  0x6d   : > { %2100 = vmatpush3.bf16.msra.mxu1 %v2395_v41 }
  0x6e   : > { %2101 = vmatprep.subr.bf16.mxu1 %v2599_v7 }
  0x6f   : > { %714 = vmatpush1.bf16.msra.mxu0 %v2394_v40 }
  0x70   : > { %715 = vmatprep.subr.bf16.mxu0 %v2396_v42 }
  0x71   : > { %2102 = vmatpush3.bf16.msra.mxu1 %v2399_v44 }
  0x72   : > { %2103 = vmatprep.subr.bf16.mxu1 %v2599_v7 }
  0x73   : > { %716 = vmatpush1.bf16.msra.mxu0 %v2398_v43  ;;  %v2938_v43 = vpack.c.bf16 %v2599_v7, %v747_v37 }
  0x74   : > { %2109 = vmatprep.subr.bf16.mxu0 %v2599_v7 }
  0x75   : > { %2104 = vmatpush3.bf16.msra.mxu1 %v2400_v45  ;;  %v955_v44 = vsel %vm947_vm2, %v2938_v43, 0 }
  0x76   : > { %2117 = vmatprep.subr.bf16.mxu1 %v2599_v7 }
  0xe9   : > { %v554_v8 = vpop.xlane.xlu0 %553 }
  0xea   : > { %v775_v9 = vpop.xlane.xlu1 %774  ;;  %v558_v10 = vmul.f32 0.0078125, %v554_v8 }
  0xeb   : > { %v779_v11 = vmul.f32 0.0078125, %v775_v9 }
  0xec   : > { %v2837_v12 = vsub.f32 %v549_v0, %v558_v10 }
  0xed   : > { %v2839_v13 = vsub.f32 %v770_v1, %v779_v11  ;;  %v556_v14 = vpop.xlane.xlu0 %555  ;;  %v1958_v1 = vld [vmem:[%s3285_s3] ss:$0 sm:$0xff] }
  0xee   : > { %v777_v15 = vpop.xlane.xlu1 %776  ;;  %v559_v16 = vmul.f32 0.0078125, %v556_v14  ;;  %v562_v17 = vmul.f32 %v2837_v12, %v2837_v12 }
  0xef   : > { %v780_v18 = vmul.f32 0.0078125, %v777_v15  ;;  %v783_v21 = vmul.f32 %v2839_v13, %v2839_v13 }
  0xf0   : > { %v2843_v19 = vsub.f32 %v550_v2, %v559_v16  ;;  %564 = vadd.xlane.f32.xlu0 %v562_v17 }
  0xf1   : > { %v2845_v20 = vsub.f32 %v771_v3, %v780_v18  ;;  %v609_v18 = vld [vmem:[%s3289_s7] sm:$0x3] }
  0xf2   : > { %v563_v22 = vmul.f32 %v2843_v19, %v2843_v19 }
  0xf3   : > { %v784_v23 = vmul.f32 %v2845_v20, %v2845_v20 }
  0xf4   : > { %785 = vadd.xlane.f32.xlu0 %v783_v21  ;;  %566 = vadd.xlane.f32.xlu1 %v563_v22 }
  0xf8   : > { %787 = vadd.xlane.f32.xlu1 %v784_v23 }
 0x17d   : > { %v565_v46 = vpop.xlane.xlu0 %564 }
 0x17e   : > { %v568_v47 = vmul.f32 0.0078125, %v565_v46  ;;  %v2602_v46 = vmov -1e+30  }
 0x180   : > { %v570_v48 = vadd.f32 1e-12, %v568_v47 }
 0x181   : > { %v567_v49 = vpop.xlane.xlu1 %566  ;;  %v786_v50 = vpop.xlane.xlu0 %785 }
 0x182   : > { %2409 = vrsqrt.f32 %v570_v48  ;;  %v569_v51 = vmul.f32 0.0078125, %v567_v49  ;;  %v789_v52 = vmul.f32 0.0078125, %v786_v50 }
 0x184   : > { %v571_v53 = vadd.f32 1e-12, %v569_v51  ;;  %v791_v54 = vadd.f32 1e-12, %v789_v52 }
 0x185   : > { %v788_v55 = vpop.xlane.xlu1 %787 }
 0x186   : > { %2411 = vrsqrt.f32 %v571_v53  ;;  %v790_v56 = vmul.f32 0.0078125, %v788_v55 }
 0x187   : > { %2413 = vrsqrt.f32 %v791_v54 }
 0x188   : > { %v792_v57 = vadd.f32 1e-12, %v790_v56 }
 0x18a   : > { %2415 = vrsqrt.f32 %v792_v57 }
 0x18c   : > { %v2410_v58 = vpop.eup %2409 }
 0x18d   : > { %v574_v59 = vmul.f32 %v2410_v58, %v2837_v12 }
 0x18f   : > { %v582_v0 = vmul.f32 %v1957_v60, %v574_v59 }
 0x190   : > { %v2412_v61 = vpop.eup %2411 }
 0x191   : > { %v2414_v62 = vpop.eup %2413  ;;  %v575_v63 = vmul.f32 %v2412_v61, %v2843_v19  ;;  %v590_v5 = vadd.f32 %v1958_v1, %v582_v0  ;;  %v2605_v0 = vmov 0.0|0.0  }
 0x192   : > { %v795_v2 = vmul.f32 %v2414_v62, %v2839_v13  ;;  %v611_v13 = vlaneseq  ;;  %v2957_v62 = vld [vmem:[%s3291_s9] sm:$0x1] }
 0x193   : > { %v583_v3 = vmul.f32 %v1957_v60, %v575_v63  ;;  %v2009_v63 = vpack.c.bf16 %v2599_v7, %v2957_v62 }
 0x194   : > { %v2416_v4 = vpop.eup %2415  ;;  %v803_v9 = vmul.f32 %v1957_v60, %v795_v2  ;;  %v612_v16 = vshrl.u32 %v611_v13, 7  ;;  %v944_v45 = vand.u32 127, %v611_v13 }
 0x195   : > { %v591_v6 = vadd.f32 %v1958_v1, %v583_v3  ;;  %v796_v8 = vmul.f32 %v2416_v4, %v2845_v20 }
 0x196   : > { %v811_v12 = vadd.f32 %v1958_v1, %v803_v9  ;;  %v613_v17 = vsub.s32 0, %v612_v16  ;;  %v617_v19 = vsub.s32 1, %v612_v16  ;;  %vm945_vm3 = vcmp.lt.s32.totalorder %v944_v45, 17 }
 0x197   : > { %v592_v10 = vpack.c.bf16 %v591_v6, %v590_v5  ;;  %v804_v11 = vmul.f32 %v1957_v60, %v796_v8  ;;  %v2948_v47 = vsel %vm945_vm3, 0.0, %v2602_v46 }
 0x198   : > { %v614_v20 = vrot.slane %v609_v18, %v613_v17  ;;  %v618_v22 = vrot.slane %v609_v18, %v617_v19 }
 0x199   : > { %734 = vmatmul.mubr.bf16.vlgmr.msra.gmra.mrb[0].mxu0 %v592_v10  ;;  %v812_v14 = vadd.f32 %v1958_v1, %v804_v11 }
 0x19a   : > { %2113 = vmatprep.mubr.msk.bf16.mxu0 %vm2601_vm0, %v2599_v7 }
 0x19b   : > { %v813_v15 = vpack.c.bf16 %v812_v14, %v811_v12 }
 0x19d   : > { %2106 = vmatmul.mubr.bf16.vlgmr.msra.gmra.mrb[0].mxu1 %v813_v15 }
 0x19e   : > { %2121 = vmatprep.mubr.msk.bf16.mxu1 %vm2601_vm0, %v2599_v7 }
 0x26c   : > { %v735_v21 = vpop.f32.mrb[0].mxu0 }
 0x26d   : > { %v737_v23 = vpop.f32.mrb[1].mxu0  ;;  %v736_v25 = vadd.f32 %v735_v21, %v614_v20 }
 0x26e   : > { %v739_v24 = vpop.f32.mrb[2].mxu0  ;;  %v738_v29 = vadd.f32 %v737_v23, %v618_v22 }
 0x26f   : > { %v740_v26 = vadd.f32 %v739_v24, %v614_v20  ;;  %v741_v27 = vpop.f32.mrb[3].mxu0 }
 0x270   : > { %v742_v30 = vadd.f32 %v741_v27, %v618_v22  ;;  %v919_v32 = vpop.f32.mrb[0].mxu1 }
 0x271   : > { %v2926_v33 = vpack.c.bf16 %v740_v26, %v736_v25  ;;  %v2107_v34 = vpop.f32.mrb[1].mxu1  ;;  %v920_v38 = vadd.f32 %v1977_v31, %v919_v32 }
 0x272   : > { %v2928_v35 = vpack.c.bf16 %v742_v30, %v738_v29  ;;  %v922_v36 = vpop.f32.mrb[2].mxu1 }
 0x273   : > { %v923_v39 = vadd.f32 %v1977_v31, %v922_v36  ;;  %v2108_v40 = vpop.f32.mrb[3].mxu1  ;;  %v952_v41 = vsel %vm947_vm2, %v2926_v33, 0 }
 0x274   : > { %2110 = vmatpush3.bf16.xpose.msra.mxu0 %v952_v41  ;;  %2118 = vmatpush3.bf16.msra.mxu1 %v2928_v35 }
 0x275   : > { %v2934_v42 = vpack.c.bf16 %v923_v39, %v920_v38  ;;  %2111 = vmatprep.subr.bf16.mxu0 %v2599_v7  ;;  %2119 = vmatprep.subr.bf16.mxu1 %v2599_v7  ;;  %v759_v38 = vsel %vm746_vm1, %v2957_v62, 0.0 }
 0x276   : > { %v3015_v39 = vpack.c.bf16 %v2599_v7, %v759_v38 }
 0x278   : > { %2120 = vmatpush3.bf16.msk.msra.mxu1 %vm2008_vm5, %v2009_v63 }
 0x279   : > { %2125 = vmatprep.subr.bf16.mxu1 %v2599_v7 }
 0x27c   : > { %2112 = vmatpush3.bf16.xpose.msra.mxu0 %v955_v44 }
 0x27d   : > { %2145 = vmatprep.subr.bf16.mxu0 %v2599_v7 }
 0x283   : > { %2114 = vmatmul.mubr.msk.bf16.vlgmr.msra.gmra.mrb[4].mxu0 %vm947_vm2, %v2934_v42 }
 0x284   : > { %2161 = vmatprep.mubr.msk.bf16.mxu0 %vm2601_vm0, %v2599_v7 }
 0x356   : > { %v1009_v48 = vpop.f32.mrb[4].mxu0 }
 0x357   : > { %v1010_v49 = vadd.f32 %v1009_v48, %v2948_v47  ;;  %v2115_v50 = vpop.f32.mrb[5].mxu0 }
 0x358   : > { %v1012_v51 = vpop.f32.mrb[6].mxu0 }
 0x359   : > { %v1013_v52 = vadd.f32 %v1012_v51, %v2948_v47  ;;  %1016 = vmax.xlane.f32.xlu0 %v1010_v49  ;;  %v2116_v53 = vpop.f32.mrb[7].mxu0 }
 0x35b   : > { %1018 = vmax.xlane.f32.xlu1 %v1013_v52 }
 0x3e6   : > { %v1017_v54 = vpop.xlane.xlu0 %1016 }
 0x3e7   : > { %v1020_v55 = vsub.f32 %v1010_v49, %v1017_v54 }
 0x3e8   : > { %v1019_v56 = vpop.xlane.xlu1 %1018 }
 0x3e9   : > { %v1022_v57 = vmul.f32 1.442695, %v1020_v55  ;;  %v1021_v58 = vsub.f32 %v1013_v52, %v1019_v56 }
 0x3eb   : > { %2417 = vpow2.f32 %v1022_v57  ;;  %v1024_v59 = vmul.f32 1.442695, %v1021_v58 }
 0x3ed   : > { %2419 = vpow2.f32 %v1024_v59 }
 0x3f5   : > { %v2418_v60 = vpop.eup %2417 }
 0x3f6   : > { %1026 = vadd.xlane.f32.xlu0 %v2418_v60 }
 0x3f7   : > { %v2420_v61 = vpop.eup %2419 }
 0x3f8   : > { %1028 = vadd.xlane.f32.xlu1 %v2420_v61 }
 0x409   : > { %1089 = vrot.lane.b32.xlu1 %v2938_v43, %s2603_s23 }
 0x40c   : > { %1087 = vrot.lane.b32.xlu0 %v2926_v33, %s2603_s23 }
 0x40d   : > { %1091 = vrot.lane.b32.xlu1 %v2605_v0, %s2603_s23 }
 0x410   : > { %1095 = vrot.lane.b32.xlu0 %v2605_v0, %s2603_s23 }
 0x411   : > { %1093 = vrot.lane.b32.xlu1 %v2605_v0, %s2603_s23 }
 0x414   : > { %1099 = vrot.lane.b32.xlu0 %v2605_v0, %s2603_s23 }
 0x415   : > { %1097 = vrot.lane.b32.xlu1 %v2605_v0, %s2603_s23 }
 0x418   : > { %1077 = vrot.lane.b32.xlu0 %v2934_v42, %s2603_s23 }
 0x419   : > { %1101 = vrot.lane.b32.xlu1 %v2605_v0, %s2603_s23 }
 0x483   : > { %v1027_v1 = vpop.xlane.xlu0 %1026 }
 0x484   : > { %2421 = vrcp.f32 %v1027_v1 }
 0x485   : > { %v1029_v2 = vpop.xlane.xlu1 %1028 }
 0x486   : > { %2423 = vrcp.f32 %v1029_v2 }
 0x487   : > { %v1088_v8 = vpop.permute.xlu0 %1087 }
 0x488   : > { %v1107_v10 = vsel %vm947_vm2, %v1088_v8, 0 }
 0x489   : > { %v1090_v11 = vpop.permute.xlu1 %1089 }
 0x48a   : > { %v1110_v12 = vsel %vm947_vm2, %v1090_v11, 0 }
 0x48b   : > { %v1096_v17 = vpop.permute.xlu0 %1095 }
 0x48c   : > { %v1119_v18 = vsel %vm947_vm2, %v1096_v17, 0 }
 0x48d   : > { %v1092_v14 = vpop.permute.xlu1 %1091 }
 0x48e   : > { %v2422_v3 = vpop.eup %2421  ;;  %v1113_v15 = vsel %vm947_vm2, %v1092_v14, 0 }
 0x48f   : > { %v2979_v5 = vmul.f32 %v2422_v3, %v2418_v60  ;;  %v1100_v21 = vpop.permute.xlu0 %1099 }
 0x490   : > { %v2424_v4 = vpop.eup %2423  ;;  %v1125_v22 = vsel %vm947_vm2, %v1100_v21, 0 }
 0x491   : > { %v2981_v6 = vmul.f32 %v2424_v4, %v2420_v61  ;;  %v1094_v13 = vpop.permute.xlu1 %1093 }
 0x492   : > { %v1116_v16 = vsel %vm947_vm2, %v1094_v13, 0 }
 0x493   : > { %v1034_v9 = vpack.c.bf16 %v2981_v6, %v2979_v5  ;;  %v1078_v25 = vpop.permute.xlu0 %1077 }
 0x495   : > { %2122 = vmatmul.mubr.bf16.vlgmr.msra.gmra.mrb[4].mxu1 %v1034_v9  ;;  %v1098_v19 = vpop.permute.xlu1 %1097 }
 0x496   : > { %2126 = vmatpush3.bf16.xpose.msra.mxu1 %v1107_v10  ;;  %2141 = vmatprep.mubr.msk.bf16.mxu1 %vm2601_vm0, %v2599_v7  ;;  %v1122_v20 = vsel %vm947_vm2, %v1098_v19, 0 }
 0x497   : > { %2127 = vmatprep.subr.bf16.mxu1 %v2599_v7 }
 0x499   : > { %v1102_v23 = vpop.permute.xlu1 %1101 }
 0x49a   : > { %v1128_v24 = vsel %vm947_vm2, %v1102_v23, 0 }
 0x49e   : > { %2128 = vmatpush3.bf16.xpose.msra.mxu1 %v1110_v12 }
 0x49f   : > { %2129 = vmatprep.subr.bf16.mxu1 %v2599_v7 }
 0x4a6   : > { %2130 = vmatpush3.bf16.xpose.msra.mxu1 %v1113_v15 }
 0x4a7   : > { %2131 = vmatprep.subr.bf16.mxu1 %v2599_v7 }
 0x4ae   : > { %2132 = vmatpush3.bf16.xpose.msra.mxu1 %v1116_v16 }
 0x4af   : > { %2133 = vmatprep.subr.bf16.mxu1 %v2599_v7 }
 0x4b6   : > { %2134 = vmatpush3.bf16.xpose.msra.mxu1 %v1119_v18 }
 0x4b7   : > { %2135 = vmatprep.subr.bf16.mxu1 %v2599_v7 }
 0x4be   : > { %2136 = vmatpush3.bf16.xpose.msra.mxu1 %v1122_v20 }
 0x4bf   : > { %2137 = vmatprep.subr.bf16.mxu1 %v2599_v7 }
 0x4c6   : > { %2138 = vmatpush3.bf16.xpose.msra.mxu1 %v1125_v22 }
 0x4c7   : > { %2139 = vmatprep.subr.bf16.mxu1 %v2599_v7 }
 0x4ce   : > { %2140 = vmatpush3.bf16.xpose.msra.mxu1 %v1128_v24 }
 0x4cf   : > { %2185 = vmatprep.subr.bf16.mxu1 %v2599_v7 }
 0x4d5   : > { %2142 = vmatmul.mubr.msk.bf16.vlgmr.msra.gmra.mrb[8].mxu1 %vm947_vm2, %v1078_v25 }
 0x4d6   : > { %2201 = vmatprep.mubr.msk.bf16.mxu1 %vm2601_vm0, %v2599_v7 }
 0x568   : > { %v3006_v26 = vpop.f32.mrb[4].mxu1 }
 0x569   : > { %v2123_v27 = vpop.f32.mrb[5].mxu1 }
 0x56a   : > { %v3008_v28 = vpop.f32.mrb[6].mxu1 }
 0x56b   : > { %v2124_v29 = vpop.f32.mrb[7].mxu1 }
 0x5a8   : > { %v1164_v30 = vpop.f32.mrb[8].mxu1 }
 0x5a9   : > { %v1165_v31 = vadd.f32 %v1164_v30, %v2948_v47  ;;  %v2143_v32 = vpop.f32.mrb[9].mxu1 }
 0x5aa   : > { %v1167_v34 = vpop.f32.mrb[10].mxu1 }
 0x5ab   : > { %v1168_v36 = vadd.f32 %v1167_v34, %v2948_v47  ;;  %1171 = vmax.xlane.f32.xlu1 %v1165_v31  ;;  %v2144_v37 = vpop.f32.mrb[11].mxu1 }
 0x5ad   : > { %1173 = vmax.xlane.f32.xlu0 %v1168_v36 }
 0x5bc   : > { %1200 = vrot.lane.b32.xlu1 %v3015_v39, %s2603_s23 }
 0x5c0   : > { %1204 = vrot.lane.b32.xlu1 %v2605_v0, %s2603_s23 }
 0x5c3   : > { %1198 = vrot.lane.b32.xlu0 %v2928_v35, %s2603_s23 }
 0x5c4   : > { %1206 = vrot.lane.b32.xlu1 %v2605_v0, %s2603_s23 }
 0x5c7   : > { %1202 = vrot.lane.b32.xlu0 %v2605_v0, %s2603_s23 }
 0x5c8   : > { %1210 = vrot.lane.b32.xlu1 %v2605_v0, %s2603_s23 }
 0x5cb   : > { %1208 = vrot.lane.b32.xlu0 %v2605_v0, %s2603_s23 }
 0x638   : > { %v1172_v40 = vpop.xlane.xlu1 %1171 }
 0x639   : > { %v1175_v41 = vsub.f32 %v1165_v31, %v1172_v40 }
 0x63a   : > { %v1174_v44 = vpop.xlane.xlu0 %1173 }
 0x63b   : > { %v1177_v45 = vmul.f32 1.442695, %v1175_v41  ;;  %v1176_v46 = vsub.f32 %v1168_v36, %v1174_v44 }
 0x63c   : > { %v1201_v50 = vpop.permute.xlu1 %1200 }
 0x63d   : > { %2425 = vpow2.f32 %v1177_v45  ;;  %v1179_v48 = vmul.f32 1.442695, %v1176_v46 }
 0x63e   : > { %v1199_v49 = vpop.permute.xlu0 %1198 }
 0x63f   : > { %2427 = vpow2.f32 %v1179_v48  ;;  %2146 = vmatpush3.bf16.msra.mxu0 %v1199_v49 }
 0x640   : > { %2147 = vmatprep.subr.bf16.mxu0 %v2599_v7  ;;  %v1205_v52 = vpop.permute.xlu1 %1204 }
 0x642   : > { %v1203_v51 = vpop.permute.xlu0 %1202 }
 0x643   : > { %2148 = vmatpush3.bf16.msra.mxu0 %v1201_v50 }
 0x644   : > { %2149 = vmatprep.subr.bf16.mxu0 %v2599_v7  ;;  %v1207_v55 = vpop.permute.xlu1 %1206 }
 0x646   : > { %v1209_v56 = vpop.permute.xlu0 %1208 }
 0x647   : > { %v2426_v53 = vpop.eup %2425  ;;  %2150 = vmatpush3.bf16.msra.mxu0 %v1203_v51 }
 0x648   : > { %1181 = vadd.xlane.f32.xlu1 %v2426_v53  ;;  %2151 = vmatprep.subr.bf16.mxu0 %v2599_v7  ;;  %v1211_v57 = vpop.permute.xlu1 %1210 }
 0x649   : > { %v2428_v54 = vpop.eup %2427 }
 0x64a   : > { %1183 = vadd.xlane.f32.xlu0 %v2428_v54 }
 0x64b   : > { %2152 = vmatpush3.bf16.msra.mxu0 %v1205_v52 }
 0x64c   : > { %2153 = vmatprep.subr.bf16.mxu0 %v2599_v7 }
 0x64f   : > { %2154 = vmatpush3.bf16.msra.mxu0 %v1207_v55 }
 0x650   : > { %2155 = vmatprep.subr.bf16.mxu0 %v2599_v7 }
 0x653   : > { %2156 = vmatpush3.bf16.msra.mxu0 %v1209_v56 }
 0x654   : > { %2157 = vmatprep.subr.bf16.mxu0 %v2599_v7 }
 0x657   : > { %2158 = vmatpush3.bf16.msra.mxu0 %v1211_v57 }
 0x658   : > { %2159 = vmatprep.subr.bf16.mxu0 %v2599_v7 }
 0x659   : > { %1267 = vrot.lane.b32.xlu1 %v2926_v33, %s2606_s24 }
 0x65d   : > { %1271 = vrot.lane.b32.xlu1 %v2605_v0, %s2606_s24 }
 0x660   : > { %1212 = vrot.lane.b32.xlu0 %v2605_v0, %s2603_s23 }
 0x661   : > { %1275 = vrot.lane.b32.xlu1 %v2605_v0, %s2606_s24 }
 0x664   : > { %1269 = vrot.lane.b32.xlu0 %v2938_v43, %s2606_s24 }
 0x665   : > { %1279 = vrot.lane.b32.xlu1 %v2605_v0, %s2606_s24 }
 0x668   : > { %1273 = vrot.lane.b32.xlu0 %v2605_v0, %s2606_s24 }
 0x669   : > { %1265 = vrot.lane.b32.xlu1 %v2934_v42, %s2606_s24 }
 0x66c   : > { %1277 = vrot.lane.b32.xlu0 %v2605_v0, %s2606_s24 }
 0x670   : > { %1281 = vrot.lane.b32.xlu0 %v2605_v0, %s2606_s24 }
 0x6d5   : > { %v1182_v58 = vpop.xlane.xlu1 %1181 }
 0x6d6   : > { %2429 = vrcp.f32 %v1182_v58 }
 0x6d7   : > { %v1184_v59 = vpop.xlane.xlu0 %1183 }
 0x6d8   : > { %2431 = vrcp.f32 %v1184_v59 }
 0x6d9   : > { %v1268_v2 = vpop.permute.xlu1 %1267 }
 0x6da   : > { %v1287_v4 = vsel %vm947_vm2, %v1268_v2, 0 }
 0x6db   : > { %v1213_v60 = vpop.permute.xlu0 %1212 }
 0x6dc   : > { %2160 = vmatpush3.bf16.msra.mxu0 %v1213_v60 }
 0x6dd   : > { %2165 = vmatprep.subr.bf16.mxu0 %v2599_v7  ;;  %v1272_v10 = vpop.permute.xlu1 %1271 }
 0x6de   : > { %v1293_v11 = vsel %vm947_vm2, %v1272_v10, 0 }
 0x6df   : > { %v1270_v8 = vpop.permute.xlu0 %1269 }
 0x6e0   : > { %v2430_v61 = vpop.eup %2429  ;;  %v1290_v9 = vsel %vm947_vm2, %v1270_v8, 0 }
 0x6e1   : > { %v3059_v63 = vmul.f32 %v2430_v61, %v2426_v53  ;;  %v1276_v15 = vpop.permute.xlu1 %1275 }
 0x6e2   : > { %v2432_v62 = vpop.eup %2431  ;;  %v1299_v13 = vsel %vm947_vm2, %v1276_v15, 0 }
 0x6e3   : > { %v3061_v1 = vmul.f32 %v2432_v62, %v2428_v54  ;;  %v1274_v12 = vpop.permute.xlu0 %1273  ;;  %v1263_v59 = vadd.f32 %v3059_v63, %v2979_v5 }
 0x6e4   : > { %v1296_v14 = vsel %vm947_vm2, %v1274_v12, 0 }
 0x6e5   : > { %v1189_v3 = vpack.c.bf16 %v3061_v1, %v3059_v63  ;;  %v1280_v18 = vpop.permute.xlu1 %1279  ;;  %v1264_v62 = vadd.f32 %v3061_v1, %v2981_v6 }
 0x6e6   : > { %v1305_v19 = vsel %vm947_vm2, %v1280_v18, 0 }
 0x6e7   : > { %2162 = vmatmul.mubr.bf16.vlgmr.msra.gmra.mrb[8].mxu0 %v1189_v3  ;;  %v1278_v16 = vpop.permute.xlu0 %1277 }
 0x6e8   : > { %2166 = vmatpush3.bf16.xpose.msra.mxu0 %v1287_v4  ;;  %2181 = vmatprep.mubr.msk.bf16.mxu0 %vm2601_vm0, %v2599_v7  ;;  %v1302_v17 = vsel %vm947_vm2, %v1278_v16, 0 }
 0x6e9   : > { %2167 = vmatprep.subr.bf16.mxu0 %v2599_v7  ;;  %v1266_v22 = vpop.permute.xlu1 %1265 }
 0x6eb   : > { %v1282_v20 = vpop.permute.xlu0 %1281 }
 0x6ec   : > { %v1308_v21 = vsel %vm947_vm2, %v1282_v20, 0 }
 0x6f0   : > { %2168 = vmatpush3.bf16.xpose.msra.mxu0 %v1290_v9 }
 0x6f1   : > { %2169 = vmatprep.subr.bf16.mxu0 %v2599_v7 }
 0x6f8   : > { %2170 = vmatpush3.bf16.xpose.msra.mxu0 %v1293_v11 }
 0x6f9   : > { %2171 = vmatprep.subr.bf16.mxu0 %v2599_v7 }
 0x700   : > { %2172 = vmatpush3.bf16.xpose.msra.mxu0 %v1296_v14 }
 0x701   : > { %2173 = vmatprep.subr.bf16.mxu0 %v2599_v7 }
 0x708   : > { %2174 = vmatpush3.bf16.xpose.msra.mxu0 %v1299_v13 }
 0x709   : > { %2175 = vmatprep.subr.bf16.mxu0 %v2599_v7 }
 0x710   : > { %2176 = vmatpush3.bf16.xpose.msra.mxu0 %v1302_v17 }
 0x711   : > { %2177 = vmatprep.subr.bf16.mxu0 %v2599_v7 }
 0x718   : > { %2178 = vmatpush3.bf16.xpose.msra.mxu0 %v1305_v19 }
 0x719   : > { %2179 = vmatprep.subr.bf16.mxu0 %v2599_v7 }
 0x720   : > { %2180 = vmatpush3.bf16.xpose.msra.mxu0 %v1308_v21 }
 0x721   : > { %2225 = vmatprep.subr.bf16.mxu0 %v2599_v7 }
 0x727   : > { %2182 = vmatmul.mubr.msk.bf16.vlgmr.msra.gmra.mrb[12].mxu0 %vm947_vm2, %v1266_v22 }
 0x728   : > { %2241 = vmatprep.mubr.msk.bf16.mxu0 %vm2601_vm0, %v2599_v7 }
 0x7ba   : > { %v3086_v23 = vpop.f32.mrb[8].mxu0 }
 0x7bb   : > { %v2163_v24 = vpop.f32.mrb[9].mxu0 }
 0x7bc   : > { %v3088_v25 = vpop.f32.mrb[10].mxu0 }
 0x7bd   : > { %v2354_v27 = vpack.i.bf16 %v3088_v25, %v3086_v23  ;;  %v2164_v29 = vpop.f32.mrb[11].mxu0 }
 0x7fa   : > { %v1344_v30 = vpop.f32.mrb[12].mxu0 }
 0x7fb   : > { %v1345_v31 = vadd.f32 %v1344_v30, %v2948_v47  ;;  %v2183_v32 = vpop.f32.mrb[13].mxu0 }
 0x7fc   : > { %v1347_v34 = vpop.f32.mrb[14].mxu0 }
 0x7fd   : > { %v1348_v36 = vadd.f32 %v1347_v34, %v2948_v47  ;;  %1351 = vmax.xlane.f32.xlu0 %v1345_v31  ;;  %v2184_v37 = vpop.f32.mrb[15].mxu0 }
 0x7ff   : > { %1353 = vmax.xlane.f32.xlu1 %v1348_v36 }
 0x810   : > { %1372 = vrot.lane.b32.xlu1 %v3015_v39, %s2606_s24 }
 0x813   : > { %1370 = vrot.lane.b32.xlu0 %v2928_v35, %s2606_s24 }
 0x814   : > { %1376 = vrot.lane.b32.xlu1 %v2605_v0, %s2606_s24 }
 0x817   : > { %1374 = vrot.lane.b32.xlu0 %v2605_v0, %s2606_s24 }
 0x818   : > { %1380 = vrot.lane.b32.xlu1 %v2605_v0, %s2606_s24 }
 0x81b   : > { %1378 = vrot.lane.b32.xlu0 %v2605_v0, %s2606_s24 }
 0x81c   : > { %1384 = vrot.lane.b32.xlu1 %v2605_v0, %s2606_s24 }
 0x81f   : > { %1382 = vrot.lane.b32.xlu0 %v2605_v0, %s2606_s24 }
 0x88a   : > { %v1352_v38 = vpop.xlane.xlu0 %1351 }
 0x88b   : > { %v1355_v40 = vsub.f32 %v1345_v31, %v1352_v38 }
 0x88c   : > { %v1354_v41 = vpop.xlane.xlu1 %1353 }
 0x88d   : > { %v1357_v44 = vmul.f32 1.442695, %v1355_v40  ;;  %v1356_v45 = vsub.f32 %v1348_v36, %v1354_v41 }
 0x88e   : > { %v1371_v46 = vpop.permute.xlu0 %1370 }
 0x88f   : > { %2433 = vpow2.f32 %v1357_v44  ;;  %v1359_v48 = vmul.f32 1.442695, %v1356_v45  ;;  %2186 = vmatpush3.bf16.msra.mxu1 %v1371_v46 }
 0x890   : > { %2187 = vmatprep.subr.bf16.mxu1 %v2599_v7  ;;  %v1373_v49 = vpop.permute.xlu1 %1372 }
 0x891   : > { %2435 = vpow2.f32 %v1359_v48 }
 0x892   : > { %v1375_v50 = vpop.permute.xlu0 %1374 }
 0x893   : > { %2188 = vmatpush3.bf16.msra.mxu1 %v1373_v49 }
 0x894   : > { %2189 = vmatprep.subr.bf16.mxu1 %v2599_v7  ;;  %v1377_v51 = vpop.permute.xlu1 %1376 }
 0x896   : > { %v1379_v54 = vpop.permute.xlu0 %1378 }
 0x897   : > { %2190 = vmatpush3.bf16.msra.mxu1 %v1375_v50 }
 0x898   : > { %2191 = vmatprep.subr.bf16.mxu1 %v2599_v7  ;;  %v1381_v55 = vpop.permute.xlu1 %1380 }
 0x899   : > { %v2434_v52 = vpop.eup %2433 }
 0x89a   : > { %1361 = vadd.xlane.f32.xlu0 %v2434_v52  ;;  %v1383_v56 = vpop.permute.xlu0 %1382 }
 0x89b   : > { %v2436_v53 = vpop.eup %2435  ;;  %2192 = vmatpush3.bf16.msra.mxu1 %v1377_v51 }
 0x89c   : > { %1363 = vadd.xlane.f32.xlu1 %v2436_v53  ;;  %2193 = vmatprep.subr.bf16.mxu1 %v2599_v7  ;;  %v1385_v57 = vpop.permute.xlu1 %1384 }
 0x89f   : > { %2194 = vmatpush3.bf16.msra.mxu1 %v1379_v54 }
 0x8a0   : > { %2195 = vmatprep.subr.bf16.mxu1 %v2599_v7 }
 0x8a3   : > { %2196 = vmatpush3.bf16.msra.mxu1 %v1381_v55 }
 0x8a4   : > { %2197 = vmatprep.subr.bf16.mxu1 %v2599_v7 }
 0x8a7   : > { %2198 = vmatpush3.bf16.msra.mxu1 %v1383_v56 }
 0x8a8   : > { %2199 = vmatprep.subr.bf16.mxu1 %v2599_v7 }
 0x8ab   : > { %2200 = vmatpush3.bf16.msra.mxu1 %v1385_v57 }
 0x8ac   : > { %2205 = vmatprep.subr.bf16.mxu1 %v2599_v7 }
 0x8ad   : > { %1441 = vrot.lane.b32.xlu1 %v2938_v43, %s2607_s17 }
 0x8b0   : > { %1439 = vrot.lane.b32.xlu0 %v2926_v33, %s2607_s17 }
 0x8b1   : > { %1445 = vrot.lane.b32.xlu1 %v2605_v0, %s2607_s17 }
 0x8b4   : > { %1443 = vrot.lane.b32.xlu0 %v2605_v0, %s2607_s17 }
 0x8b5   : > { %1449 = vrot.lane.b32.xlu1 %v2605_v0, %s2607_s17 }
 0x8b8   : > { %1447 = vrot.lane.b32.xlu0 %v2605_v0, %s2607_s17 }
 0x8b9   : > { %1453 = vrot.lane.b32.xlu1 %v2605_v0, %s2607_s17 }
 0x8bc   : > { %1451 = vrot.lane.b32.xlu0 %v2605_v0, %s2607_s17 }
 0x8c0   : > { %1437 = vrot.lane.b32.xlu0 %v2934_v42, %s2607_s17 }
 0x927   : > { %v1362_v33 = vpop.xlane.xlu0 %1361 }
 0x928   : > { %2437 = vrcp.f32 %v1362_v33 }
 0x929   : > { %v1364_v43 = vpop.xlane.xlu1 %1363 }
 0x92a   : > { %2439 = vrcp.f32 %v1364_v43 }
 0x92b   : > { %v1440_v4 = vpop.permute.xlu0 %1439 }
 0x92c   : > { %v1459_v42 = vsel %vm947_vm2, %v1440_v4, 0  ;;  %v2405_v4 = vld [vmem:[#allocation7 + $0x20] sm:$0xff]  }
 0x92d   : > { %v1442_v5 = vpop.permute.xlu1 %1441 }
 0x92e   : > { %v1462_v63 = vsel %vm947_vm2, %v1442_v5, 0 }
 0x92f   : > { %v1444_v6 = vpop.permute.xlu0 %1443 }
 0x930   : > { %v1465_v1 = vsel %vm947_vm2, %v1444_v6, 0 }
 0x931   : > { %v1446_v10 = vpop.permute.xlu1 %1445 }
 0x932   : > { %v2438_v58 = vpop.eup %2437  ;;  %v1468_v11 = vsel %vm947_vm2, %v1446_v10, 0 }
 0x933   : > { %v1366_v60 = vmul.f32 %v2438_v58, %v2434_v52  ;;  %v1448_v12 = vpop.permute.xlu0 %1447 }
 0x934   : > { %v2440_v61 = vpop.eup %2439  ;;  %v1471_v14 = vsel %vm947_vm2, %v1448_v12, 0 }
 0x935   : > { %v1368_v2 = vmul.f32 %v2440_v61, %v2436_v53  ;;  %v3140_v3 = vadd.f32 %v1366_v60, %v1263_v59  ;;  %v1450_v15 = vpop.permute.xlu1 %1449  ;;  %v2401_v61 = vld [vmem:[#allocation7] sm:$0xff]  }
 0x936   : > { %v1474_v13 = vsel %vm947_vm2, %v1450_v15, 0 }
 0x937   : > { %v1369_v8 = vpack.c.bf16 %v1368_v2, %v1366_v60  ;;  %v3142_v9 = vadd.f32 %v1368_v2, %v1264_v62  ;;  %v1452_v16 = vpop.permute.xlu0 %1451  ;;  %v2402_v62 = vld [vmem:[#allocation7 + $0x8] sm:$0xff]   ;;  %v2403_v2 = vld [vmem:[#allocation7 + $0x10] sm:$0xff]  }
 0x938   : > { %v1477_v17 = vsel %vm947_vm2, %v1452_v16, 0 }
 0x939   : > { %2202 = vmatmul.mubr.bf16.vlgmr.msra.gmra.mrb[12].mxu1 %v1369_v8  ;;  %v1454_v18 = vpop.permute.xlu1 %1453  ;;  %v2406_v8 = vld [vmem:[#allocation7 + $0x28] sm:$0xff]  }
 0x93a   : > { %2206 = vmatpush3.bf16.xpose.msra.mxu1 %v1459_v42  ;;  %2221 = vmatprep.mubr.msk.bf16.mxu1 %vm2601_vm0, %v2599_v7  ;;  %v1480_v19 = vsel %vm947_vm2, %v1454_v18, 0  ;;  %v2408_v42 = vld [vmem:[#allocation7 + $0x38] sm:$0xff]  }
 0x93b   : > { %2207 = vmatprep.subr.bf16.mxu1 %v2599_v7  ;;  %v1438_v20 = vpop.permute.xlu0 %1437 }
 0x942   : > { %2208 = vmatpush3.bf16.xpose.msra.mxu1 %v1462_v63 }
 0x943   : > { %2209 = vmatprep.subr.bf16.mxu1 %v2599_v7 }
 0x94a   : > { %2210 = vmatpush3.bf16.xpose.msra.mxu1 %v1465_v1 }
 0x94b   : > { %2211 = vmatprep.subr.bf16.mxu1 %v2599_v7 }
 0x952   : > { %2212 = vmatpush3.bf16.xpose.msra.mxu1 %v1468_v11 }
 0x953   : > { %2213 = vmatprep.subr.bf16.mxu1 %v2599_v7 }
 0x95a   : > { %2214 = vmatpush3.bf16.xpose.msra.mxu1 %v1471_v14 }
 0x95b   : > { %2215 = vmatprep.subr.bf16.mxu1 %v2599_v7 }
 0x962   : > { %2216 = vmatpush3.bf16.xpose.msra.mxu1 %v1474_v13 }
 0x963   : > { %2217 = vmatprep.subr.bf16.mxu1 %v2599_v7 }
 0x96a   : > { %2218 = vmatpush3.bf16.xpose.msra.mxu1 %v1477_v17 }
 0x96b   : > { %2219 = vmatprep.subr.bf16.mxu1 %v2599_v7 }
 0x972   : > { %2220 = vmatpush3.bf16.xpose.msra.mxu1 %v1480_v19 }
 0x979   : > { %2222 = vmatmul.mubr.msk.bf16.vlgmr.msra.gmra.mrb[16].mxu1 %vm947_vm2, %v1438_v20 }
 0xa0c   : > { %v1428_v21 = vpop.f32.mrb[12].mxu1 }
 0xa0d   : > { %v2203_v22 = vpop.f32.mrb[13].mxu1 }
 0xa0e   : > { %v1431_v24 = vpop.f32.mrb[14].mxu1 }
 0xa0f   : > { %v2359_v29 = vpack.i.bf16 %v1431_v24, %v1428_v21  ;;  %v2204_v30 = vpop.f32.mrb[15].mxu1 }
 0xa4c   : > { %v1516_v31 = vpop.f32.mrb[16].mxu1 }
 0xa4d   : > { %v1517_v32 = vadd.f32 %v1516_v31, %v2948_v47  ;;  %v2223_v34 = vpop.f32.mrb[17].mxu1 }
 0xa4e   : > { %v1519_v36 = vpop.f32.mrb[18].mxu1 }
 0xa4f   : > { %v1520_v37 = vadd.f32 %v1519_v36, %v2948_v47  ;;  %1523 = vmax.xlane.f32.xlu1 %v1517_v32  ;;  %v2224_v38 = vpop.f32.mrb[19].mxu1 }
 0xa51   : > { %1525 = vmax.xlane.f32.xlu0 %v1520_v37 }
 0xa60   : > { %1544 = vrot.lane.b32.xlu1 %v3015_v39, %s2607_s17 }
 0xa64   : > { %1550 = vrot.lane.b32.xlu1 %v2605_v0, %s2607_s17 }
 0xa67   : > { %1542 = vrot.lane.b32.xlu0 %v2928_v35, %s2607_s17 }
 0xa6b   : > { %1546 = vrot.lane.b32.xlu0 %v2605_v0, %s2607_s17 }
 0xa6f   : > { %1548 = vrot.lane.b32.xlu0 %v2605_v0, %s2607_s17 }
 0xa73   : > { %1552 = vrot.lane.b32.xlu0 %v2605_v0, %s2607_s17 }
 0xa77   : > { %1556 = vrot.lane.b32.xlu0 %v2605_v0, %s2607_s17 }
 0xa7b   : > { %2360 = vrot.lane.b32.xlu0 %v2359_v29, %s2606_s24 }
 0xadc   : > { %v1524_v47 = vpop.xlane.xlu1 %1523 }
 0xadd   : > { %v1527_v39 = vsub.f32 %v1517_v32, %v1524_v47 }
 0xade   : > { %v1526_v40 = vpop.xlane.xlu0 %1525 }
 0xadf   : > { %v1529_v41 = vmul.f32 1.442695, %v1527_v39  ;;  %v1528_v44 = vsub.f32 %v1520_v37, %v1526_v40 }
 0xae0   : > { %v1545_v46 = vpop.permute.xlu1 %1544 }
 0xae1   : > { %2441 = vpow2.f32 %v1529_v41  ;;  %v1531_v35 = vmul.f32 1.442695, %v1528_v44 }
 0xae2   : > { %v1543_v45 = vpop.permute.xlu0 %1542 }
 0xae3   : > { %2226 = vmatpush3.bf16.msra.mxu0 %v1543_v45  ;;  %2443 = vpow2.f32 %v1531_v35 }
 0xae4   : > { %2227 = vmatprep.subr.bf16.mxu0 %v2599_v7  ;;  %v1551_v52 = vpop.permute.xlu1 %1550 }
 0xae6   : > { %v1547_v48 = vpop.permute.xlu0 %1546 }
 0xae7   : > { %2228 = vmatpush3.bf16.msra.mxu0 %v1545_v46 }
 0xae8   : > { %2229 = vmatprep.subr.bf16.mxu0 %v2599_v7 }
 0xaea   : > { %v1549_v50 = vpop.permute.xlu0 %1548 }
 0xaeb   : > { %v2442_v49 = vpop.eup %2441  ;;  %2230 = vmatpush3.bf16.msra.mxu0 %v1547_v48 }
 0xaec   : > { %1533 = vadd.xlane.f32.xlu1 %v2442_v49  ;;  %2231 = vmatprep.subr.bf16.mxu0 %v2599_v7 }
 0xaed   : > { %v2444_v51 = vpop.eup %2443 }
 0xaee   : > { %v1553_v53 = vpop.permute.xlu0 %1552 }
 0xaef   : > { %2232 = vmatpush3.bf16.msra.mxu0 %v1549_v50 }
 0xaf0   : > { %1535 = vadd.xlane.f32.xlu1 %v2444_v51  ;;  %2233 = vmatprep.subr.bf16.mxu0 %v2599_v7 }
 0xaf2   : > { %v1557_v33 = vpop.permute.xlu0 %1556 }
 0xaf3   : > { %2234 = vmatpush3.bf16.msra.mxu0 %v1551_v52 }
 0xaf4   : > { %2235 = vmatprep.subr.bf16.mxu0 %v2599_v7 }
 0xaf6   : > { %v2361_v15 = vpop.permute.xlu0 %2360 }
 0xaf7   : > { %2236 = vmatpush3.bf16.msra.mxu0 %v1553_v53  ;;  %v2363_v16 = vunpack.i.h.bf16 %v2361_v15  ;;  %v2362_v17 = vunpack.i.l.bf16 %v2361_v15 }
 0xaf8   : > { %2237 = vmatprep.subr.bf16.mxu0 %v2599_v7 }
 0xb01   : > { %1554 = vrot.lane.b32.xlu1 %v2605_v0, %s2607_s17 }
 0xb05   : > { %2355 = vrot.lane.b32.xlu1 %v2354_v27, %s2607_s17 }
 0xb79   : > { %v1534_v54 = vpop.xlane.xlu1 %1533 }
 0xb7a   : > { %2445 = vrcp.f32 %v1534_v54 }
 0xb7d   : > { %v1536_v55 = vpop.xlane.xlu1 %1535 }
 0xb7e   : > { %2447 = vrcp.f32 %v1536_v55 }
 0xb81   : > { %v1555_v56 = vpop.permute.xlu1 %1554 }
 0xb82   : > { %2238 = vmatpush3.bf16.msra.mxu0 %v1555_v56 }
 0xb83   : > { %2239 = vmatprep.subr.bf16.mxu0 %v2599_v7 }
 0xb84   : > { %v2446_v57 = vpop.eup %2445 }
 0xb85   : > { %v1538_v43 = vmul.f32 %v2446_v57, %v2442_v49  ;;  %v2356_v11 = vpop.permute.xlu1 %2355 }
 0xb86   : > { %2240 = vmatpush3.bf16.msra.mxu0 %v1557_v33  ;;  %v2358_v12 = vunpack.i.h.bf16 %v2356_v11  ;;  %v2357_v14 = vunpack.i.l.bf16 %v2356_v11 }
 0xb87   : > { %v1607_v0 = vadd.f32 %v1538_v43, %v3140_v3  ;;  %2245 = vmatprep.subr.bf16.mxu0 %v2599_v7  ;;  %v2404_v3 = vld [vmem:[#allocation7 + $0x18] sm:$0xff]  }
 0xb88   : > { %v2448_v23 = vpop.eup %2447  ;;  %v1634_v13 = vsel %vm947_vm2, %v3008_v28, %v2358_v12 }
 0xb89   : > { %v1540_v25 = vmul.f32 %v2448_v23, %v2444_v51  ;;  %v1758_v27 = vmul.f32 0.25, %v1607_v0  ;;  %v1637_v22 = vsel %vm1635_vm6, %v1634_v13, %v2363_v16 }
 0xb8b   : > { %v1541_v58 = vpack.c.bf16 %v1540_v25, %v1538_v43  ;;  %v1608_v59 = vadd.f32 %v1540_v25, %v3142_v9  ;;  %1760 = vst [vmem:[%s3198_s12] sm:$0xff] %v1758_v27  ;;  %v2407_v9 = vld [vmem:[#allocation7 + $0x30] sm:$0xff]  }
 0xb8d   : > { %2242 = vmatmul.mubr.bf16.vlgmr.msra.gmra.mrb[16].mxu0 %v1541_v58  ;;  %v1759_v60 = vmul.f32 0.25, %v1608_v59 }
 0xb8e   : > { %2261 = vmatprep.mubr.msk.bf16.mxu0 %vm2601_vm0, %v2599_v7  ;;  %2246 = vmatpush3.bf16.msra.mxu0 %v2401_v61 }
 0xb8f   : > { %1761 = vst [vmem:[%s3198_s12 + $0x8] sm:$0xff] %v1759_v60  ;;  %2247 = vmatprep.subr.bf16.mxu0 %v2599_v7 }
 0xb92   : > { %2248 = vmatpush3.bf16.msra.mxu0 %v2402_v62 }
 0xb93   : > { %2249 = vmatprep.subr.bf16.mxu0 %v2599_v7 }
 0xb96   : > { %2250 = vmatpush3.bf16.msra.mxu0 %v2403_v2 }
 0xb97   : > { %2251 = vmatprep.subr.bf16.mxu0 %v2599_v7 }
 0xb9a   : > { %2252 = vmatpush3.bf16.msra.mxu0 %v2404_v3 }
 0xb9b   : > { %2253 = vmatprep.subr.bf16.mxu0 %v2599_v7 }
 0xb9e   : > { %2254 = vmatpush3.bf16.msra.mxu0 %v2405_v4 }
 0xb9f   : > { %2255 = vmatprep.subr.bf16.mxu0 %v2599_v7 }
 0xba2   : > { %2256 = vmatpush3.bf16.msra.mxu0 %v2406_v8 }
 0xba3   : > { %2257 = vmatprep.subr.bf16.mxu0 %v2599_v7 }
 0xba6   : > { %2258 = vmatpush3.bf16.msra.mxu0 %v2407_v9 }
 0xba7   : > { %2259 = vmatprep.subr.bf16.mxu0 %v2599_v7  ;;  %v1633_v7 = vsel %vm947_vm2, %v3006_v26, %v2357_v14 }
 0xba8   : > { %v1636_v21 = vsel %vm1635_vm6, %v1633_v7, %v2362_v17 }
 0xbaa   : > { %2260 = vmatpush3.bf16.msra.mxu0 %v2408_v42 }
 0xc60   : > { %v1600_v5 = vpop.f32.mrb[16].mxu0 }
 0xc61   : > { %v2243_v63 = vpop.f32.mrb[17].mxu0 }
 0xc62   : > { %v1603_v6 = vpop.f32.mrb[18].mxu0 }
 0xc63   : > { %v2364_v1 = vpack.i.bf16 %v1603_v6, %v1600_v5  ;;  %v2244_v10 = vpop.f32.mrb[19].mxu0 }
 0xc65   : > { %2365 = vrot.lane.b32.xlu1 %v2364_v1, %s2603_s23  ;;  %s2507_s23 = scalar_lea.vmem %s3223_s22, 256 }
 0xc66   : > { %p2508_p13 = scmp.ne.s32.totalorder %s3223_s22, %s2507_s23  ;;  %p2515_p3 = scmp.lt.s32.totalorder %s2513_s14, %s2507_s23 }
 0xc68   : > { %p2509_p10 = pnand %p2508_p13, %p3323_p8  ;;  %p2516_p5 = por %p2515_p3, %p2514_p2 }
 0xc6a   : > { %p2510_p11 = pneg %p2509_p10 }
 0xc6c   : > { %p2517_p6 = pnand %p2516_p5, %p2510_p11 }
 0xcd7   : > { %v2366_v18 = vpop.permute.xlu1 %2365 }
 0xcd8   : > { %v2368_v19 = vunpack.i.h.bf16 %v2366_v18  ;;  %v2367_v20 = vunpack.i.l.bf16 %v2366_v18 }
 0xcda   : > { %v1639_v24 = vsel %vm1638_vm7, %v1636_v21, %v2367_v20  ;;  %v1640_v29 = vsel %vm1638_vm7, %v1637_v22, %v2368_v19 }
 0xcdb   : > { %v1641_v30 = vpack.c.bf16 %v1640_v29, %v1639_v24 }
 0xcdd   : > { %2262 = vmatmul.mubr.bf16.vlgmr.msra.gmra.mrb[20].mxu0 %v1641_v30 }
 0xcde   : > { %2520 = shalt.err (!%p2517_p6)
}
 0xcdf   : > { %s2521_s24 = scalar_lea.hbm %s3221_s29, 256  ;;  %s2525_s11 = scalar_lea.hbm %s3295_s13, 512 }
 0xce0   : > { %p2522_p7 = scmp.ne.s32.totalorder %s3221_s29, %s2521_s24  ;;  %p2526_p0 = scmp.lt.u32.totalorder %s3221_s29, %s3295_s13 }
 0xce1   : > { %p2527_p4 = scmp.lt.u32.totalorder %s2525_s11, %s2521_s24  ;;  %p2529_p13 = scmp.lt.u32.totalorder %s2521_s24, %s3221_s29 }
 0xce2   : > { %p2523_p9 = pnand %p2522_p7, %p3323_p8 }
 0xce3   : > { %p2528_p1 = por %p2527_p4, %p2526_p0 }
 0xce4   : > { %p2524_p12 = pneg %p2523_p9 }
 0xce5   : > { %p2530_p10 = por %p2529_p13, %p2528_p1 }
 0xce7   : > { %p2531_p11 = pnand %p2530_p10, %p2524_p12 }
 0xce9   : > { %2534 = shalt.err (!%p2531_p11)
}
 0xcea   : > { %s2609_s19 = smov 128   ;;  %s2610_s27 = smov 8   ;;  %v2449_v36 = vld [vmem:[%s2823_s20] sm:$0xff]  ;;  %v2450_v39 = vld [vmem:[%s2823_s20 + $0x8] sm:$0xff] }
 0xceb   : > { %2273 = dma.vmem_to_hbm [thread:$0]  (%p3323_p8), %s3223_s22, 256, %s3221_s29, %s3227_s25, %s2609_s19, %s2609_s19, %s2610_s27  }
 0xcec   : > { %s3324_s21 = sld [smem:[#allocation20_spill]]  ;;  %s3325_s17 = sld [smem:[#allocation21_spill]] }
 0xcf2   : > { %v1990_v26 = vld [vmem:[%s3324_s21] ss:$0 sm:$0xff]  ;;  %s541_s15 = scalar_lea.vmem %s3325_s17, %s2813_s16 }
 0xdb0   : > { %v1747_v28 = vpop.f32.mrb[20].mxu0 }
 0xdb1   : > { %v1748_v31 = vadd.f32 %v1990_v26, %v1747_v28  ;;  %v2263_v32 = vpop.f32.mrb[21].mxu0 }
 0xdb2   : > { %v1750_v34 = vpop.f32.mrb[22].mxu0 }
 0xdb3   : > { %v1754_v37 = vadd.f32 %v2449_v36, %v1748_v31  ;;  %v1751_v38 = vadd.f32 %v1990_v26, %v1750_v34  ;;  %v2264_v47 = vpop.f32.mrb[23].mxu0 }
 0xdb5   : > { %1756 = vst [vmem:[%s541_s15] sm:$0xff] %v1754_v37  ;;  %v1755_v40 = vadd.f32 %v2450_v39, %v1751_v38 }
 0xdb7   : > { %1757 = vst [vmem:[%s541_s15 + $0x8] sm:$0xff] %v1755_v40 }
 0xdb8 PF: > { %s3326_s18 = sld [smem:[#allocation16_spill]]  ;;  %s3327_s22 = sld [smem:[#allocation13_spill]] }
 0xdb9   : > { %s3328_s29 = sld [smem:[#allocation18_spill]] }
 0xdbe   : > { %p2290_p8 = scmp.ge.s32.totalorder %s3326_s18, 2  ;;  %s1818_s25 = sand.u32 1, %s3327_s22  }
 0xdbf   : > { %p3329_p2 = scmp.ne.s32.totalorder %s3328_s29, 0  ;;  %s1819_s11 = scalar_lea.sflag [#allocation6], %s1818_s25 }
 0xdc1   : > { %p2283_p3 = pnand %p2290_p8, %p3329_p2 }
 0xdc3   : > { %2568 = dma.done.wait (!%p2283_p3), %s1819_s11, 256  }
 0xdc4   : > { %2570 = vsyncadd (!%p2283_p3), %s1819_s11, 4294967040  ;;  %s29_s30 = sadd.s32 1, %s3326_s18   ;;  %s3330_s16 = sld [smem:[#allocation14_spill]] }
 0xdc5   : > { %p26_p5 = scmp.ge.s32.totalorder %s29_s30, 4   ;;  %s3331_s27 = sld [smem:[#allocation19_spill]] }
 0xdc6   : > { %s3332_s28 = sld [smem:[#allocation15_spill]]  ;;  %s3333_s29 = sld [smem:[#allocation17_spill]] }
 0xdc7   : > { %s3334_s25 = smov %s2577_s26  ;;  %28 = sbr.rel (!%p26_p5) target bundleno = 9 (0x9), region = 131 }
 0xdca   : > { %s3335_s26 = smov %s3330_s16 }
 0xdce   :  { %1824 = vsyncpa [#allocation5], 1 }
 0xdcf   :  { %1826 = vsyncpa [#allocation5 + $0x1], 1 }
 0xdd0   :  { %1827 = vsyncpa [#allocation8], 1 }
 0xdd1   :  { %1828 = vsyncpa [#allocation6], 1 }
 0xdd2   :  { %1830 = vsyncpa [#allocation6 + $0x1], 1 }

// kernel: transformer_layer_with_structural_adapter.6
= control target key start
LH: loop header
LB: loop body
LE: loop exit
PB: predicated region body
PF: predicated region fallthrough
CT: control target
= control target key end

     0   :  { %s3285_s21 = smov 0   ;;  %s3287_s22 = smov 0   ;;  %s4472_s0 = inlined_call_operand.vmem [shape: f32[2,16,128], index: 0, kind: input, shape index: {}]   ;;  %s4473_s1 = inlined_call_operand.vmem [shape: f32[2,8,64], index: 1, kind: input, shape index: {}]   ;;  %s4474_s2 = inlined_call_operand.vmem [shape: f32[1,128], index: 2, kind: input, shape index: {}]   ;;  %s4475_s3 = inlined_call_operand.vmem [shape: f32[1,128], index: 3, kind: input, shape index: {}]   ;;  %s4476_s4 = inlined_call_operand.vmem [shape: bf16[128,128], index: 4, kind: input, shape index: {}]   ;;  %s4477_s5 = inlined_call_operand.vmem [shape: f32[1,128], index: 5, kind: input, shape index: {}]   ;;  %s4478_s6 = inlined_call_operand.vmem [shape: bf16[64,256], index: 6, kind: input, shape index: {}]   ;;  %s4479_s7 = inlined_call_operand.vmem [shape: f32[1,256], index: 7, kind: input, shape index: {}]   ;;  %s4480_s8 = inlined_call_operand.vmem [shape: f32[1,128], index: 8, kind: input, shape index: {}]   ;;  %s4481_s9 = inlined_call_operand.vmem [shape: f32[1,128], index: 9, kind: input, shape index: {}]   ;;  %s4482_s10 = inlined_call_operand.vmem [shape: bf16[128,128], index: 10, kind: input, shape index: {}]   ;;  %s4483_s11 = inlined_call_operand.vmem [shape: f32[1,128], index: 11, kind: input, shape index: {}]   ;;  %s4484_s12 = inlined_call_operand.vmem [shape: f32[16,32], index: 12, kind: input, shape index: {}]   ;;  %s4485_s13 = inlined_call_operand.vmem [shape: f32[16,32], index: 13, kind: input, shape index: {}]   ;;  %s4486_s14 = inlined_call_operand.vmem [shape: f32[128,32], index: 14, kind: input, shape index: {}]   ;;  %s4487_s15 = inlined_call_operand.vmem [shape: f32[128,32], index: 15, kind: input, shape index: {}]   ;;  %s4488_s16 = inlined_call_operand.vmem [shape: f32[2,16,128], index: 16, kind: output, shape index: {}]  }
   0x1   :  { %4498 = sst [smem:[#allocation11_spill]] %s4472_s0  ;;  %s3289_s23 = smov 0  }
   0x2 LB: > { %4499 = sst [smem:[#allocation4_spill]] %s3181_s22  ;;  %s38_s24 = sadd.s32 1, %s3181_s22  ;;  %s3185_s23 = sphi %s3289_s23, %s26_s23   ;;  %s3181_s22 = sphi %s3287_s22, %s4517_s22   ;;  %s3177_s21 = sphi %s3285_s21, %s4516_s21  }
   0x3   : > { %p2728_p0 = scmp.ge.s32.totalorder %s3185_s23, 1  ;;  %p40_p1 = scmp.ge.s32.totalorder %s38_s24, 2 }
   0x4   : > { %p514_p2 = scmp.lt.s32.totalorder %s3185_s23, 3 }
   0x5   : > { %s4519_s24 = smov (%p40_p1, %s38_s24), 0 }
   0x6   : > { %4500 = sst [smem:[#allocation5_spill]] %s4519_s24  ;;  %p515_p3 = pnand %p2728_p0, %p514_p2 }
   0x8   : > { %518 = sbr.rel (%p515_p3) target bundleno = 2778 (0xada), region = 84 }
   0xf   : > { %p587_p4 = scmp.lt.s32.totalorder %s3177_s21, 1  ;;  %s4501_s28 = sld [smem:[#allocation11_spill]]  ;;  %v3095_v2 = vld [vmem:[%s4478_s6 + $0x4] ss:$8 sps:$4 sm:$0xff]   ;;  %v3097_v3 = vld [vmem:[%s4478_s6] ss:$8 sps:$4 sm:$0xff]   ;;  %v4493_v37 = vlaneseq }
  0x10   : > { %v3098_v4 = vld [vmem:[%s4478_s6 + $0x14] ss:$8 sps:$4 sm:$0xff]   ;;  %693 = vmatprep.subr.bf16.mxu0 %v3095_v2  ;;  %v3100_v5 = vld [vmem:[%s4478_s6 + $0x10] ss:$8 sps:$4 sm:$0xff]   ;;  %v3187_v6 = vmov 0   ;;  %vm689_vm0 = vcmask 523264  }
  0x11   : > { %s4521_s21 = smov (!%p587_p4, %s3177_s21), 1  ;;  %694 = vmatpush1.bf16.msra.mxu0 %v3097_v3  ;;  %725 = vmatprep.mubr.bf16.mxu0 %v3187_v6  ;;  %v3101_v7 = vld [vmem:[%s4478_s6 + $0x24] ss:$8 sps:$4 sm:$0xff]   ;;  %v3103_v8 = vld [vmem:[%s4478_s6 + $0x20] ss:$8 sps:$4 sm:$0xff]   ;;  %v4494_v13 = vmov 0.0  }
  0x12   : > { %s4489_s25 = sshll.u32 %s4521_s21, 4  ;;  %695 = vmatprep.subr.bf16.mxu0 %v3098_v4  ;;  %s2731_s0 = sshll.u32 %s4521_s21, 3  ;;  %v3104_v9 = vld [vmem:[%s4478_s6 + $0x34] ss:$8 sps:$4 sm:$0xff]   ;;  %v3106_v10 = vld [vmem:[%s4478_s6 + $0x30] ss:$8 sps:$4 sm:$0xff]   ;;  %2857 = vmatprep.subr.bf16.mxu1 %v4494_v13 }
  0x13   : > { %s3190_s30 = smov 48   ;;  %v739_v14 = vld [vmem:[%s4486_s14] sm:$0xff]  ;;  %s3191_s17 = smov 32   ;;  %vm736_vm1 = vcmask 1040384   ;;  %v3108_v25 = vld [vmem:[%s4476_s4 + $0x8] sm:$0xff]   ;;  %v3109_v27 = vld [vmem:[%s4476_s4 + $0x10] sm:$0xff]  }
  0x14   : > { %v3107_v15 = vld [vmem:[%s4476_s4] sm:$0xff]   ;;  %s3192_s18 = smov 64   ;;  %s4491_s19 = smov 96   ;;  %v3110_v29 = vld [vmem:[%s4476_s4 + $0x18] sm:$0xff]   ;;  %v3112_v31 = vld [vmem:[%s4476_s4 + $0x28] sm:$0xff]   ;;  %vm3196_vm2 = vmmov 0  }
  0x15   : > { %s3311_s29 = scalar_lea.vmem %s4501_s28, %s4489_s25  ;;  %696 = vmatpush1.bf16.msra.mxu0 %v3100_v5  ;;  %s599_s25 = scalar_lea.vmem %s4473_s1, %s2731_s0  ;;  %2858 = vmatpush3.bf16.msra.mxu1 %v3107_v15  ;;  %v734_v24 = vld [vmem:[%s4480_s8] sm:$0x1]  ;;  %v3113_v32 = vld [vmem:[%s4476_s4 + $0x30] sm:$0xff]   ;;  %v3114_v33 = vld [vmem:[%s4476_s4 + $0x38] sm:$0xff]   ;;  %v3444_v38 = vshrl.u32 %v4493_v37, 7  ;;  %vm812_vm3 = vcmask 130048  }
  0x16   : > { %v1471_v0 = vld [vmem:[%s3311_s29] sm:$0xff]  ;;  %v1472_v1 = vld [vmem:[%s3311_s29 + $0x8] sm:$0xff]  ;;  %697 = vmatprep.subr.bf16.mxu0 %v3101_v7  ;;  %s3189_s28 = smov 112   ;;  %2859 = vmatprep.subr.bf16.mxu1 %v4494_v13  ;;  %v3375_v26 = vsel %vm736_vm1, %v734_v24, 0.0  ;;  %s3194_s26 = smov 80   ;;  %v3412_v34 = vld [vmem:[%s4486_s14 + $0x10] sm:$0xff] }
  0x17   : > { %1475 = vadd.xlane.f32.xlu0 %v1471_v0  ;;  %v627_v11 = vld [vmem:[%s599_s25] sm:$0xff]  ;;  %v788_v28 = vsub.f32 0.0, %v3375_v26  ;;  %s3195_s24 = smov 16   ;;  %2873 = vmatprep.mubr.msk.bf16.mxu1 %vm3196_vm2, %v4494_v13  ;;  %v3435_v35 = vld [vmem:[%s4486_s14 + $0x8] sm:$0xff]  ;;  %v645_v39 = vsub.s32 1, %v3444_v38  ;;  %s4504_s22 = smov 96  }
  0x18   : > { %v628_v12 = vpack.c.bf16 %v627_v11, %v627_v11  ;;  %v3111_v30 = vld [vmem:[%s4476_s4 + $0x20] sm:$0xff]   ;;  %v3465_v56 = vld [vmem:[%s4487_s15 + $0x8] sm:$0xff]  ;;  %v3515_v24 = vld [vmem:[%s4487_s15 + $0x18] sm:$0xff]  ;;  %vm1395_vm4 = vcmask 261120   ;;  %vm1428_vm5 = vcmask 785408   ;;  %vm3197_vm6 = vmmov 1  }
  0x19   : > { %698 = vmatpush1.bf16.msra.mxu0 %v3103_v8  ;;  %2860 = vmatpush3.bf16.msra.mxu1 %v3108_v25  ;;  %v735_v41 = vld [vmem:[%s4481_s9] sm:$0x1]  ;;  %vm2771_vm7 = vmpackc.low %vm736_vm1, %vm3197_vm6  ;;  %s4515_s0 = sshll.u32 %s4521_s21, 4 }
  0x1a   : > { %699 = vmatprep.subr.bf16.mxu0 %v3104_v9  ;;  %2861 = vmatprep.subr.bf16.mxu1 %v4494_v13  ;;  %v3453_v42 = vld [vmem:[%s4479_s7] sm:$0x3]  ;;  %v738_v46 = vsel %vm736_vm1, %v735_v41, 0.0  ;;  %v3563_v41 = vld [vmem:[%s4486_s14 + $0x28] sm:$0xff] }
  0x1b   : > { %1477 = vadd.xlane.f32.xlu0 %v1472_v1  ;;  %v646_v44 = vrot.slane %v3453_v42, %v645_v39  ;;  %v2743_v63 = vld [vmem:[%s4474_s2] ss:$0 sm:$0xff] }
  0x1c   : > { %v2744_v5 = vld [vmem:[%s4475_s3] ss:$0 sm:$0xff] }
  0x1d   : > { %700 = vmatpush1.bf16.msra.mxu0 %v3106_v10  ;;  %2862 = vmatpush3.bf16.msra.mxu1 %v3109_v27  ;;  %v3553_v39 = vld [vmem:[%s4487_s15 + $0x20] sm:$0xff] }
  0x1e   : > { %2877 = vmatprep.subr.bf16.mxu0 %v4494_v13  ;;  %2863 = vmatprep.subr.bf16.mxu1 %v4494_v13 }
  0x20   : > { %2742 = vmatmul.mubr.msk.bf16.vlgmr.msra.gmra.mrb[0].mxu0 %vm689_vm0, %v628_v12 }
  0x21   : > { %2864 = vmatpush3.bf16.msra.mxu1 %v3110_v29  ;;  %2893 = vmatprep.mubr.msk.bf16.mxu0 %vm3196_vm2, %v4494_v13 }
  0x22   : > { %2865 = vmatprep.subr.bf16.mxu1 %v4494_v13 }
  0x25   : > { %2866 = vmatpush3.bf16.msra.mxu1 %v3111_v30 }
  0x26   : > { %2867 = vmatprep.subr.bf16.mxu1 %v4494_v13 }
  0x29   : > { %2868 = vmatpush3.bf16.msra.mxu1 %v3112_v31 }
  0x2a   : > { %2869 = vmatprep.subr.bf16.mxu1 %v4494_v13 }
  0x2d   : > { %2870 = vmatpush3.bf16.msra.mxu1 %v3113_v32  ;;  %v3543_v32 = vld [vmem:[%s4486_s14 + $0x20] sm:$0xff] }
  0x2e   : > { %2871 = vmatprep.subr.bf16.mxu1 %v4494_v13 }
  0x31   : > { %796 = vrot.lane.b32.xlu0 %v4494_v13, %s3189_s28  ;;  %2872 = vmatpush3.bf16.msra.mxu1 %v3114_v33 }
  0x32   : > { %2903 = vmatprep.subr.bf16.mxu1 %v4494_v13 }
  0x35   : > { %1110 = vrot.lane.b32.xlu0 %v4494_v13, %s3190_s30 }
  0x39   : > { %864 = vrot.lane.b32.xlu0 %v739_v14, %s3191_s17 }
  0x3d   : > { %1042 = vrot.lane.b32.xlu0 %v739_v14, %s3192_s18 }
  0x41   : > { %1220 = vrot.lane.b32.xlu0 %v739_v14, %s4491_s19 }
  0x45   : > { %868 = vrot.lane.b32.xlu0 %v3412_v34, %s3191_s17 }
  0x49   : > { %1046 = vrot.lane.b32.xlu0 %v3412_v34, %s3192_s18 }
  0xa4   : > { %v1476_v16 = vpop.xlane.xlu0 %1475 }
  0xa5   : > { %v1480_v17 = vmul.f32 0.0078125, %v1476_v16 }
  0xa7   : > { %v3360_v18 = vsub.f32 %v1471_v0, %v1480_v17  ;;  %v3492_v17 = vld [vmem:[%s4487_s15 + $0x10] sm:$0xff] }
  0xa8   : > { %v1478_v19 = vpop.xlane.xlu0 %1477 }
  0xa9   : > { %v1481_v20 = vmul.f32 0.0078125, %v1478_v19  ;;  %v1484_v21 = vmul.f32 %v3360_v18, %v3360_v18 }
  0xab   : > { %1486 = vadd.xlane.f32.xlu1 %v1484_v21  ;;  %v3364_v22 = vsub.f32 %v1472_v1, %v1481_v20  ;;  %v3502_v20 = vld [vmem:[%s4486_s14 + $0x18] sm:$0xff] }
  0xac   : > { %v3487_v16 = vpop.permute.xlu0 %796 }
  0xad   : > { %v1485_v23 = vmul.f32 %v3364_v22, %v3364_v22 }
  0xaf   : > { %1488 = vadd.xlane.f32.xlu1 %v1485_v23 }
  0xc0   : > { %930 = vrot.lane.b32.xlu1 %v788_v28, %s3194_s26 }
  0xc4   : > { %939 = vrot.lane.b32.xlu1 %v3375_v26, %s3189_s28 }
  0xc8   : > { %1108 = vrot.lane.b32.xlu1 %v788_v28, %s3190_s30 }
  0xcc   : > { %1117 = vrot.lane.b32.xlu1 %v3375_v26, %s3194_s26 }
  0xd0   : > { %1286 = vrot.lane.b32.xlu1 %v788_v28, %s3195_s24 }
  0xd4   : > { %1292 = vrot.lane.b32.xlu1 %v3375_v26, %s3190_s30 }
  0xd8   : > { %932 = vrot.lane.b32.xlu1 %v4494_v13, %s3194_s26 }
  0xdc   : > { %807 = vrot.lane.b32.xlu1 %v4494_v13, %s3195_s24 }
  0xe0   : > { %794 = vrot.lane.b32.xlu1 %v788_v28, %s3189_s28 }
  0xe4   : > { %805 = vrot.lane.b32.xlu1 %v3375_v26, %s3195_s24 }
  0xe8   : > { %866 = vrot.lane.b32.xlu1 %v3435_v35, %s3191_s17 }
  0xec   : > { %1044 = vrot.lane.b32.xlu1 %v3435_v35, %s3192_s18 }
  0xf3   : > { %v3441_v36 = vpop.f32.mrb[0].mxu0 }
  0xf4   : > { %v729_v40 = vpop.f32.mrb[1].mxu0 }
  0xf5   : > { %v731_v43 = vpop.f32.mrb[2].mxu0  ;;  %v3457_v47 = vadd.f32 %v729_v40, %v646_v44 }
  0xf6   : > { %v732_v45 = vpop.f32.mrb[3].mxu0  ;;  %v3571_v43 = vld [vmem:[%s4487_s15 + $0x28] sm:$0xff] }
  0xf7   : > { %4502 = vst [vmem:[#allocation6_spill] sm:$0xff] %v3457_v47  ;;  %v3460_v48 = vpack.c.bf16 %v738_v46, %v3457_v47 }
  0xf9   : > { %4503 = vst [vmem:[#allocation7_spill] sm:$0xff] %v3460_v48 }
 0x138   : > { %v1487_v49 = vpop.xlane.xlu1 %1486 }
 0x139   : > { %v1490_v50 = vmul.f32 0.0078125, %v1487_v49 }
 0x13b   : > { %v1492_v51 = vadd.f32 1e-05, %v1490_v50  ;;  %v3593_v50 = vld [vmem:[%s4486_s14 + $0x30] sm:$0xff] }
 0x13c   : > { %v1489_v52 = vpop.xlane.xlu1 %1488 }
 0x13d   : > { %3123 = vrsqrt.f32 %v1492_v51  ;;  %v1491_v53 = vmul.f32 0.0078125, %v1489_v52  ;;  %v3603_v52 = vld [vmem:[%s4487_s15 + $0x30] sm:$0xff] }
 0x13f   : > { %v1493_v54 = vadd.f32 1e-05, %v1491_v53 }
 0x140   : > { %v931_v55 = vpop.permute.xlu1 %930 }
 0x141   : > { %3125 = vrsqrt.f32 %v1493_v54  ;;  %v3613_v54 = vld [vmem:[%s4486_s14 + $0x38] sm:$0xff] }
 0x144   : > { %v940_v57 = vpop.permute.xlu1 %939 }
 0x145   : > { %v944_v58 = vsel %vm812_vm3, %v931_v55, %v940_v57  ;;  %v641_v55 = vsub.s32 0, %v3444_v38  ;;  %v3622_v57 = vld [vmem:[%s4487_s15 + $0x38] sm:$0xff] }
 0x146   : > { %v947_v59 = vmul.f32 %v944_v58, %v3465_v56 }
 0x147   : > { %v3124_v60 = vpop.eup %3123  ;;  %v642_v58 = vrot.slane %v3453_v42, %v641_v55  ;;  %v3646_v42 = vld [vmem:[%s4486_s14 + $0x40] sm:$0xff] }
 0x148   : > { %980 = vrot.lane.b32.xlu1 %v947_v59, %s3191_s17  ;;  %v1109_v61 = vpop.permute.xlu1 %1108  ;;  %v1496_v62 = vmul.f32 %v3124_v60, %v3360_v18 }
 0x149   : > { %v3636_v38 = vadd.f32 %v3441_v36, %v642_v58 }
 0x14a   : > { %v1504_v3 = vmul.f32 %v2743_v63, %v1496_v62 }
 0x14b   : > { %v3126_v0 = vpop.eup %3125 }
 0x14c   : > { %1222 = vrot.lane.b32.xlu1 %v3435_v35, %s4504_s22  ;;  %v1118_v1 = vpop.permute.xlu1 %1117  ;;  %v1497_v2 = vmul.f32 %v3126_v0, %v3364_v22  ;;  %v1512_v9 = vadd.f32 %v2744_v5, %v1504_v3  ;;  %v1111_v22 = vpop.permute.xlu0 %1110  ;;  %v3667_v0 = vld [vmem:[%s4486_s14 + $0x48] sm:$0xff] }
 0x14d   : > { %v1122_v4 = vsel %vm812_vm3, %v1109_v61, %v1118_v1 }
 0x14e   : > { %v1125_v6 = vmul.f32 %v1122_v4, %v3465_v56  ;;  %v1505_v7 = vmul.f32 %v2743_v63, %v1497_v2  ;;  %v3678_v2 = vld [vmem:[%s4487_s15 + $0x48] sm:$0xff]  ;;  %v3687_v4 = vsub.f32 0.0, %v3636_v38 }
 0x150   : > { %1158 = vrot.lane.b32.xlu1 %v1125_v6, %s3192_s18  ;;  %v1287_v8 = vpop.permute.xlu1 %1286  ;;  %v1513_v10 = vadd.f32 %v2744_v5, %v1505_v7  ;;  %v3694_v6 = vpop.permute.xlu0 %864 }
 0x152   : > { %v1514_v11 = vpack.c.bf16 %v1513_v10, %v1512_v9  ;;  %v3707_v9 = vld [vmem:[%s4487_s15 + $0x40] sm:$0xff] }
 0x154   : > { %2874 = vmatmul.mubr.bf16.vlgmr.msra.gmra.mrb[0].mxu1 %v1514_v11  ;;  %v1293_v12 = vpop.permute.xlu1 %1292  ;;  %v3709_v10 = vpop.permute.xlu0 %1042 }
 0x155   : > { %v1297_v14 = vsel %vm812_vm3, %v1287_v8, %v1293_v12  ;;  %2919 = vmatprep.mubr.msk.bf16.mxu1 %vm3196_vm2, %v4494_v13 }
 0x156   : > { %v1300_v15 = vmul.f32 %v1297_v14, %v3465_v56 }
 0x158   : > { %1333 = vrot.lane.b32.xlu1 %v1300_v15, %s4504_s22  ;;  %v933_v18 = vpop.permute.xlu1 %932  ;;  %v3722_v15 = vpop.permute.xlu0 %1220 }
 0x159   : > { %v3497_v19 = vsel %vm812_vm3, %v933_v18, %v3487_v16  ;;  %v3510_v23 = vsel %vm812_vm3, %v1111_v22, %v933_v18  ;;  %4505 = vst [vmem:[#allocation8_spill] sm:$0xff] %v3722_v15  ;;  %v3727_v18 = vld [vmem:[%s4486_s14 + $0x58] sm:$0xff] }
 0x15a   : > { %v948_v21 = vmul.f32 %v3497_v19, %v3492_v17  ;;  %v949_v27 = vmul.f32 %v3497_v19, %v3515_v24  ;;  %v1126_v28 = vmul.f32 %v3510_v23, %v3492_v17  ;;  %v1127_v31 = vmul.f32 %v3510_v23, %v3515_v24 }
 0x15b   : > { %v950_v40 = vmul.f32 %v3497_v19, %v3553_v39  ;;  %v951_v44 = vmul.f32 %v3497_v19, %v3571_v43  ;;  %v1128_v45 = vmul.f32 %v3510_v23, %v3553_v39  ;;  %v1129_v49 = vmul.f32 %v3510_v23, %v3571_v43 }
 0x15c   : > { %870 = vrot.lane.b32.xlu1 %v3502_v20, %s3191_s17  ;;  %982 = vrot.lane.b32.xlu0 %v948_v21, %s3191_s17  ;;  %v3521_v25 = vpop.permute.xlu1 %807  ;;  %v952_v53 = vmul.f32 %v3497_v19, %v3603_v52  ;;  %v953_v59 = vmul.f32 %v3497_v19, %v3622_v57  ;;  %v1130_v60 = vmul.f32 %v3510_v23, %v3603_v52 }
 0x15d   : > { %v3529_v29 = vsel %vm812_vm3, %v3521_v25, %v1111_v22  ;;  %v1131_v36 = vmul.f32 %v3510_v23, %v3622_v57  ;;  %v955_v3 = vmul.f32 %v3497_v19, %v3678_v2  ;;  %v1133_v8 = vmul.f32 %v3510_v23, %v3678_v2 }
 0x15e   : > { %v1301_v30 = vmul.f32 %v3529_v29, %v3492_v17  ;;  %v1302_v33 = vmul.f32 %v3529_v29, %v3515_v24  ;;  %v1303_v46 = vmul.f32 %v3529_v29, %v3553_v39  ;;  %v1304_v51 = vmul.f32 %v3529_v29, %v3571_v43 }
 0x15f   : > { %v1305_v61 = vmul.f32 %v3529_v29, %v3603_v52  ;;  %v1306_v62 = vmul.f32 %v3529_v29, %v3622_v57  ;;  %v1308_v12 = vmul.f32 %v3529_v29, %v3678_v2  ;;  %v954_v14 = vmul.f32 %v3497_v19, %v3707_v9 }
 0x160   : > { %1048 = vrot.lane.b32.xlu1 %v3502_v20, %s3192_s18  ;;  %1224 = vrot.lane.b32.xlu0 %v3412_v34, %s4504_s22  ;;  %v3659_v63 = vpop.permute.xlu1 %794  ;;  %v1132_v22 = vmul.f32 %v3510_v23, %v3707_v9 }
 0x164   : > { %984 = vrot.lane.b32.xlu1 %v949_v27, %s3191_s17  ;;  %1160 = vrot.lane.b32.xlu0 %v1126_v28, %s3192_s18  ;;  %v3673_v1 = vpop.permute.xlu1 %805  ;;  %v869_v27 = vpop.permute.xlu0 %868  ;;  %v3740_v28 = vld [vmem:[%s4487_s15 + $0x58] sm:$0xff] }
 0x168   : > { %1226 = vrot.lane.b32.xlu1 %v3502_v20, %s4504_s22  ;;  %1335 = vrot.lane.b32.xlu0 %v1301_v30, %s4504_s22  ;;  %v3689_v5 = vpop.permute.xlu1 %866 }
 0x16c   : > { %1162 = vrot.lane.b32.xlu1 %v1127_v31, %s3192_s18  ;;  %872 = vrot.lane.b32.xlu0 %v3543_v32, %s3191_s17  ;;  %v3700_v7 = vpop.permute.xlu1 %1044  ;;  %v957_v31 = vmul.f32 %v3497_v19, %v3740_v28 }
 0x170   : > { %1337 = vrot.lane.b32.xlu1 %v1302_v33, %s4504_s22  ;;  %1050 = vrot.lane.b32.xlu0 %v3543_v32, %s3192_s18  ;;  %v1307_v33 = vmul.f32 %v3529_v29, %v3707_v9 }
 0x174   : > { %874 = vrot.lane.b32.xlu1 %v3563_v41, %s3191_s17  ;;  %986 = vrot.lane.b32.xlu0 %v950_v40, %s3191_s17  ;;  %v1047_v40 = vpop.permute.xlu0 %1046 }
 0x178   : > { %1052 = vrot.lane.b32.xlu1 %v3563_v41, %s3192_s18  ;;  %1228 = vrot.lane.b32.xlu0 %v3543_v32, %s4504_s22 }
 0x17c   : > { %988 = vrot.lane.b32.xlu1 %v951_v44, %s3191_s17  ;;  %1164 = vrot.lane.b32.xlu0 %v1128_v45, %s3192_s18  ;;  %v3758_v45 = vld [vmem:[%s4486_s14 + $0x50] sm:$0xff] }
 0x180   : > { %1230 = vrot.lane.b32.xlu1 %v3563_v41, %s4504_s22  ;;  %1339 = vrot.lane.b32.xlu0 %v1303_v46, %s4504_s22 }
 0x184   : > { %1166 = vrot.lane.b32.xlu1 %v1129_v49, %s3192_s18  ;;  %876 = vrot.lane.b32.xlu0 %v3593_v50, %s3191_s17 }
 0x188   : > { %1341 = vrot.lane.b32.xlu1 %v1304_v51, %s4504_s22  ;;  %1054 = vrot.lane.b32.xlu0 %v3593_v50, %s3192_s18  ;;  %v1135_v51 = vmul.f32 %v3510_v23, %v3740_v28 }
 0x18c   : > { %878 = vrot.lane.b32.xlu1 %v3613_v54, %s3191_s17  ;;  %990 = vrot.lane.b32.xlu0 %v952_v53, %s3191_s17  ;;  %v3769_v53 = vld [vmem:[%s4487_s15 + $0x50] sm:$0xff] }
 0x190   : > { %1056 = vrot.lane.b32.xlu1 %v3613_v54, %s3192_s18  ;;  %1232 = vrot.lane.b32.xlu0 %v3593_v50, %s4504_s22 }
 0x194   : > { %992 = vrot.lane.b32.xlu1 %v953_v59, %s3191_s17  ;;  %1168 = vrot.lane.b32.xlu0 %v1130_v60, %s3192_s18  ;;  %v1310_v59 = vmul.f32 %v3529_v29, %v3740_v28  ;;  %v956_v60 = vmul.f32 %v3497_v19, %v3769_v53 }
 0x198   : > { %937 = vrot.lane.b32.xlu1 %v3636_v38, %s3189_s28  ;;  %1343 = vrot.lane.b32.xlu0 %v1305_v61, %s4504_s22 }
 0x19c   : > { %1234 = vrot.lane.b32.xlu1 %v3613_v54, %s4504_s22  ;;  %880 = vrot.lane.b32.xlu0 %v3646_v42, %s3191_s17 }
 0x1a0   : > { %1170 = vrot.lane.b32.xlu1 %v1131_v36, %s3192_s18  ;;  %1058 = vrot.lane.b32.xlu0 %v3646_v42, %s3192_s18 }
 0x1a4   : > { %1345 = vrot.lane.b32.xlu1 %v1306_v62, %s4504_s22  ;;  %1115 = vrot.lane.b32.xlu0 %v3636_v38, %s3194_s26  ;;  %v3785_v62 = vsel %vm812_vm3, %v3487_v16, %v3521_v25  ;;  %v914_v25 = vmul.f32 0.0, %v869_v27 }
 0x1a5   : > { %v819_v16 = vmul.f32 %v3785_v62, %v3515_v24 }
 0x1a8   : > { %882 = vrot.lane.b32.xlu1 %v3667_v0, %s3191_s17  ;;  %1290 = vrot.lane.b32.xlu0 %v3636_v38, %s3190_s30 }
 0x1ac   : > { %1060 = vrot.lane.b32.xlu1 %v3667_v0, %s3192_s18  ;;  %803 = vrot.lane.b32.xlu0 %v3636_v38, %s3195_s24 }
 0x1b0   : > { %996 = vrot.lane.b32.xlu1 %v955_v3, %s3191_s17  ;;  %928 = vrot.lane.b32.xlu0 %v3687_v4, %s3194_s26 }
 0x1b4   : > { %1238 = vrot.lane.b32.xlu1 %v3667_v0, %s4504_s22  ;;  %1106 = vrot.lane.b32.xlu0 %v3687_v4, %s3190_s30 }
 0x1b8   : > { %1174 = vrot.lane.b32.xlu1 %v1133_v8, %s3192_s18  ;;  %1284 = vrot.lane.b32.xlu0 %v3687_v4, %s3195_s24 }
 0x1ba   : > { %v3714_v11 = vpop.permute.xlu1 %980 }
 0x1bc   : > { %1349 = vrot.lane.b32.xlu1 %v1308_v12, %s4504_s22  ;;  %994 = vrot.lane.b32.xlu0 %v954_v14, %s3191_s17  ;;  %v1134_v12 = vmul.f32 %v3510_v23, %v3769_v53 }
 0x1be   : > { %v3729_v21 = vpop.permute.xlu1 %1222 }
 0x1c0   : > { %886 = vrot.lane.b32.xlu1 %v3727_v18, %s3191_s17  ;;  %1236 = vrot.lane.b32.xlu0 %v3646_v42, %s4504_s22 }
 0x1c2   : > { %v3745_v30 = vpop.permute.xlu1 %1158 }
 0x1c3   : > { %4506 = vst [vmem:[#allocation9_spill] sm:$0xff] %v3745_v30 }
 0x1c4   : > { %1064 = vrot.lane.b32.xlu1 %v3727_v18, %s3192_s18  ;;  %1172 = vrot.lane.b32.xlu0 %v1132_v22, %s3192_s18  ;;  %v773_v22 = vmul.f32 0.0, %v3412_v34 }
 0x1c8   : > { %1000 = vrot.lane.b32.xlu1 %v957_v31, %s3191_s17  ;;  %1347 = vrot.lane.b32.xlu0 %v1307_v33, %s4504_s22  ;;  %v774_v33 = vmul.f32 0.0, %v3502_v20 }
 0x1ca   : > { %v3753_v44 = vpop.permute.xlu1 %1333 }
 0x1cb   : > { %4507 = vst [vmem:[#allocation10_spill] sm:$0xff] %v3753_v44 }
 0x1cc   : > { %1242 = vrot.lane.b32.xlu1 %v3727_v18, %s4504_s22  ;;  %884 = vrot.lane.b32.xlu0 %v3758_v45, %s3191_s17 }
 0x1ce   : > { %v871_v46 = vpop.permute.xlu1 %870  ;;  %v983_v49 = vpop.permute.xlu0 %982 }
 0x1cf   : > { %v915_v14 = vmul.f32 0.0, %v871_v46  ;;  %v1309_v46 = vmul.f32 %v3529_v29, %v3769_v53  ;;  %v1028_v13 = vadd.f32 %v983_v49, %v914_v25  ;;  %v3804_v49 = vld [vmem:[%s4486_s14 + $0x60] sm:$0xff] }
 0x1d0   : > { %1178 = vrot.lane.b32.xlu1 %v1135_v51, %s3192_s18  ;;  %1062 = vrot.lane.b32.xlu0 %v3758_v45, %s3192_s18  ;;  %v818_v51 = vmul.f32 %v3785_v62, %v3492_v17  ;;  %v835_v17 = vadd.f32 %v819_v16, %v774_v33  ;;  %v775_v16 = vmul.f32 0.0, %v3543_v32 }
 0x1d2   : > { %v1049_v55 = vpop.permute.xlu1 %1048  ;;  %v1225_v58 = vpop.permute.xlu0 %1224  ;;  %v834_v20 = vadd.f32 %v818_v51, %v773_v22 }
 0x1d3   : > { %v1093_v31 = vmul.f32 0.0, %v1049_v55  ;;  %v1270_v34 = vmul.f32 0.0, %v1225_v58 }
 0x1d4   : > { %1353 = vrot.lane.b32.xlu1 %v1310_v59, %s4504_s22  ;;  %998 = vrot.lane.b32.xlu0 %v956_v60, %s3191_s17  ;;  %v1092_v59 = vmul.f32 0.0, %v1047_v40  ;;  %v1398_v40 = vsel %vm1395_vm4, %v834_v20, %v1028_v13 }
 0x1d6   : > { %v985_v61 = vpop.permute.xlu1 %984  ;;  %v1161_v36 = vpop.permute.xlu0 %1160 }
 0x1d7   : > { %v1029_v55 = vadd.f32 %v985_v61, %v915_v14 }
 0x1d8   : > { %1240 = vrot.lane.b32.xlu0 %v3758_v45, %s4504_s22 }
 0x1d9   : > { %v1399_v15 = vsel %vm1395_vm4, %v835_v17, %v1029_v55 }
 0x1da   : > { %v1227_v3 = vpop.permute.xlu1 %1226  ;;  %v1336_v8 = vpop.permute.xlu0 %1335 }
 0x1db   : > { %v1271_v48 = vmul.f32 0.0, %v1227_v3  ;;  %v1381_v44 = vadd.f32 %v1336_v8, %v1270_v34 }
 0x1dc   : > { %1176 = vrot.lane.b32.xlu0 %v1134_v12, %s3192_s18  ;;  %v1206_v12 = vadd.f32 %v1161_v36, %v1092_v59  ;;  %v821_v59 = vmul.f32 %v3785_v62, %v3571_v43 }
 0x1de   : > { %v1163_v60 = vpop.permute.xlu1 %1162  ;;  %v873_v37 = vpop.permute.xlu0 %872  ;;  %v1414_v58 = vsel %vm689_vm0, %v1398_v40, %v1206_v12 }
 0x1df   : > { %v1207_v47 = vadd.f32 %v1163_v60, %v1093_v31  ;;  %v1431_v36 = vsel %vm1428_vm5, %v1414_v58, %v1381_v44  ;;  %v776_v44 = vmul.f32 0.0, %v3563_v41  ;;  %v916_v60 = vmul.f32 0.0, %v873_v37 }
 0x1e0   : > { %1351 = vrot.lane.b32.xlu0 %v1309_v46, %s4504_s22 }
 0x1e1   : > { %v1415_v61 = vsel %vm689_vm0, %v1399_v15, %v1207_v47  ;;  %v837_v58 = vadd.f32 %v821_v59, %v776_v44 }
 0x1e2   : > { %v1338_v24 = vpop.permute.xlu1 %1337  ;;  %v1051_v27 = vpop.permute.xlu0 %1050 }
 0x1e3   : > { %v1382_v30 = vadd.f32 %v1338_v24, %v1271_v48 }
 0x1e4   : > { %888 = vrot.lane.b32.xlu0 %v3804_v49, %s3191_s17 }
 0x1e5   : > { %v1432_v13 = vsel %vm1428_vm5, %v1415_v61, %v1382_v30  ;;  %v820_v30 = vmul.f32 %v3785_v62, %v3553_v39 }
 0x1e6   : > { %v3812_v3 = vpack.c.bf16 %v1432_v13, %v1431_v36  ;;  %v875_v48 = vpop.permute.xlu1 %874  ;;  %v987_v8 = vpop.permute.xlu0 %986 }
 0x1e7   : > { %v917_v15 = vmul.f32 0.0, %v875_v48  ;;  %v1030_v55 = vadd.f32 %v987_v8, %v916_v60  ;;  %v836_v32 = vadd.f32 %v820_v30, %v775_v16  ;;  %v777_v60 = vmul.f32 0.0, %v3593_v50 }
 0x1e8   : > { %792 = vrot.lane.b32.xlu0 %v3687_v4, %s3189_s28  ;;  %v1094_v4 = vmul.f32 0.0, %v1051_v27 }
 0x1e9   : > { %v1400_v39 = vsel %vm1395_vm4, %v836_v32, %v1030_v55  ;;  %v822_v55 = vmul.f32 %v3785_v62, %v3603_v52 }
 0x1ea   : > { %v1053_v14 = vpop.permute.xlu1 %1052  ;;  %v1229_v22 = vpop.permute.xlu0 %1228 }
 0x1eb   : > { %v1095_v25 = vmul.f32 0.0, %v1053_v14  ;;  %v1272_v12 = vmul.f32 0.0, %v1229_v22 }
 0x1ee   : > { %v989_v31 = vpop.permute.xlu1 %988  ;;  %v1165_v33 = vpop.permute.xlu0 %1164 }
 0x1ef   : > { %v1031_v20 = vadd.f32 %v989_v31, %v917_v15  ;;  %v1208_v24 = vadd.f32 %v1165_v33, %v1094_v4 }
 0x1f1   : > { %v1401_v13 = vsel %vm1395_vm4, %v837_v58, %v1031_v20  ;;  %v1416_v37 = vsel %vm689_vm0, %v1400_v39, %v1208_v24 }
 0x1f2   : > { %v1231_v51 = vpop.permute.xlu1 %1230  ;;  %v1340_v47 = vpop.permute.xlu0 %1339 }
 0x1f3   : > { %v1273_v17 = vmul.f32 0.0, %v1231_v51  ;;  %v1383_v61 = vadd.f32 %v1340_v47, %v1272_v12  ;;  %v823_v12 = vmul.f32 %v3785_v62, %v3622_v57 }
 0x1f5   : > { %v1433_v48 = vsel %vm1428_vm5, %v1416_v37, %v1383_v61 }
 0x1f6   : > { %v1167_v46 = vpop.permute.xlu1 %1166  ;;  %v877_v34 = vpop.permute.xlu0 %876 }
 0x1f7   : > { %v1209_v40 = vadd.f32 %v1167_v46, %v1095_v25  ;;  %v778_v46 = vmul.f32 0.0, %v3613_v54  ;;  %v918_v20 = vmul.f32 0.0, %v877_v34 }
 0x1f9   : > { %v1417_v27 = vsel %vm689_vm0, %v1401_v13, %v1209_v40  ;;  %v838_v13 = vadd.f32 %v822_v55, %v777_v60 }
 0x1fa   : > { %v1342_v41 = vpop.permute.xlu1 %1341  ;;  %v1055_v36 = vpop.permute.xlu0 %1054 }
 0x1fb   : > { %v1384_v43 = vadd.f32 %v1342_v41, %v1273_v17  ;;  %v1096_v17 = vmul.f32 0.0, %v1055_v36 }
 0x1fd   : > { %v1434_v8 = vsel %vm1428_vm5, %v1417_v27, %v1384_v43  ;;  %v839_v43 = vadd.f32 %v823_v12, %v778_v46 }
 0x1fe   : > { %v3828_v14 = vpack.c.bf16 %v1434_v8, %v1433_v48  ;;  %v879_v22 = vpop.permute.xlu1 %878  ;;  %v991_v31 = vpop.permute.xlu0 %990 }
 0x1ff   : > { %v919_v59 = vmul.f32 0.0, %v879_v22  ;;  %v1032_v32 = vadd.f32 %v991_v31, %v918_v20 }
 0x201   : > { %v1402_v52 = vsel %vm1395_vm4, %v838_v13, %v1032_v32  ;;  %v2745_v32 = vld [vmem:[%s4477_s5] ss:$0 sm:$0xff] }
 0x202   : > { %v1057_v33 = vpop.permute.xlu1 %1056  ;;  %v1233_v51 = vpop.permute.xlu0 %1232 }
 0x203   : > { %v1097_v4 = vmul.f32 0.0, %v1057_v33  ;;  %v1274_v58 = vmul.f32 0.0, %v1233_v51 }
 0x206   : > { %v993_v47 = vpop.permute.xlu1 %992  ;;  %v1169_v15 = vpop.permute.xlu0 %1168 }
 0x207   : > { %v1033_v61 = vadd.f32 %v993_v47, %v919_v59  ;;  %v1210_v39 = vadd.f32 %v1169_v15, %v1096_v17 }
 0x209   : > { %v1403_v57 = vsel %vm1395_vm4, %v839_v43, %v1033_v61  ;;  %v1418_v36 = vsel %vm689_vm0, %v1402_v52, %v1210_v39 }
 0x20a   : > { %v938_v16 = vpop.permute.xlu1 %937  ;;  %v1344_v25 = vpop.permute.xlu0 %1343 }
 0x20b   : > { %v1385_v54 = vadd.f32 %v1344_v25, %v1274_v58  ;;  %v3853_v25 = vld [vmem:[%s4487_s15] sm:$0xff] }
 0x20d   : > { %v1435_v8 = vsel %vm1428_vm5, %v1418_v36, %v1385_v54 }
 0x20e   : > { %v1235_v44 = vpop.permute.xlu1 %1234  ;;  %v3830_v30 = vpop.permute.xlu0 %880 }
 0x20f   : > { %v1275_v41 = vmul.f32 0.0, %v1235_v44 }
 0x212   : > { %v1171_v24 = vpop.permute.xlu1 %1170  ;;  %v3838_v40 = vpop.permute.xlu0 %1058 }
 0x213   : > { %v1211_v50 = vadd.f32 %v1171_v24, %v1097_v4 }
 0x215   : > { %v1419_v48 = vsel %vm689_vm0, %v1403_v57, %v1211_v50 }
 0x216   : > { %v1346_v37 = vpop.permute.xlu1 %1345  ;;  %v1116_v27 = vpop.permute.xlu0 %1115 }
 0x217   : > { %v1386_v34 = vadd.f32 %v1346_v37, %v1275_v41 }
 0x219   : > { %v1436_v22 = vsel %vm1428_vm5, %v1419_v48, %v1386_v34  ;;  %v3883_v34 = vld [vmem:[%s4486_s14 + $0x68] sm:$0xff]  ;;  %v779_v48 = vmul.f32 0.0, %v3646_v42 }
 0x21a   : > { %v3846_v31 = vpack.c.bf16 %v1436_v22, %v1435_v8  ;;  %v883_v33 = vpop.permute.xlu1 %882  ;;  %v1291_v51 = vpop.permute.xlu0 %1290  ;;  %v780_v8 = vmul.f32 0.0, %v3667_v0  ;;  %v3901_v42 = vld [vmem:[%s4487_s15 + $0x68] sm:$0xff] }
 0x21b   : > { %v921_v36 = vmul.f32 0.0, %v883_v33 }
 0x21e   : > { %v1061_v47 = vpop.permute.xlu1 %1060  ;;  %v3848_v15 = vpop.permute.xlu0 %803 }
 0x21f   : > { %v1099_v22 = vmul.f32 0.0, %v1061_v47 }
 0x222   : > { %v997_v44 = vpop.permute.xlu1 %996  ;;  %v929_v59 = vpop.permute.xlu0 %928 }
 0x223   : > { %v943_v60 = vsel %vm812_vm3, %v929_v59, %v938_v16  ;;  %v825_v59 = vmul.f32 %v3785_v62, %v3678_v2 }
 0x224   : > { %v946_v4 = vmul.f32 %v943_v60, %v3853_v25  ;;  %v824_v60 = vmul.f32 %v3785_v62, %v3707_v9 }
 0x226   : > { %v1239_v46 = vpop.permute.xlu1 %1238  ;;  %978 = vrot.lane.b32.xlu0 %v946_v4, %s3191_s17  ;;  %v1107_v55 = vpop.permute.xlu0 %1106  ;;  %v920_v4 = vmul.f32 0.0, %v3830_v30 }
 0x227   : > { %v1121_v12 = vsel %vm812_vm3, %v1107_v55, %v1116_v27  ;;  %v1620_v20 = vpop.f32.mrb[0].mxu1  ;;  %v1277_v33 = vmul.f32 0.0, %v1239_v46  ;;  %v1098_v55 = vmul.f32 0.0, %v3838_v40  ;;  %v3910_v40 = vld [vmem:[%s4487_s15 + $0x60] sm:$0xff]  ;;  %v841_v46 = vadd.f32 %v825_v59, %v780_v8 }
 0x228   : > { %v1124_v17 = vmul.f32 %v1121_v12, %v3853_v25  ;;  %v2875_v24 = vpop.f32.mrb[1].mxu1  ;;  %v3876_v27 = vadd.f32 %v2745_v32, %v1620_v20  ;;  %v1035_v12 = vadd.f32 %v997_v44, %v921_v36  ;;  %v1137_v8 = vmul.f32 %v3510_v23, %v3901_v42 }
 0x229   : > { %v1623_v58 = vpop.f32.mrb[2].mxu1  ;;  %v840_v24 = vadd.f32 %v824_v60, %v779_v48  ;;  %v1136_v60 = vmul.f32 %v3510_v23, %v3910_v40 }
 0x22a   : > { %v3863_v61 = vadd.f32 %v2745_v32, %v1623_v58  ;;  %v2876_v16 = vpop.f32.mrb[3].mxu1  ;;  %v1175_v41 = vpop.permute.xlu1 %1174  ;;  %1156 = vrot.lane.b32.xlu0 %v1124_v17, %s3192_s18  ;;  %v959_v32 = vmul.f32 %v3497_v19, %v3901_v42  ;;  %v1405_v58 = vsel %vm1395_vm4, %v841_v46, %v1035_v12 }
 0x22b   : > { %v1285_v39 = vpop.permute.xlu0 %1284  ;;  %v1213_v9 = vadd.f32 %v1175_v41, %v1099_v22 }
 0x22c   : > { %v1296_v50 = vsel %vm812_vm3, %v1285_v39, %v1291_v51  ;;  %1826 = vrot.lane.b32.xlu1 %v3863_v61, %s3189_s28  ;;  %v3871_v54 = vsub.f32 0.0, %v3863_v61  ;;  %v3890_v51 = vsub.f32 0.0, %v3876_v27 }
 0x22d   : > { %v1299_v13 = vmul.f32 %v1296_v50, %v3853_v25  ;;  %v1421_v39 = vsel %vm689_vm0, %v1405_v58, %v1213_v9 }
 0x22e   : > { %v1350_v43 = vpop.permute.xlu1 %1349 }
 0x22f   : > { %1331 = vrot.lane.b32.xlu0 %v1299_v13, %s4504_s22  ;;  %v995_v37 = vpop.permute.xlu0 %994  ;;  %v1388_v17 = vadd.f32 %v1350_v43, %v1277_v33  ;;  %v958_v43 = vmul.f32 %v3497_v19, %v3910_v40 }
 0x230   : > { %1820 = vrot.lane.b32.xlu1 %v3871_v54, %s3194_s26  ;;  %v1034_v2 = vadd.f32 %v995_v37, %v920_v4  ;;  %v1312_v4 = vmul.f32 %v3529_v29, %v3901_v42 }
 0x231   : > { %v1438_v37 = vsel %vm1428_vm5, %v1421_v39, %v1388_v17 }
 0x232   : > { %v887_v52 = vpop.permute.xlu1 %886  ;;  %v1404_v16 = vsel %vm1395_vm4, %v840_v24, %v1034_v2  ;;  %v3947_v2 = vld [vmem:[%s4486_s14 + $0x78] sm:$0xff]  ;;  %v827_v24 = vmul.f32 %v3785_v62, %v3740_v28 }
 0x233   : > { %1824 = vrot.lane.b32.xlu0 %v3876_v27, %s3189_s28  ;;  %v1237_v57 = vpop.permute.xlu0 %1236 }
 0x234   : > { %890 = vrot.lane.b32.xlu1 %v3883_v34, %s3191_s17  ;;  %v1276_v20 = vmul.f32 0.0, %v1237_v57 }
 0x236   : > { %v1065_v0 = vpop.permute.xlu1 %1064 }
 0x237   : > { %1818 = vrot.lane.b32.xlu0 %v3890_v51, %s3194_s26  ;;  %v1173_v47 = vpop.permute.xlu0 %1172  ;;  %v1101_v46 = vmul.f32 0.0, %v1065_v0 }
 0x238   : > { %1068 = vrot.lane.b32.xlu1 %v3883_v34, %s3192_s18  ;;  %v1212_v30 = vadd.f32 %v1173_v47, %v1098_v55  ;;  %v1311_v47 = vmul.f32 %v3529_v29, %v3910_v40 }
 0x23a   : > { %v1420_v50 = vsel %vm689_vm0, %v1404_v16, %v1212_v30  ;;  %v1001_v13 = vpop.permute.xlu1 %1000  ;;  %v782_v30 = vmul.f32 0.0, %v3727_v18  ;;  %v3965_v18 = vld [vmem:[%s4487_s15 + $0x78] sm:$0xff] }
 0x23b   : > { %1066 = vrot.lane.b32.xlu0 %v3804_v49, %s3192_s18  ;;  %v1348_v44 = vpop.permute.xlu0 %1347 }
 0x23c   : > { %v1387_v41 = vadd.f32 %v1348_v44, %v1276_v20  ;;  %1004 = vrot.lane.b32.xlu1 %v959_v32, %s3191_s17  ;;  %v923_v20 = vmul.f32 0.0, %v887_v52  ;;  %v781_v32 = vmul.f32 0.0, %v3758_v45  ;;  %v826_v44 = vmul.f32 %v3785_v62, %v3769_v53  ;;  %v3960_v52 = vld [vmem:[%s4486_s14 + $0x70] sm:$0xff] }
 0x23e   : > { %v1437_v57 = vsel %vm1428_vm5, %v1420_v50, %v1387_v41  ;;  %v1243_v22 = vpop.permute.xlu1 %1242  ;;  %v1037_v45 = vadd.f32 %v1001_v13, %v923_v20  ;;  %v843_v50 = vadd.f32 %v827_v24, %v782_v30  ;;  %v1139_v20 = vmul.f32 %v3510_v23, %v3965_v18 }
 0x23f   : > { %v3925_v36 = vpack.c.bf16 %v1438_v37, %v1437_v57  ;;  %1002 = vrot.lane.b32.xlu0 %v958_v43, %s3191_s17  ;;  %v885_v48 = vpop.permute.xlu0 %884  ;;  %v1279_v58 = vmul.f32 0.0, %v1243_v22  ;;  %v842_v37 = vadd.f32 %v826_v44, %v781_v32  ;;  %v3974_v57 = vld [vmem:[%s4487_s15 + $0x70] sm:$0xff]  ;;  %v772_v44 = vmul.f32 %v3435_v35, %v3375_v26 }
 0x240   : > { %1246 = vrot.lane.b32.xlu1 %v3883_v34, %s4504_s22  ;;  %v922_v9 = vmul.f32 0.0, %v885_v48  ;;  %v961_v48 = vmul.f32 %v3497_v19, %v3965_v18  ;;  %v1313_v30 = vmul.f32 %v3529_v29, %v3974_v57  ;;  %v1090_v35 = vmul.f32 %v3709_v10, %v3636_v38 }
 0x242   : > { %v1179_v55 = vpop.permute.xlu1 %1178 }
 0x243   : > { %1244 = vrot.lane.b32.xlu0 %v3804_v49, %s4504_s22  ;;  %v1063_v59 = vpop.permute.xlu0 %1062  ;;  %v1215_v53 = vadd.f32 %v1179_v55, %v1101_v46  ;;  %v4011_v46 = vld [vmem:[%s4484_s12] sm:$0xff] }
 0x244   : > { %1182 = vrot.lane.b32.xlu1 %v1137_v8, %s3192_s18  ;;  %v1100_v17 = vmul.f32 0.0, %v1063_v59  ;;  %v1407_v8 = vsel %vm1395_vm4, %v843_v50, %v1037_v45  ;;  %v912_v45 = vmul.f32 %v3694_v6, %v3636_v38  ;;  %v4510_v50 = vld [vmem:[#allocation10_spill] sm:$0xff] }
 0x246   : > { %v1354_v16 = vpop.permute.xlu1 %1353 }
 0x247   : > { %1180 = vrot.lane.b32.xlu0 %v1136_v60, %s3192_s18  ;;  %v999_v33 = vpop.permute.xlu0 %998  ;;  %v1390_v43 = vadd.f32 %v1354_v16, %v1279_v58  ;;  %v1423_v60 = vsel %vm689_vm0, %v1407_v8, %v1215_v53  ;;  %v913_v16 = vmul.f32 %v3689_v5, %v3375_v26  ;;  %v3159_v5 = vld [vmem:[%s4486_s14] sm:$0xff]  ;;  %v4508_v53 = vld [vmem:[#allocation9_spill] sm:$0xff] }
 0x248   : > { %1357 = vrot.lane.b32.xlu1 %v1312_v4, %s4504_s22  ;;  %v1036_v0 = vadd.f32 %v999_v33, %v922_v9  ;;  %v960_v33 = vmul.f32 %v3497_v19, %v3974_v57  ;;  %v1138_v19 = vmul.f32 %v3510_v23, %v3974_v57  ;;  %v1314_v9 = vmul.f32 %v3529_v29, %v3965_v18 }
 0x249   : > { %v1440_v55 = vsel %vm1428_vm5, %v1423_v60, %v1390_v43  ;;  %v814_v29 = vsel %vm812_vm3, %v3659_v63, %v3673_v1  ;;  %v1269_v63 = vmul.f32 %v3729_v21, %v3375_v26  ;;  %v4509_v21 = vld [vmem:[#allocation8_spill] sm:$0xff] }
 0x24a   : > { %v1406_v22 = vsel %vm1395_vm4, %v842_v37, %v1036_v0  ;;  %v817_v58 = vmul.f32 %v814_v29, %v3465_v56  ;;  %v1027_v56 = vadd.f32 %v3714_v11, %v913_v16  ;;  %v4069_v29 = vld [vmem:[%s4484_s12 + $0x8] sm:$0xff] }
 0x24b   : > { %1355 = vrot.lane.b32.xlu0 %v1311_v47, %s4504_s22  ;;  %v1241_v12 = vpop.permute.xlu0 %1240  ;;  %v1380_v43 = vadd.f32 %v4510_v50, %v1269_v63 }
 0x24c   : > { %894 = vrot.lane.b32.xlu1 %v3947_v2, %s3191_s17  ;;  %v1278_v41 = vmul.f32 0.0, %v1241_v12  ;;  %v833_v0 = vadd.f32 %v817_v58, %v772_v44  ;;  %v4078_v44 = vld [vmem:[%s4485_s13 + $0x8] sm:$0xff] }
 0x24e   : > { %v1397_v11 = vsel %vm1395_vm4, %v833_v0, %v1027_v56  ;;  %v783_v0 = vmul.f32 0.0, %v3804_v49  ;;  %v784_v56 = vmul.f32 0.0, %v3883_v34 }
 0x24f   : > { %892 = vrot.lane.b32.xlu0 %v3960_v52, %s3191_s17  ;;  %v1177_v28 = vpop.permute.xlu0 %1176 }
 0x250   : > { %1072 = vrot.lane.b32.xlu1 %v3947_v2, %s3192_s18  ;;  %v1214_v39 = vadd.f32 %v1177_v28, %v1100_v17  ;;  %v1091_v28 = vmul.f32 %v3700_v7, %v3375_v26  ;;  %v771_v7 = vmul.f32 %v3159_v5, %v3636_v38  ;;  %v1690_v5 = vsel %vm1395_vm4, %v3828_v14, 0 }
 0x252   : > { %v1422_v4 = vsel %vm689_vm0, %v1406_v22, %v1214_v39  ;;  %v1205_v39 = vadd.f32 %v4508_v53, %v1091_v28  ;;  %v1687_v28 = vsel %vm1395_vm4, %v3812_v3, 0 }
 0x253   : > { %1070 = vrot.lane.b32.xlu0 %v3960_v52, %s3192_s18  ;;  %v1352_v13 = vpop.permute.xlu0 %1351 }
 0x254   : > { %v1389_v59 = vadd.f32 %v1352_v13, %v1278_v41  ;;  %1008 = vrot.lane.b32.xlu1 %v961_v48, %s3191_s17  ;;  %v1413_v22 = vsel %vm689_vm0, %v1397_v11, %v1205_v39 }
 0x255   : > { %v1430_v60 = vsel %vm1428_vm5, %v1413_v22, %v1380_v43 }
 0x256   : > { %v1439_v47 = vsel %vm1428_vm5, %v1422_v4, %v1389_v59 }
 0x257   : > { %v3989_v12 = vpack.c.bf16 %v1440_v55, %v1439_v47  ;;  %1006 = vrot.lane.b32.xlu0 %v960_v33, %s3191_s17  ;;  %v4017_v23 = vpop.permute.xlu0 %888 }
 0x258   : > { %1250 = vrot.lane.b32.xlu1 %v3947_v2, %s4504_s22 }
 0x25b   : > { %1248 = vrot.lane.b32.xlu0 %v3960_v52, %s4504_s22  ;;  %v793_v17 = vpop.permute.xlu0 %792 }
 0x25c   : > { %1186 = vrot.lane.b32.xlu1 %v1139_v20, %s3192_s18  ;;  %v813_v32 = vsel %vm812_vm3, %v793_v17, %v3848_v15  ;;  %v4062_v20 = vld [vmem:[%s4485_s13] sm:$0xff] }
 0x25d   : > { %v816_v1 = vmul.f32 %v813_v32, %v3853_v25  ;;  %v1268_v25 = vmul.f32 %v4509_v21, %v3636_v38 }
 0x25f   : > { %1184 = vrot.lane.b32.xlu0 %v1138_v19, %s3192_s18  ;;  %v832_v10 = vadd.f32 %v816_v1, %v771_v7  ;;  %v828_v7 = vmul.f32 %v3785_v62, %v3910_v40 }
 0x260   : > { %1361 = vrot.lane.b32.xlu1 %v1314_v9, %s4504_s22  ;;  %v4511_v9 = vmov 0.0  }
 0x263   : > { %1359 = vrot.lane.b32.xlu0 %v1313_v30, %s4504_s22 }
 0x264   : > { %1810 = vrot.lane.b32.xlu1 %v4011_v46, %s3191_s17 }
 0x268   : > { %2040 = vrot.lane.b32.xlu1 %v3890_v51, %s3190_s30 }
 0x298   : > { %v979_v24 = vpop.permute.xlu0 %978 }
 0x299   : > { %v1026_v41 = vadd.f32 %v979_v24, %v912_v45 }
 0x29b   : > { %v1396_v48 = vsel %vm1395_vm4, %v832_v10, %v1026_v41  ;;  %v829_v41 = vmul.f32 %v3785_v62, %v3901_v42  ;;  %v844_v42 = vadd.f32 %v828_v7, %v783_v0  ;;  %v785_v7 = vmul.f32 0.0, %v3960_v52 }
 0x29c   : > { %v1157_v15 = vpop.permute.xlu0 %1156 }
 0x29d   : > { %v1204_v26 = vadd.f32 %v1157_v15, %v1090_v35 }
 0x29e   : > { %v1827_v6 = vpop.permute.xlu1 %1826 }
 0x29f   : > { %v1412_v59 = vsel %vm689_vm0, %v1396_v48, %v1204_v26 }
 0x2a1   : > { %v1332_v37 = vpop.permute.xlu0 %1331 }
 0x2a2   : > { %v1379_v13 = vadd.f32 %v1332_v37, %v1268_v25  ;;  %v1821_v8 = vpop.permute.xlu1 %1820 }
 0x2a3   : > { %v1831_v58 = vsel %vm812_vm3, %v1821_v8, %v1827_v6  ;;  %v924_v6 = vmul.f32 0.0, %v4017_v23  ;;  %v845_v23 = vadd.f32 %v829_v41, %v784_v56  ;;  %v1699_v56 = vsel %vm1395_vm4, %v3989_v12, 0 }
 0x2a4   : > { %v1429_v4 = vsel %vm1428_vm5, %v1412_v59, %v1379_v13  ;;  %v1833_v45 = vmul.f32 %v1831_v58, %v4078_v44  ;;  %v830_v41 = vmul.f32 %v3785_v62, %v3974_v57 }
 0x2a5   : > { %v4053_v33 = vpack.c.bf16 %v1430_v60, %v1429_v4  ;;  %v1825_v38 = vpop.permute.xlu0 %1824  ;;  %v1693_v4 = vsel %vm1395_vm4, %v3846_v31, 0 }
 0x2a6   : > { %v891_v55 = vpop.permute.xlu1 %890 }
 0x2a7   : > { %1856 = vrot.lane.b32.xlu0 %v4053_v33, %s4504_s22  ;;  %v1684_v47 = vsel %vm1395_vm4, %v4053_v33, 0  ;;  %v925_v53 = vmul.f32 0.0, %v891_v55 }
 0x2a8   : > { %2878 = vmatpush3.bf16.xpose.msra.mxu0 %v1684_v47 }
 0x2a9   : > { %v1819_v19 = vpop.permute.xlu0 %1818  ;;  %2879 = vmatprep.subr.bf16.mxu0 %v4511_v9 }
 0x2aa   : > { %v1830_v30 = vsel %vm812_vm3, %v1819_v19, %v1825_v38  ;;  %v1069_v17 = vpop.permute.xlu1 %1068 }
 0x2ab   : > { %v1832_v24 = vmul.f32 %v1830_v30, %v4062_v20  ;;  %1812 = vrot.lane.b32.xlu0 %v4069_v29, %s3191_s17  ;;  %v1103_v39 = vmul.f32 0.0, %v1069_v17 }
 0x2ad   : > { %1836 = vrot.lane.b32.xlu1 %v1832_v24, %s3191_s17  ;;  %v1067_v32 = vpop.permute.xlu0 %1066 }
 0x2ae   : > { %v1005_v16 = vpop.permute.xlu1 %1004  ;;  %v1102_v49 = vmul.f32 0.0, %v1067_v32  ;;  %v1696_v32 = vsel %vm1395_vm4, %v3925_v36, 0 }
 0x2af   : > { %2042 = vrot.lane.b32.xlu0 %v3871_v54, %s3190_s30  ;;  %v1039_v26 = vadd.f32 %v1005_v16, %v925_v53 }
 0x2b0   : > { %2880 = vmatpush3.bf16.xpose.msra.mxu0 %v1687_v28 }
 0x2b1   : > { %2046 = vrot.lane.b32.xlu1 %v3876_v27, %s3194_s26  ;;  %v1003_v63 = vpop.permute.xlu0 %1002  ;;  %2881 = vmatprep.subr.bf16.mxu0 %v4511_v9  ;;  %v1409_v48 = vsel %vm1395_vm4, %v845_v23, %v1039_v26 }
 0x2b2   : > { %v1247_v1 = vpop.permute.xlu1 %1246  ;;  %v1038_v21 = vadd.f32 %v1003_v63, %v924_v6 }
 0x2b3   : > { %1838 = vrot.lane.b32.xlu0 %v1833_v45, %s3191_s17  ;;  %v1281_v25 = vmul.f32 0.0, %v1247_v1 }
 0x2b4   : > { %v1408_v13 = vsel %vm1395_vm4, %v844_v42, %v1038_v21 }
 0x2b5   : > { %1858 = vrot.lane.b32.xlu1 %v3812_v3, %s4504_s22  ;;  %v1245_v15 = vpop.permute.xlu0 %1244 }
 0x2b6   : > { %v1183_v35 = vpop.permute.xlu1 %1182  ;;  %v1280_v10 = vmul.f32 0.0, %v1245_v15  ;;  %v786_v15 = vmul.f32 0.0, %v3947_v2 }
 0x2b7   : > { %2048 = vrot.lane.b32.xlu0 %v3863_v61, %s3194_s26  ;;  %v1217_v40 = vadd.f32 %v1183_v35, %v1103_v39 }
 0x2b8   : > { %2882 = vmatpush3.bf16.xpose.msra.mxu0 %v1690_v5  ;;  %v831_v5 = vmul.f32 %v3785_v62, %v3965_v18 }
 0x2b9   : > { %1862 = vrot.lane.b32.xlu1 %v3846_v31, %s4504_s22  ;;  %v1181_v34 = vpop.permute.xlu0 %1180  ;;  %2883 = vmatprep.subr.bf16.mxu0 %v4511_v9  ;;  %v1425_v59 = vsel %vm689_vm0, %v1409_v48, %v1217_v40 }
 0x2ba   : > { %v1358_v50 = vpop.permute.xlu1 %1357  ;;  %v1216_v43 = vadd.f32 %v1181_v34, %v1102_v49  ;;  %v847_v18 = vadd.f32 %v831_v5, %v786_v15 }
 0x2bb   : > { %1860 = vrot.lane.b32.xlu0 %v3828_v14, %s4504_s22  ;;  %v1392_v37 = vadd.f32 %v1358_v50, %v1281_v25  ;;  %v846_v25 = vadd.f32 %v830_v41, %v785_v7 }
 0x2bc   : > { %v1424_v60 = vsel %vm689_vm0, %v1408_v13, %v1216_v43 }
 0x2bd   : > { %1866 = vrot.lane.b32.xlu1 %v3989_v12, %s4504_s22  ;;  %v1356_v11 = vpop.permute.xlu0 %1355  ;;  %v1442_v38 = vsel %vm1428_vm5, %v1425_v59, %v1392_v37 }
 0x2be   : > { %v1391_v8 = vadd.f32 %v1356_v11, %v1280_v10  ;;  %v895_v22 = vpop.permute.xlu1 %894 }
 0x2bf   : > { %1864 = vrot.lane.b32.xlu0 %v3925_v36, %s4504_s22  ;;  %v927_v45 = vmul.f32 0.0, %v895_v22 }
 0x2c0   : > { %v1441_v55 = vsel %vm1428_vm5, %v1424_v60, %v1391_v8  ;;  %2884 = vmatpush3.bf16.xpose.msra.mxu0 %v1693_v4 }
 0x2c1   : > { %v4120_v47 = vpack.c.bf16 %v1442_v38, %v1441_v55  ;;  %1657 = vrot.lane.b32.xlu1 %v3890_v51, %s3189_s28  ;;  %v893_v19 = vpop.permute.xlu0 %892  ;;  %2885 = vmatprep.subr.bf16.mxu0 %v4511_v9 }
 0x2c2   : > { %v1073_v30 = vpop.permute.xlu1 %1072  ;;  %v926_v63 = vmul.f32 0.0, %v893_v19 }
 0x2c3   : > { %1868 = vrot.lane.b32.xlu0 %v4120_v47, %s4504_s22  ;;  %v1105_v35 = vmul.f32 0.0, %v1073_v30  ;;  %v1702_v23 = vsel %vm1395_vm4, %v4120_v47, 0 }
 0x2c5   : > { %1665 = vrot.lane.b32.xlu1 %v3876_v27, %s3195_s24  ;;  %v1071_v17 = vpop.permute.xlu0 %1070 }
 0x2c6   : > { %v1009_v24 = vpop.permute.xlu1 %1008  ;;  %v1104_v0 = vmul.f32 0.0, %v1071_v17 }
 0x2c7   : > { %1659 = vrot.lane.b32.xlu0 %v3871_v54, %s3189_s28  ;;  %v1041_v2 = vadd.f32 %v1009_v24, %v927_v45  ;;  %s620_s28 = scalar_lea.vmem %s4488_s16, %s4515_s0 }
 0x2c8   : > { %2886 = vmatpush3.bf16.xpose.msra.mxu0 %v1696_v32 }
 0x2c9   : > { %v1007_v58 = vpop.permute.xlu0 %1006  ;;  %2887 = vmatprep.subr.bf16.mxu0 %v4511_v9  ;;  %v1411_v62 = vsel %vm1395_vm4, %v847_v18, %v1041_v2 }
 0x2ca   : > { %v1251_v16 = vpop.permute.xlu1 %1250  ;;  %v1040_v39 = vadd.f32 %v1007_v58, %v926_v63 }
 0x2cb   : > { %1667 = vrot.lane.b32.xlu0 %v3863_v61, %s3195_s24  ;;  %v1283_v6 = vmul.f32 0.0, %v1251_v16 }
 0x2cc   : > { %v1410_v57 = vsel %vm1395_vm4, %v846_v25, %v1040_v39  ;;  %v1651_v25 = vmul.f32 %v4011_v46, %v3876_v27 }
 0x2cd   : > { %v1249_v28 = vpop.permute.xlu0 %1248 }
 0x2ce   : > { %v1187_v1 = vpop.permute.xlu1 %1186  ;;  %v1282_v49 = vmul.f32 0.0, %v1249_v28 }
 0x2cf   : > { %2032 = vrot.lane.b32.xlu0 %v4011_v46, %s3192_s18  ;;  %v1219_v26 = vadd.f32 %v1187_v1, %v1105_v35 }
 0x2d0   : > { %2888 = vmatpush3.bf16.xpose.msra.mxu0 %v1699_v56 }
 0x2d1   : > { %v1185_v53 = vpop.permute.xlu0 %1184  ;;  %2889 = vmatprep.subr.bf16.mxu0 %v4511_v9  ;;  %v1427_v43 = vsel %vm689_vm0, %v1411_v62, %v1219_v26 }
 0x2d2   : > { %v1362_v34 = vpop.permute.xlu1 %1361  ;;  %v1218_v21 = vadd.f32 %v1185_v53, %v1104_v0 }
 0x2d3   : > { %2070 = vrot.lane.b32.xlu0 %v4053_v33, %s3192_s18  ;;  %v1394_v52 = vadd.f32 %v1362_v34, %v1283_v6 }
 0x2d4   : > { %v1426_v42 = vsel %vm689_vm0, %v1410_v57, %v1218_v21 }
 0x2d5   : > { %v1360_v50 = vpop.permute.xlu0 %1359  ;;  %v1444_v10 = vsel %vm1428_vm5, %v1427_v43, %v1394_v52  ;;  %v1652_v52 = vmul.f32 %v4069_v29, %v3863_v61 }
 0x2d6   : > { %v1393_v40 = vadd.f32 %v1360_v50, %v1282_v49  ;;  %v1811_v13 = vpop.permute.xlu1 %1810 }
 0x2d7   : > { %v1816_v19 = vmul.f32 %v1811_v13, %v3876_v27 }
 0x2d8   : > { %v1443_v37 = vsel %vm1428_vm5, %v1426_v42, %v1393_v40  ;;  %2890 = vmatpush3.bf16.xpose.msra.mxu0 %v1702_v23  ;;  %v3160_v42 = vld [vmem:[%s4481_s9] sm:$0x1] }
 0x2d9   : > { %v4157_v11 = vpack.c.bf16 %v1444_v10, %v1443_v37  ;;  %2891 = vmatprep.subr.bf16.mxu0 %v4511_v9  ;;  %v4512_v23 = vld [vmem:[#allocation6_spill] sm:$0xff] }
 0x2da   : > { %v2041_v59 = vpop.permute.xlu1 %2040  ;;  %v2772_v10 = vpack.c.bf16 %v3160_v42, %v4512_v23 }
 0x2db   : > { %1870 = vrot.lane.b32.xlu1 %v4157_v11, %s4504_s22  ;;  %v1705_v48 = vsel %vm1395_vm4, %v4157_v11, 0 }
 0x2df   : > { %2034 = vrot.lane.b32.xlu1 %v4069_v29, %s3192_s18 }
 0x2e0   : > { %2892 = vmatpush3.bf16.xpose.msra.mxu0 %v1705_v48 }
 0x2e1   : > { %2897 = vmatprep.subr.bf16.mxu0 %v4511_v9 }
 0x319   : > { %v1857_v8 = vpop.permute.xlu0 %1856 }
 0x31a   : > { %v1876_v22 = vsel %vm1395_vm4, %v1857_v8, 0 }
 0x31b   : > { %2904 = vmatpush3.bf16.xpose.msra.mxu1 %v1876_v22 }
 0x31c   : > { %2905 = vmatprep.subr.bf16.mxu1 %v4511_v9 }
 0x31d   : > { %v1813_v60 = vpop.permute.xlu0 %1812 }
 0x31e   : > { %v1817_v30 = vmul.f32 %v1813_v60, %v3863_v61 }
 0x31f   : > { %v1837_v4 = vpop.permute.xlu1 %1836 }
 0x320   : > { %v1842_v58 = vadd.f32 %v1837_v4, %v1816_v19 }
 0x321   : > { %v2043_v38 = vpop.permute.xlu0 %2042 }
 0x323   : > { %v2047_v55 = vpop.permute.xlu1 %2046 }
 0x324   : > { %v2052_v17 = vsel %vm812_vm3, %v2041_v59, %v2047_v55 }
 0x325   : > { %v2054_v24 = vmul.f32 %v2052_v17, %v4062_v20  ;;  %v1839_v32 = vpop.permute.xlu0 %1838 }
 0x326   : > { %v1843_v16 = vadd.f32 %v1839_v32, %v1817_v30 }
 0x327   : > { %v1859_v28 = vpop.permute.xlu1 %1858  ;;  %2058 = vrot.lane.b32.xlu0 %v2054_v24, %s3192_s18 }
 0x328   : > { %v1844_v45 = vpack.c.bf16 %v1843_v16, %v1842_v58  ;;  %v1879_v63 = vsel %vm1395_vm4, %v1859_v28, 0 }
 0x329   : > { %2906 = vmatpush3.bf16.xpose.msra.mxu1 %v1879_v63  ;;  %v2049_v1 = vpop.permute.xlu0 %2048 }
 0x32a   : > { %v2053_v15 = vsel %vm812_vm3, %v2043_v38, %v2049_v1  ;;  %1846 = vrot.lane.b32.xlu1 %v1844_v45, %s4504_s22  ;;  %2907 = vmatprep.subr.bf16.mxu1 %v4511_v9  ;;  %v3198_v45 = vmov 0.0|0.0  }
 0x32b   : > { %v2055_v35 = vmul.f32 %v2053_v15, %v4078_v44  ;;  %v1863_v0 = vpop.permute.xlu1 %1862  ;;  %2072 = vrot.lane.b32.xlu0 %v3812_v3, %s3192_s18 }
 0x32c   : > { %v1885_v39 = vsel %vm1395_vm4, %v1863_v0, 0 }
 0x32d   : > { %v1861_v56 = vpop.permute.xlu0 %1860 }
 0x32e   : > { %2060 = vrot.lane.b32.xlu1 %v2055_v35, %s3192_s18  ;;  %v1882_v7 = vsel %vm1395_vm4, %v1861_v56, 0 }
 0x32f   : > { %v1867_v5 = vpop.permute.xlu1 %1866  ;;  %2076 = vrot.lane.b32.xlu0 %v3846_v31, %s3192_s18 }
 0x330   : > { %v1891_v37 = vsel %vm1395_vm4, %v1867_v5, 0 }
 0x331   : > { %2908 = vmatpush3.bf16.xpose.msra.mxu1 %v1882_v7  ;;  %v1865_v41 = vpop.permute.xlu0 %1864 }
 0x332   : > { %2074 = vrot.lane.b32.xlu1 %v3828_v14, %s3192_s18  ;;  %2909 = vmatprep.subr.bf16.mxu1 %v4511_v9  ;;  %v1888_v62 = vsel %vm1395_vm4, %v1865_v41, 0 }
 0x333   : > { %v1658_v6 = vpop.permute.xlu1 %1657  ;;  %2080 = vrot.lane.b32.xlu0 %v3989_v12, %s3192_s18 }
 0x335   : > { %v1869_v53 = vpop.permute.xlu0 %1868 }
 0x336   : > { %2078 = vrot.lane.b32.xlu1 %v3925_v36, %s3192_s18  ;;  %v1894_v48 = vsel %vm1395_vm4, %v1869_v53, 0 }
 0x337   : > { %v1666_v2 = vpop.permute.xlu1 %1665  ;;  %2084 = vrot.lane.b32.xlu0 %v4157_v11, %s3192_s18 }
 0x338   : > { %v1672_v34 = vsel %vm812_vm3, %v1658_v6, %v1666_v2 }
 0x339   : > { %2910 = vmatpush3.bf16.xpose.msra.mxu1 %v1885_v39  ;;  %v1660_v49 = vpop.permute.xlu0 %1659  ;;  %v1674_v26 = vmul.f32 %v1672_v34, %v4062_v20  ;;  %v4513_v39 = vlaneseq  ;;  %v3199_v34 = vmov -1e+30  }
 0x33a   : > { %2082 = vrot.lane.b32.xlu1 %v4120_v47, %s3192_s18  ;;  %2911 = vmatprep.subr.bf16.mxu1 %v4511_v9 }
 0x33b   : > { %v1676_v57 = vadd.f32 %v1674_v26, %v1651_v25 }
 0x33d   : > { %v1668_v21 = vpop.permute.xlu0 %1667 }
 0x33e   : > { %v1673_v18 = vsel %vm812_vm3, %v1660_v49, %v1668_v21  ;;  %v1648_v49 = vand.u32 127, %v4513_v39 }
 0x33f   : > { %v1675_v50 = vmul.f32 %v1673_v18, %v4078_v44 }
 0x340   : > { %vm1649_vm8 = vcmp.lt.s32.totalorder %v1648_v49, 9 }
 0x341   : > { %v1677_v40 = vadd.f32 %v1675_v50, %v1652_v52  ;;  %2912 = vmatpush3.bf16.xpose.msra.mxu1 %v1888_v62  ;;  %v2033_v22 = vpop.permute.xlu0 %2032  ;;  %v4248_v26 = vsel %vm1649_vm8, 0.0, %v3199_v34 }
 0x342   : > { %2913 = vmatprep.subr.bf16.mxu1 %v4511_v9  ;;  %v2038_v19 = vmul.f32 %v2033_v22, %v3876_v27 }
 0x343   : > { %v1678_v43 = vpack.c.bf16 %v1677_v40, %v1676_v57  ;;  %v4514_v40 = vld [vmem:[#allocation7_spill] sm:$0xff] }
 0x345   : > { %2894 = vmatmul.mubr.msk.bf16.vlgmr.msra.gmra.mrb[4].mxu0 %vm1395_vm4, %v1678_v43  ;;  %v2071_v59 = vpop.permute.xlu0 %2070 }
 0x346   : > { %2898 = vmatpush3.bf16.msk.msra.mxu0 %vm2771_vm7, %v2772_v10  ;;  %2899 = vmatprep.mubr.msk.bf16.mxu0 %vm3196_vm2, %v4511_v9  ;;  %v2090_v55 = vsel %vm1395_vm4, %v2071_v59, 0 }
 0x347   : > { %2923 = vmatprep.subr.bf16.mxu0 %v4511_v9 }
 0x349   : > { %2914 = vmatpush3.bf16.xpose.msra.mxu1 %v1891_v37 }
 0x34a   : > { %2915 = vmatprep.subr.bf16.mxu1 %v4511_v9 }
 0x34d   : > { %v1871_v13 = vpop.permute.xlu1 %1870 }
 0x34e   : > { %v1897_v8 = vsel %vm1395_vm4, %v1871_v13, 0 }
 0x351   : > { %2916 = vmatpush3.bf16.xpose.msra.mxu1 %v1894_v48  ;;  %v2035_v60 = vpop.permute.xlu1 %2034 }
 0x352   : > { %2917 = vmatprep.subr.bf16.mxu1 %v4511_v9  ;;  %v2039_v30 = vmul.f32 %v2035_v60, %v3863_v61 }
 0x359   : > { %2918 = vmatpush3.bf16.xpose.msra.mxu1 %v1897_v8 }
 0x35a   : > { %2943 = vmatprep.subr.bf16.mxu1 %v4511_v9 }
 0x399   : > { %v2059_v4 = vpop.permute.xlu0 %2058 }
 0x39a   : > { %v2064_v24 = vadd.f32 %v2059_v4, %v2038_v19 }
 0x39c   : > { %v1847_v38 = vpop.permute.xlu1 %1846 }
 0x39d   : > { %2920 = vmatmul.mubr.msk.bf16.vlgmr.msra.gmra.mrb[4].mxu1 %vm1395_vm4, %v1847_v38  ;;  %v2073_v58 = vpop.permute.xlu0 %2072 }
 0x39e   : > { %2944 = vmatpush3.bf16.xpose.msra.mxu1 %v2090_v55  ;;  %2959 = vmatprep.mubr.msk.bf16.mxu1 %vm3196_vm2, %v4511_v9  ;;  %v2093_v28 = vsel %vm1395_vm4, %v2073_v58, 0 }
 0x39f   : > { %2945 = vmatprep.subr.bf16.mxu1 %v4511_v9 }
 0x3a0   : > { %v2061_v17 = vpop.permute.xlu1 %2060 }
 0x3a1   : > { %v2065_v32 = vadd.f32 %v2061_v17, %v2039_v30  ;;  %v2077_v15 = vpop.permute.xlu0 %2076 }
 0x3a2   : > { %v2099_v35 = vsel %vm1395_vm4, %v2077_v15, 0 }
 0x3a3   : > { %v2066_v16 = vpack.c.bf16 %v2065_v32, %v2064_v24 }
 0x3a4   : > { %v2075_v63 = vpop.permute.xlu1 %2074 }
 0x3a5   : > { %2068 = vrot.lane.b32.xlu1 %v2066_v16, %s3192_s18  ;;  %v2096_v1 = vsel %vm1395_vm4, %v2075_v63, 0  ;;  %v2081_v5 = vpop.permute.xlu0 %2080 }
 0x3a6   : > { %2946 = vmatpush3.bf16.xpose.msra.mxu1 %v2093_v28  ;;  %v2105_v7 = vsel %vm1395_vm4, %v2081_v5, 0 }
 0x3a7   : > { %2947 = vmatprep.subr.bf16.mxu1 %v4511_v9 }
 0x3a8   : > { %v2079_v0 = vpop.permute.xlu1 %2078 }
 0x3a9   : > { %1969 = vrot.lane.b32.xlu1 %v3198_v45, %s4504_s22  ;;  %v2102_v56 = vsel %vm1395_vm4, %v2079_v0, 0  ;;  %v2085_v53 = vpop.permute.xlu0 %2084 }
 0x3aa   : > { %v2111_v2 = vsel %vm1395_vm4, %v2085_v53, 0 }
 0x3ac   : > { %v2083_v41 = vpop.permute.xlu1 %2082 }
 0x3ad   : > { %v2108_v6 = vsel %vm1395_vm4, %v2083_v41, 0 }
 0x3ae   : > { %2948 = vmatpush3.bf16.xpose.msra.mxu1 %v2096_v1 }
 0x3af   : > { %2949 = vmatprep.subr.bf16.mxu1 %v4511_v9 }
 0x3b6   : > { %2950 = vmatpush3.bf16.xpose.msra.mxu1 %v2099_v35 }
 0x3b7   : > { %2951 = vmatprep.subr.bf16.mxu1 %v4511_v9 }
 0x3be   : > { %2952 = vmatpush3.bf16.xpose.msra.mxu1 %v2102_v56 }
 0x3bf   : > { %2953 = vmatprep.subr.bf16.mxu1 %v4511_v9 }
 0x3c6   : > { %2954 = vmatpush3.bf16.xpose.msra.mxu1 %v2105_v7 }
 0x3c7   : > { %2955 = vmatprep.subr.bf16.mxu1 %v4511_v9 }
 0x3ce   : > { %2956 = vmatpush3.bf16.xpose.msra.mxu1 %v2108_v6 }
 0x3cf   : > { %2957 = vmatprep.subr.bf16.mxu1 %v4511_v9 }
 0x3d6   : > { %2958 = vmatpush3.bf16.xpose.msra.mxu1 %v2111_v2 }
 0x3d7   : > { %3003 = vmatprep.subr.bf16.mxu1 %v4511_v9 }
 0x417   : > { %v2069_v21 = vpop.permute.xlu1 %2068 }
 0x418   : > { %v1741_v18 = vpop.f32.mrb[4].mxu0  ;;  %2960 = vmatmul.mubr.msk.bf16.vlgmr.msra.gmra.mrb[8].mxu1 %vm1395_vm4, %v2069_v21 }
 0x419   : > { %v1742_v25 = vadd.f32 %v1741_v18, %v4248_v26  ;;  %v2895_v52 = vpop.f32.mrb[5].mxu0  ;;  %3019 = vmatprep.mubr.msk.bf16.mxu1 %vm3196_vm2, %v4511_v9 }
 0x41a   : > { %v1744_v50 = vpop.f32.mrb[6].mxu0 }
 0x41b   : > { %v1745_v62 = vadd.f32 %v1744_v50, %v4248_v26  ;;  %1748 = vmax.xlane.f32.xlu0 %v1742_v25  ;;  %v2896_v57 = vpop.f32.mrb[7].mxu0  ;;  %v4257_v37 = vpop.permute.xlu1 %1969 }
 0x41d   : > { %1750 = vmax.xlane.f32.xlu1 %v1745_v62 }
 0x431   : > { %1967 = vrot.lane.b32.xlu0 %v4514_v40, %s4504_s22 }
 0x470   : > { %v1933_v43 = vpop.f32.mrb[4].mxu1 }
 0x471   : > { %v2921_v42 = vpop.f32.mrb[5].mxu1  ;;  %v1934_v55 = vadd.f32 %v1933_v43, %v4248_v26 }
 0x472   : > { %v1936_v23 = vpop.f32.mrb[6].mxu1 }
 0x473   : > { %v2922_v10 = vpop.f32.mrb[7].mxu1  ;;  %v1937_v19 = vadd.f32 %v1936_v23, %v4248_v26 }
 0x4a8   : > { %v1749_v48 = vpop.xlane.xlu0 %1748 }
 0x4a9   : > { %v1752_v13 = vsub.f32 %v1742_v25, %v1749_v48 }
 0x4aa   : > { %v1751_v8 = vpop.xlane.xlu1 %1750 }
 0x4ab   : > { %v1754_v22 = vmul.f32 1.442695, %v1752_v13  ;;  %v1753_v59 = vsub.f32 %v1745_v62, %v1751_v8 }
 0x4ad   : > { %3127 = vpow2.f32 %v1754_v22  ;;  %v1756_v60 = vmul.f32 1.442695, %v1753_v59 }
 0x4af   : > { %3129 = vpow2.f32 %v1756_v60 }
 0x4b7   : > { %v3128_v4 = vpop.eup %3127 }
 0x4b8   : > { %1758 = vadd.xlane.f32.xlu0 %v3128_v4 }
 0x4b9   : > { %v3130_v38 = vpop.eup %3129 }
 0x4ba   : > { %1760 = vadd.xlane.f32.xlu1 %v3130_v38 }
 0x4bc   : > { %1940 = vmax.xlane.f32.xlu0 %v1934_v55 }
 0x4c0   : > { %1942 = vmax.xlane.f32.xlu0 %v1937_v19 }
 0x4cb   : > { %2246 = vrot.lane.b32.xlu1 %v3890_v51, %s3195_s24 }
 0x4cf   : > { %2252 = vrot.lane.b32.xlu1 %v3876_v27, %s3190_s30 }
 0x4d3   : > { %1973 = vrot.lane.b32.xlu1 %v3198_v45, %s4504_s22 }
 0x4d6   : > { %1971 = vrot.lane.b32.xlu0 %v3198_v45, %s4504_s22 }
 0x4d7   : > { %1977 = vrot.lane.b32.xlu1 %v3198_v45, %s4504_s22 }
 0x4db   : > { %1981 = vrot.lane.b32.xlu1 %v3198_v45, %s4504_s22 }
 0x4df   : > { %2175 = vrot.lane.b32.xlu1 %v3198_v45, %s3192_s18 }
 0x4e3   : > { %2179 = vrot.lane.b32.xlu1 %v3198_v45, %s3192_s18 }
 0x4e7   : > { %2183 = vrot.lane.b32.xlu1 %v3198_v45, %s3192_s18 }
 0x4eb   : > { %2187 = vrot.lane.b32.xlu1 %v3198_v45, %s3192_s18  ;;  %v2147_v51 = vpop.f32.mrb[8].mxu1 }
 0x4ec   : > { %v2961_v30 = vpop.f32.mrb[9].mxu1  ;;  %v2148_v32 = vadd.f32 %v2147_v51, %v4248_v26 }
 0x4ed   : > { %v2150_v17 = vpop.f32.mrb[10].mxu1 }
 0x4ee   : > { %v2962_v24 = vpop.f32.mrb[11].mxu1  ;;  %v4285_v58 = vadd.f32 %v2150_v17, %v4248_v26 }
 0x4f5   : > { %2154 = vmax.xlane.f32.xlu0 %v2148_v32 }
 0x50b   : > { %2248 = vrot.lane.b32.xlu0 %v3871_v54, %s3195_s24  ;;  %v1968_v54 = vpop.permute.xlu0 %1967 }
 0x50f   : > { %2156 = vmax.xlane.f32.xlu1 %v4285_v58  ;;  %2254 = vrot.lane.b32.xlu0 %v3863_v61, %s3190_s30 }
 0x513   : > { %1975 = vrot.lane.b32.xlu0 %v3198_v45, %s4504_s22 }
 0x517   : > { %1979 = vrot.lane.b32.xlu0 %v3198_v45, %s4504_s22 }
 0x51b   : > { %2173 = vrot.lane.b32.xlu0 %v4514_v40, %s3192_s18 }
 0x51f   : > { %2177 = vrot.lane.b32.xlu0 %v3198_v45, %s3192_s18 }
 0x520   : > { %2240 = vrot.lane.b32.xlu1 %v4069_v29, %s4504_s22 }
 0x523   : > { %2181 = vrot.lane.b32.xlu0 %v3198_v45, %s3192_s18 }
 0x527   : > { %2185 = vrot.lane.b32.xlu0 %v3198_v45, %s3192_s18 }
 0x52b   : > { %2238 = vrot.lane.b32.xlu0 %v4011_v46, %s4504_s22 }
 0x52f   : > { %2276 = vrot.lane.b32.xlu0 %v4053_v33, %s3191_s17 }
 0x545   : > { %v1759_v16 = vpop.xlane.xlu0 %1758 }
 0x546   : > { %3131 = vrcp.f32 %v1759_v16 }
 0x547   : > { %v1761_v28 = vpop.xlane.xlu1 %1760 }
 0x548   : > { %3133 = vrcp.f32 %v1761_v28 }
 0x549   : > { %v1941_v63 = vpop.xlane.xlu0 %1940 }
 0x54a   : > { %v1944_v1 = vsub.f32 %v1934_v55, %v1941_v63 }
 0x54b   : > { %v2247_v6 = vpop.permute.xlu1 %2246 }
 0x54c   : > { %v1946_v29 = vmul.f32 1.442695, %v1944_v1 }
 0x54d   : > { %v1943_v15 = vpop.xlane.xlu0 %1942 }
 0x54e   : > { %3135 = vpow2.f32 %v1946_v29  ;;  %v1945_v35 = vsub.f32 %v1937_v19, %v1943_v15 }
 0x54f   : > { %v2253_v2 = vpop.permute.xlu1 %2252 }
 0x550   : > { %v3132_v0 = vpop.eup %3131  ;;  %v1948_v56 = vmul.f32 1.442695, %v1945_v35  ;;  %v2258_v34 = vsel %vm812_vm3, %v2247_v6, %v2253_v2 }
 0x551   : > { %v1764_v7 = vmul.f32 %v3132_v0, %v3128_v4  ;;  %v1972_v39 = vpop.permute.xlu0 %1971  ;;  %v2260_v21 = vmul.f32 %v2258_v34, %v4062_v20 }
 0x552   : > { %v3134_v5 = vpop.eup %3133  ;;  %3137 = vpow2.f32 %v1948_v56 }
 0x553   : > { %v1765_v46 = vmul.f32 %v3134_v5, %v3130_v38  ;;  %v1974_v49 = vpop.permute.xlu1 %1973 }
 0x555   : > { %v1766_v41 = vpack.c.bf16 %v1765_v46, %v1764_v7 }
 0x557   : > { %2900 = vmatmul.mubr.bf16.vlgmr.msra.gmra.mrb[8].mxu0 %v1766_v41  ;;  %v1978_v18 = vpop.permute.xlu1 %1977 }
 0x558   : > { %v4308_v33 = vpop.eup %3135  ;;  %2924 = vmatpush3.bf16.msra.mxu0 %v1968_v54  ;;  %2939 = vmatprep.mubr.msk.bf16.mxu0 %vm3196_vm2, %v4511_v9 }
 0x559   : > { %1950 = vadd.xlane.f32.xlu1 %v4308_v33  ;;  %2925 = vmatprep.subr.bf16.mxu0 %v4511_v9 }
 0x55b   : > { %v1982_v25 = vpop.permute.xlu1 %1981 }
 0x55c   : > { %v3138_v53 = vpop.eup %3137  ;;  %2926 = vmatpush3.bf16.msra.mxu0 %v4257_v37 }
 0x55d   : > { %1952 = vadd.xlane.f32.xlu1 %v3138_v53  ;;  %2927 = vmatprep.subr.bf16.mxu0 %v4511_v9 }
 0x55f   : > { %v2176_v57 = vpop.permute.xlu1 %2175 }
 0x560   : > { %2928 = vmatpush3.bf16.msra.mxu0 %v1972_v39 }
 0x561   : > { %2929 = vmatprep.subr.bf16.mxu0 %v4511_v9 }
 0x563   : > { %v2180_v23 = vpop.permute.xlu1 %2179 }
 0x564   : > { %2930 = vmatpush3.bf16.msra.mxu0 %v1974_v49 }
 0x565   : > { %2931 = vmatprep.subr.bf16.mxu0 %v4511_v9 }
 0x567   : > { %v2184_v48 = vpop.permute.xlu1 %2183 }
 0x56b   : > { %v2188_v13 = vpop.permute.xlu1 %2187 }
 0x56e   : > { %2264 = vrot.lane.b32.xlu1 %v2260_v21, %s4504_s22 }
 0x582   : > { %v2155_v52 = vpop.xlane.xlu0 %2154 }
 0x583   : > { %v2158_v50 = vsub.f32 %v2148_v32, %v2155_v52 }
 0x585   : > { %v2160_v62 = vmul.f32 1.442695, %v2158_v50 }
 0x586   : > { %v2249_v43 = vpop.permute.xlu0 %2248 }
 0x587   : > { %3139 = vpow2.f32 %v2160_v62 }
 0x58a   : > { %v2255_v42 = vpop.permute.xlu0 %2254 }
 0x58b   : > { %v2259_v60 = vsel %vm812_vm3, %v2249_v43, %v2255_v42 }
 0x58c   : > { %v2261_v4 = vmul.f32 %v2259_v60, %v4078_v44 }
 0x58e   : > { %v1976_v10 = vpop.permute.xlu0 %1975 }
 0x58f   : > { %2932 = vmatpush3.bf16.msra.mxu0 %v1976_v10 }
 0x590   : > { %2933 = vmatprep.subr.bf16.mxu0 %v4511_v9 }
 0x591   : > { %v4322_v37 = vpop.eup %3139 }
 0x592   : > { %2164 = vadd.xlane.f32.xlu0 %v4322_v37  ;;  %v1980_v20 = vpop.permute.xlu0 %1979 }
 0x593   : > { %2934 = vmatpush3.bf16.msra.mxu0 %v1978_v18 }
 0x594   : > { %2935 = vmatprep.subr.bf16.mxu0 %v4511_v9 }
 0x596   : > { %v2174_v30 = vpop.permute.xlu0 %2173 }
 0x597   : > { %2936 = vmatpush3.bf16.msra.mxu0 %v1980_v20 }
 0x598   : > { %2937 = vmatprep.subr.bf16.mxu0 %v4511_v9 }
 0x59b   : > { %2938 = vmatpush3.bf16.msra.mxu0 %v1982_v25 }
 0x59c   : > { %v2157_v8 = vpop.xlane.xlu1 %2156  ;;  %2963 = vmatprep.subr.bf16.mxu0 %v4511_v9 }
 0x59d   : > { %v2159_v22 = vsub.f32 %v4285_v58, %v2157_v8 }
 0x59f   : > { %v2162_v59 = vmul.f32 1.442695, %v2159_v22 }
 0x5a0   : > { %v2241_v44 = vpop.permute.xlu1 %2240 }
 0x5a1   : > { %3141 = vpow2.f32 %v2162_v59  ;;  %v2245_v54 = vmul.f32 %v2241_v44, %v3863_v61 }
 0x5a8   : > { %2266 = vrot.lane.b32.xlu0 %v2261_v4, %s4504_s22 }
 0x5ab   : > { %v3142_v38 = vpop.eup %3141 }
 0x5ac   : > { %2166 = vadd.xlane.f32.xlu1 %v3142_v38  ;;  %2280 = vrot.lane.b32.xlu0 %v3828_v14, %s3191_s17 }
 0x5b0   : > { %2284 = vrot.lane.b32.xlu0 %v3925_v36, %s3191_s17 }
 0x5b4   : > { %2288 = vrot.lane.b32.xlu0 %v4120_v47, %s3191_s17 }
 0x5bd   : > { %2278 = vrot.lane.b32.xlu1 %v3812_v3, %s3191_s17 }
 0x5c1   : > { %2282 = vrot.lane.b32.xlu1 %v3846_v31, %s3191_s17  ;;  %v2178_v31 = vpop.permute.xlu0 %2177 }
 0x5c5   : > { %2286 = vrot.lane.b32.xlu1 %v3989_v12, %s3191_s17  ;;  %v2182_v12 = vpop.permute.xlu0 %2181 }
 0x5c9   : > { %2290 = vrot.lane.b32.xlu1 %v4157_v11, %s3191_s17  ;;  %v2186_v11 = vpop.permute.xlu0 %2185 }
 0x5cd   : > { %v2239_v17 = vpop.permute.xlu0 %2238 }
 0x5ce   : > { %v2244_v16 = vmul.f32 %v2239_v17, %v3876_v27 }
 0x5d1   : > { %v2277_v24 = vpop.permute.xlu0 %2276 }
 0x5e6   : > { %v1951_v14 = vpop.xlane.xlu1 %1950 }
 0x5e7   : > { %3143 = vrcp.f32 %v1951_v14 }
 0x5ea   : > { %v1953_v55 = vpop.xlane.xlu1 %1952 }
 0x5eb   : > { %3145 = vrcp.f32 %v1953_v55 }
 0x5ee   : > { %v2265_v58 = vpop.permute.xlu1 %2264 }
 0x5ef   : > { %v2270_v63 = vadd.f32 %v2265_v58, %v2244_v16 }
 0x5f1   : > { %v3144_v36 = vpop.eup %3143 }
 0x5f2   : > { %v1956_v47 = vmul.f32 %v3144_v36, %v4308_v33  ;;  %v2296_v33 = vsel %vm1395_vm4, %v2277_v24, 0 }
 0x5f5   : > { %v3146_v19 = vpop.eup %3145 }
 0x5f6   : > { %v1957_v51 = vmul.f32 %v3146_v19, %v3138_v53 }
 0x5f8   : > { %v1958_v3 = vpack.c.bf16 %v1957_v51, %v1956_v47 }
 0x5fa   : > { %2940 = vmatmul.mubr.bf16.vlgmr.msra.gmra.mrb[12].mxu0 %v1958_v3 }
 0x5fb   : > { %2964 = vmatpush3.bf16.msra.mxu0 %v2174_v30  ;;  %2979 = vmatprep.mubr.msk.bf16.mxu0 %vm3196_vm2, %v4511_v9 }
 0x5fc   : > { %2965 = vmatprep.subr.bf16.mxu0 %v4511_v9 }
 0x5ff   : > { %2966 = vmatpush3.bf16.msra.mxu0 %v2176_v57 }
 0x600   : > { %2967 = vmatprep.subr.bf16.mxu0 %v4511_v9 }
 0x603   : > { %2968 = vmatpush3.bf16.msra.mxu0 %v2178_v31 }
 0x604   : > { %2969 = vmatprep.subr.bf16.mxu0 %v4511_v9 }
 0x607   : > { %2970 = vmatpush3.bf16.msra.mxu0 %v2180_v23 }
 0x608   : > { %2971 = vmatprep.subr.bf16.mxu0 %v4511_v9 }
 0x60b   : > { %2972 = vmatpush3.bf16.msra.mxu0 %v2182_v12 }
 0x60c   : > { %2973 = vmatprep.subr.bf16.mxu0 %v4511_v9 }
 0x60f   : > { %2974 = vmatpush3.bf16.msra.mxu0 %v2184_v48 }
 0x610   : > { %2975 = vmatprep.subr.bf16.mxu0 %v4511_v9 }
 0x613   : > { %2976 = vmatpush3.bf16.msra.mxu0 %v2186_v11 }
 0x614   : > { %2977 = vmatprep.subr.bf16.mxu0 %v4511_v9 }
 0x617   : > { %2978 = vmatpush3.bf16.msra.mxu0 %v2188_v13 }
 0x618   : > { %2983 = vmatprep.subr.bf16.mxu0 %v4511_v9 }
 0x61f   : > { %v2165_v32 = vpop.xlane.xlu0 %2164 }
 0x620   : > { %3147 = vrcp.f32 %v2165_v32 }
 0x623   : > { %v2267_v28 = vpop.permute.xlu0 %2266 }
 0x624   : > { %v2271_v1 = vadd.f32 %v2267_v28, %v2245_v54 }
 0x626   : > { %v2272_v29 = vpack.c.bf16 %v2271_v1, %v2270_v63 }
 0x627   : > { %v2281_v2 = vpop.permute.xlu0 %2280 }
 0x628   : > { %2274 = vrot.lane.b32.xlu0 %v2272_v29, %s3191_s17  ;;  %v2302_v39 = vsel %vm1395_vm4, %v2281_v2, 0 }
 0x62a   : > { %v4360_v15 = vpop.f32.mrb[8].mxu0  ;;  %v3148_v7 = vpop.eup %3147 }
 0x62b   : > { %v2901_v35 = vpop.f32.mrb[9].mxu0  ;;  %v2170_v61 = vmul.f32 %v3148_v7, %v4322_v37  ;;  %v2285_v21 = vpop.permute.xlu0 %2284  ;;  %v3116_v7 = vld [vmem:[%s4482_s10 + $0x8] sm:$0xff]  }
 0x62c   : > { %v4362_v0 = vpop.f32.mrb[10].mxu0  ;;  %v2308_v18 = vsel %vm1395_vm4, %v2285_v21, 0 }
 0x62d   : > { %v2902_v56 = vpop.f32.mrb[11].mxu0 }
 0x62f   : > { %v2289_v50 = vpop.permute.xlu0 %2288 }
 0x630   : > { %v2314_v62 = vsel %vm1395_vm4, %v2289_v50, 0 }
 0x639   : > { %v2167_v5 = vpop.xlane.xlu1 %2166 }
 0x63a   : > { %3149 = vrcp.f32 %v2167_v5 }
 0x63d   : > { %v2279_v6 = vpop.permute.xlu1 %2278 }
 0x63e   : > { %v2299_v53 = vsel %vm1395_vm4, %v2279_v6, 0  ;;  %v3122_v6 = vld [vmem:[%s4482_s10 + $0x38] sm:$0xff]  }
 0x641   : > { %v2283_v49 = vpop.permute.xlu1 %2282 }
 0x642   : > { %v2305_v34 = vsel %vm1395_vm4, %v2283_v49, 0 }
 0x644   : > { %v3150_v46 = vpop.eup %3149 }
 0x645   : > { %v2171_v27 = vmul.f32 %v3150_v46, %v3142_v38  ;;  %v2287_v25 = vpop.permute.xlu1 %2286  ;;  %v3117_v46 = vld [vmem:[%s4482_s10 + $0x10] sm:$0xff]  }
 0x646   : > { %v2311_v52 = vsel %vm1395_vm4, %v2287_v25, 0 }
 0x647   : > { %v2172_v41 = vpack.c.bf16 %v2171_v27, %v2170_v61  ;;  %v3118_v61 = vld [vmem:[%s4482_s10 + $0x18] sm:$0xff]   ;;  %v3119_v27 = vld [vmem:[%s4482_s10 + $0x20] sm:$0xff]  }
 0x649   : > { %2980 = vmatmul.mubr.bf16.vlgmr.msra.gmra.mrb[16].mxu0 %v2172_v41  ;;  %v2291_v57 = vpop.permute.xlu1 %2290  ;;  %v3120_v41 = vld [vmem:[%s4482_s10 + $0x28] sm:$0xff]  }
 0x64a   : > { %2984 = vmatpush3.bf16.xpose.msra.mxu0 %v2296_v33  ;;  %2999 = vmatprep.mubr.msk.bf16.mxu0 %vm3196_vm2, %v4511_v9  ;;  %v2317_v43 = vsel %vm1395_vm4, %v2291_v57, 0  ;;  %v3121_v33 = vld [vmem:[%s4482_s10 + $0x30] sm:$0xff]  }
 0x64b   : > { %2985 = vmatprep.subr.bf16.mxu0 %v4511_v9 }
 0x652   : > { %2986 = vmatpush3.bf16.xpose.msra.mxu0 %v2299_v53 }
 0x653   : > { %2987 = vmatprep.subr.bf16.mxu0 %v4511_v9 }
 0x65a   : > { %2988 = vmatpush3.bf16.xpose.msra.mxu0 %v2302_v39 }
 0x65b   : > { %2989 = vmatprep.subr.bf16.mxu0 %v4511_v9 }
 0x662   : > { %2990 = vmatpush3.bf16.xpose.msra.mxu0 %v2305_v34 }
 0x663   : > { %2991 = vmatprep.subr.bf16.mxu0 %v4511_v9 }
 0x66a   : > { %2992 = vmatpush3.bf16.xpose.msra.mxu0 %v2308_v18 }
 0x66b   : > { %2993 = vmatprep.subr.bf16.mxu0 %v4511_v9 }
 0x672   : > { %2994 = vmatpush3.bf16.xpose.msra.mxu0 %v2311_v52 }
 0x673   : > { %2995 = vmatprep.subr.bf16.mxu0 %v4511_v9 }
 0x67a   : > { %2996 = vmatpush3.bf16.xpose.msra.mxu0 %v2314_v62 }
 0x67b   : > { %2997 = vmatprep.subr.bf16.mxu0 %v4511_v9 }
 0x682   : > { %2998 = vmatpush3.bf16.xpose.msra.mxu0 %v2317_v43 }
 0x69a   : > { %v2275_v42 = vpop.permute.xlu0 %2274 }
 0x69b   : > { %3000 = vmatmul.mubr.msk.bf16.vlgmr.msra.gmra.mrb[20].mxu0 %vm1395_vm4, %v2275_v42 }
 0x6cd   : > { %v2025_v23 = vpop.f32.mrb[12].mxu0 }
 0x6ce   : > { %v2941_v10 = vpop.f32.mrb[13].mxu0 }
 0x6cf   : > { %v2028_v37 = vpop.f32.mrb[14].mxu0 }
 0x6d0   : > { %v3080_v48 = vpack.i.bf16 %v2028_v37, %v2025_v23  ;;  %v2942_v20 = vpop.f32.mrb[15].mxu0 }
 0x71c   : > { %v2231_v13 = vpop.f32.mrb[16].mxu0 }
 0x71d   : > { %v2981_v8 = vpop.f32.mrb[17].mxu0 }
 0x71e   : > { %v2234_v22 = vpop.f32.mrb[18].mxu0 }
 0x71f   : > { %v3085_v59 = vpack.i.bf16 %v2234_v22, %v2231_v13  ;;  %v2982_v60 = vpop.f32.mrb[19].mxu0 }
 0x720   : > { %v3161_v60 = vld [vmem:[%s3311_s29] sm:$0xff] }
 0x76e   : > { %v2353_v4 = vpop.f32.mrb[20].mxu0 }
 0x76f   : > { %v2354_v38 = vadd.f32 %v2353_v4, %v4248_v26  ;;  %v3001_v44 = vpop.f32.mrb[21].mxu0 }
 0x770   : > { %v2356_v14 = vpop.f32.mrb[22].mxu0 }
 0x771   : > { %v2357_v55 = vadd.f32 %v2356_v14, %v4248_v26  ;;  %2360 = vmax.xlane.f32.xlu1 %v2354_v38  ;;  %v3002_v36 = vpop.f32.mrb[23].mxu0  ;;  %v3162_v14 = vld [vmem:[%s3311_s29 + $0x8] sm:$0xff] }
 0x773   : > { %2362 = vmax.xlane.f32.xlu0 %v2357_v55 }
 0x782   : > { %2381 = vrot.lane.b32.xlu1 %v3198_v45, %s3191_s17 }
 0x786   : > { %2387 = vrot.lane.b32.xlu1 %v3198_v45, %s3191_s17 }
 0x789   : > { %2379 = vrot.lane.b32.xlu0 %v4514_v40, %s3191_s17 }
 0x78d   : > { %2383 = vrot.lane.b32.xlu0 %v3198_v45, %s3191_s17 }
 0x791   : > { %2385 = vrot.lane.b32.xlu0 %v3198_v45, %s3191_s17 }
 0x795   : > { %2389 = vrot.lane.b32.xlu0 %v3198_v45, %s3191_s17 }
 0x799   : > { %2393 = vrot.lane.b32.xlu0 %v3198_v45, %s3191_s17 }
 0x79d   : > { %3086 = vrot.lane.b32.xlu0 %v3085_v59, %s3192_s18 }
 0x7fe   : > { %v2361_v26 = vpop.xlane.xlu1 %2360 }
 0x7ff   : > { %v2364_v19 = vsub.f32 %v2354_v38, %v2361_v26 }
 0x800   : > { %v2363_v47 = vpop.xlane.xlu0 %2362 }
 0x801   : > { %v2366_v51 = vmul.f32 1.442695, %v2364_v19  ;;  %v2365_v3 = vsub.f32 %v2357_v55, %v2363_v47 }
 0x802   : > { %v2382_v31 = vpop.permute.xlu1 %2381 }
 0x803   : > { %3151 = vpow2.f32 %v2366_v51  ;;  %v2368_v40 = vmul.f32 1.442695, %v2365_v3 }
 0x804   : > { %v2380_v30 = vpop.permute.xlu0 %2379 }
 0x805   : > { %3004 = vmatpush3.bf16.msra.mxu1 %v2380_v30  ;;  %3153 = vpow2.f32 %v2368_v40 }
 0x806   : > { %3005 = vmatprep.subr.bf16.mxu1 %v4511_v9  ;;  %v2388_v32 = vpop.permute.xlu1 %2387 }
 0x808   : > { %v2384_v12 = vpop.permute.xlu0 %2383 }
 0x809   : > { %3006 = vmatpush3.bf16.msra.mxu1 %v2382_v31 }
 0x80a   : > { %3007 = vmatprep.subr.bf16.mxu1 %v4511_v9 }
 0x80c   : > { %v2386_v17 = vpop.permute.xlu0 %2385 }
 0x80d   : > { %v3152_v11 = vpop.eup %3151  ;;  %3008 = vmatpush3.bf16.msra.mxu1 %v2384_v12 }
 0x80e   : > { %2370 = vadd.xlane.f32.xlu1 %v3152_v11  ;;  %3009 = vmatprep.subr.bf16.mxu1 %v4511_v9 }
 0x80f   : > { %v3154_v24 = vpop.eup %3153 }
 0x810   : > { %v2390_v58 = vpop.permute.xlu0 %2389 }
 0x811   : > { %3010 = vmatpush3.bf16.msra.mxu1 %v2386_v17 }
 0x812   : > { %2372 = vadd.xlane.f32.xlu1 %v3154_v24  ;;  %3011 = vmatprep.subr.bf16.mxu1 %v4511_v9 }
 0x814   : > { %v2394_v63 = vpop.permute.xlu0 %2393 }
 0x815   : > { %3012 = vmatpush3.bf16.msra.mxu1 %v2388_v32 }
 0x816   : > { %3013 = vmatprep.subr.bf16.mxu1 %v4511_v9 }
 0x818   : > { %v3087_v52 = vpop.permute.xlu0 %3086 }
 0x819   : > { %3014 = vmatpush3.bf16.msra.mxu1 %v2390_v58  ;;  %v3089_v62 = vunpack.i.h.bf16 %v3087_v52  ;;  %v3088_v57 = vunpack.i.l.bf16 %v3087_v52 }
 0x81a   : > { %3015 = vmatprep.subr.bf16.mxu1 %v4511_v9 }
 0x823   : > { %2391 = vrot.lane.b32.xlu1 %v3198_v45, %s3191_s17  ;;  %v3115_v45 = vld [vmem:[%s4482_s10] sm:$0xff]  }
 0x827   : > { %3081 = vrot.lane.b32.xlu1 %v3080_v48, %s3191_s17 }
 0x89b   : > { %v2371_v54 = vpop.xlane.xlu1 %2370 }
 0x89c   : > { %3155 = vrcp.f32 %v2371_v54 }
 0x89f   : > { %v2373_v16 = vpop.xlane.xlu1 %2372 }
 0x8a0   : > { %3157 = vrcp.f32 %v2373_v16 }
 0x8a3   : > { %v2392_v28 = vpop.permute.xlu1 %2391 }
 0x8a4   : > { %3016 = vmatpush3.bf16.msra.mxu1 %v2392_v28 }
 0x8a5   : > { %3017 = vmatprep.subr.bf16.mxu1 %v4511_v9 }
 0x8a6   : > { %v3156_v1 = vpop.eup %3155 }
 0x8a7   : > { %v2376_v35 = vmul.f32 %v3156_v1, %v3152_v11  ;;  %v3082_v21 = vpop.permute.xlu1 %3081 }
 0x8a8   : > { %3018 = vmatpush3.bf16.msra.mxu1 %v2394_v63  ;;  %v3084_v18 = vunpack.i.h.bf16 %v3082_v21  ;;  %v3083_v25 = vunpack.i.l.bf16 %v3082_v21 }
 0x8a9   : > { %3023 = vmatprep.subr.bf16.mxu1 %v4511_v9 }
 0x8aa   : > { %v3158_v29 = vpop.eup %3157  ;;  %v2469_v50 = vsel %vm1395_vm4, %v4362_v0, %v3084_v18 }
 0x8ab   : > { %v2377_v56 = vmul.f32 %v3158_v29, %v3154_v24  ;;  %v2472_v37 = vsel %vm689_vm0, %v2469_v50, %v3089_v62 }
 0x8ad   : > { %v2378_v5 = vpack.c.bf16 %v2377_v56, %v2376_v35 }
 0x8af   : > { %3020 = vmatmul.mubr.bf16.vlgmr.msra.gmra.mrb[12].mxu1 %v2378_v5 }
 0x8b0   : > { %3039 = vmatprep.mubr.msk.bf16.mxu1 %vm3196_vm2, %v4511_v9  ;;  %3024 = vmatpush3.bf16.msra.mxu1 %v3115_v45 }
 0x8b1   : > { %3025 = vmatprep.subr.bf16.mxu1 %v4511_v9 }
 0x8b4   : > { %3026 = vmatpush3.bf16.msra.mxu1 %v3116_v7 }
 0x8b5   : > { %3027 = vmatprep.subr.bf16.mxu1 %v4511_v9 }
 0x8b8   : > { %3028 = vmatpush3.bf16.msra.mxu1 %v3117_v46 }
 0x8b9   : > { %3029 = vmatprep.subr.bf16.mxu1 %v4511_v9 }
 0x8bc   : > { %3030 = vmatpush3.bf16.msra.mxu1 %v3118_v61 }
 0x8bd   : > { %3031 = vmatprep.subr.bf16.mxu1 %v4511_v9 }
 0x8c0   : > { %3032 = vmatpush3.bf16.msra.mxu1 %v3119_v27 }
 0x8c1   : > { %3033 = vmatprep.subr.bf16.mxu1 %v4511_v9 }
 0x8c4   : > { %3034 = vmatpush3.bf16.msra.mxu1 %v3120_v41 }
 0x8c5   : > { %3035 = vmatprep.subr.bf16.mxu1 %v4511_v9 }
 0x8c8   : > { %3036 = vmatpush3.bf16.msra.mxu1 %v3121_v33 }
 0x8c9   : > { %3037 = vmatprep.subr.bf16.mxu1 %v4511_v9  ;;  %v2468_v9 = vsel %vm1395_vm4, %v4360_v15, %v3083_v25  ;;  %v2758_v15 = vld [vmem:[%s4483_s11] ss:$0 sm:$0xff] }
 0x8ca   : > { %v2471_v10 = vsel %vm689_vm0, %v2468_v9, %v3088_v57 }
 0x8cc   : > { %3038 = vmatpush3.bf16.msra.mxu1 %v3122_v6 }
 0x982   : > { %v2437_v53 = vpop.f32.mrb[12].mxu1 }
 0x983   : > { %v3021_v2 = vpop.f32.mrb[13].mxu1 }
 0x984   : > { %v2440_v39 = vpop.f32.mrb[14].mxu1 }
 0x985   : > { %v3090_v49 = vpack.i.bf16 %v2440_v39, %v2437_v53  ;;  %v3022_v34 = vpop.f32.mrb[15].mxu1 }
 0x987   : > { %3091 = vrot.lane.b32.xlu1 %v3090_v49, %s4504_s22 }
 0x9f9   : > { %v3092_v43 = vpop.permute.xlu1 %3091 }
 0x9fa   : > { %v3094_v42 = vunpack.i.h.bf16 %v3092_v43  ;;  %v3093_v23 = vunpack.i.l.bf16 %v3092_v43 }
 0x9fc   : > { %v2474_v48 = vsel %vm1428_vm5, %v2471_v10, %v3093_v23  ;;  %v2475_v20 = vsel %vm1428_vm5, %v2472_v37, %v3094_v42 }
 0x9fd   : > { %v2476_v0 = vpack.c.bf16 %v2475_v20, %v2474_v48 }
 0x9ff   : > { %3040 = vmatmul.mubr.bf16.vlgmr.msra.gmra.mrb[16].mxu1 %v2476_v0 }
 0xad2   : > { %v2582_v13 = vpop.f32.mrb[16].mxu1 }
 0xad3   : > { %v2583_v8 = vadd.f32 %v2758_v15, %v2582_v13  ;;  %v3041_v22 = vpop.f32.mrb[17].mxu1 }
 0xad4   : > { %v2585_v59 = vpop.f32.mrb[18].mxu1 }
 0xad5   : > { %v2589_v4 = vadd.f32 %v3161_v60, %v2583_v8  ;;  %v2586_v38 = vadd.f32 %v2758_v15, %v2585_v59  ;;  %v3042_v44 = vpop.f32.mrb[19].mxu1 }
 0xad7   : > { %2591 = vst [vmem:[%s620_s28] sm:$0xff] %v2589_v4  ;;  %v2590_v55 = vadd.f32 %v3162_v14, %v2586_v38 }
 0xad9   : > { %2592 = vst [vmem:[%s620_s28 + $0x8] sm:$0xff] %v2590_v55 }
 0xada PF: > { %s26_s23 = sadd.s32 1, %s3185_s23   ;;  %s4516_s21 = sld [smem:[#allocation4_spill]] }
 0xadb   : > { %p23_p5 = scmp.ge.s32.totalorder %s26_s23, 4   ;;  %s4517_s22 = sld [smem:[#allocation5_spill]] }
 0xadd   :  { %25 = sbr.rel (!%p23_p5) target bundleno = 2 (0x2), region = 127 }

</bundles_post_ra>
